<compile_context>
chip_gen: v7x
topology: tpu7x:2x2x1
jax: 0.10.0
libtpu: 0.0.40
codegen_flags: <defaults>
</compile_context>

<pallas_src>
import math

import jax
import jax.numpy as jnp
from jax import lax
from jax.experimental import pallas as pl
from jax.experimental.pallas import tpu as pltpu

# ----------------------------- configuration -------------------------------
D_MODEL = 128
N_HEAD = 4
HEAD_DIM = D_MODEL // N_HEAD
D_FF = 256
EPS = 1e-5

_F32 = jnp.float32
_BF16 = jnp.bfloat16

_PARAM_NAMES = (
    "sa_w_qkv", "sa_b_qkv", "sa_w_out", "sa_b_out",
    "ca_w_q", "ca_b_q", "ca_w_kv", "ca_b_kv", "ca_w_out", "ca_b_out",
    "ff_w1", "ff_b1", "ff_w2", "ff_b2",
    "ln1_g", "ln1_b", "ln2_g", "ln2_b", "ln3_g", "ln3_b",
)


# ----------------------- shared math (used in-kernel & as reference) --------
def _clinear(x2, w2, b2):
    """Fused complex linear on wide format: (M,2K) @ (2K,2N) -> (M,2N)."""
    y = jnp.dot(x2.astype(_BF16), w2, preferred_element_type=_F32)
    return y + b2


def _cln(x2, gamma, beta):
    """Complex LayerNorm: 2x2 covariance whitening + affine, wide format."""
    d = x2.shape[-1] // 2
    xr, xi = x2[:, :d], x2[:, d:]
    mr = jnp.mean(xr, axis=-1, keepdims=True)
    mi = jnp.mean(xi, axis=-1, keepdims=True)
    cr, ci = xr - mr, xi - mi
    vrr = jnp.mean(cr * cr, axis=-1, keepdims=True) + EPS
    vii = jnp.mean(ci * ci, axis=-1, keepdims=True) + EPS
    vri = jnp.mean(cr * ci, axis=-1, keepdims=True)
    det = vrr * vii - vri * vri
    s = jnp.sqrt(det)
    # 1/(sqrt(det)*sqrt(trace+2s)) == rsqrt(det*(trace+2s))  (one EUP rsqrt)
    inv = lax.rsqrt(det * (vrr + vii + 2.0 * s))
    urr = (vii + s) * inv
    uii = (vrr + s) * inv
    uri = -vri * inv
    yr = urr * cr + uri * ci
    yi = uri * cr + uii * ci
    zr = gamma[0:1] * yr + gamma[1:2] * yi + beta[0:1]
    zi = gamma[2:3] * yr + gamma[3:4] * yi + beta[1:2]
    return jnp.concatenate([zr, zi], axis=-1)


def _attention(q2, qrot2, k2, v2, recip):
    """Complex MHA core on head-interleaved wide projections.

    q2/qrot2: (T, 2D), k2/v2: (S, 2D); columns of head h are [real_hd|imag_hd]
    (qrot2 columns are [imag_hd | -real_hd], produced by the projection).
    Returns (T, 2D) head-interleaved attention output.
    """
    hd2 = 2 * HEAD_DIM
    scale = 1.0 / math.sqrt(HEAD_DIM)
    # cast matmul operands to bf16 once (not per head)
    qb16, rb16 = q2.astype(_BF16), qrot2.astype(_BF16)
    kb16, vb16 = k2.astype(_BF16), v2.astype(_BF16)
    outs = []
    for h in range(N_HEAD):  # statically unrolled
        sl = slice(h * hd2, (h + 1) * hd2)
        kc = kb16[:, sl]                                          # [kr | ki]
        # fused real/imag score matmuls: contraction depth 2*head_dim
        sr = jnp.einsum("td,sd->ts", qb16[:, sl], kc,
                        preferred_element_type=_F32)
        si = jnp.einsum("td,sd->ts", rb16[:, sl], kc,
                        preferred_element_type=_F32)
        mag = jnp.sqrt(sr * sr + si * si) * scale
        mag = mag - jnp.max(mag, axis=-1, keepdims=True)
        p = jnp.exp(mag)
        attn = p * recip(jnp.sum(p, axis=-1, keepdims=True))      # real weights
        # single matmul yields [attn @ v_r | attn @ v_i]
        o = jnp.dot(attn.astype(_BF16), vb16[:, sl],
                    preferred_element_type=_F32)
        outs.append(o)
    return jnp.concatenate(outs, axis=-1)  # (T, 2D) head-interleaved


def _decoder_core(x2, m2, p, ld, recip):
    """Full decoder layer on one batch element. x2: (T,2D), m2: (S,2D)."""
    d2 = 2 * D_MODEL
    # --- self-attention block (single fused Q/Qrot/K/V projection) ---
    qkv = _clinear(x2, ld(p["sa_w_qkv"]), ld(p["sa_b_qkv"]))        # (T, 8D)
    o2 = _attention(qkv[:, :d2], qkv[:, d2:2 * d2],
                    qkv[:, 2 * d2:3 * d2], qkv[:, 3 * d2:], recip)
    sa = _clinear(o2, ld(p["sa_w_out"]), ld(p["sa_b_out"]))
    x2 = _cln(x2 + sa, ld(p["ln1_g"]), ld(p["ln1_b"]))
    # --- cross-attention block (fused Q/Qrot and K/V projections) ---
    qq = _clinear(x2, ld(p["ca_w_q"]), ld(p["ca_b_q"]))             # (T, 4D)
    kv = _clinear(m2, ld(p["ca_w_kv"]), ld(p["ca_b_kv"]))           # (S, 4D)
    o2 = _attention(qq[:, :d2], qq[:, d2:], kv[:, :d2], kv[:, d2:], recip)
    ca = _clinear(o2, ld(p["ca_w_out"]), ld(p["ca_b_out"]))
    x2 = _cln(x2 + ca, ld(p["ln2_g"]), ld(p["ln2_b"]))
    # --- feed-forward block: linear2(CReLU(linear1(x))) ---
    h2 = jnp.maximum(_clinear(x2, ld(p["ff_w1"]), ld(p["ff_b1"])), 0.0)
    f2 = _clinear(h2, ld(p["ff_w2"]), ld(p["ff_b2"]))
    x2 = _cln(x2 + f2, ld(p["ln3_g"]), ld(p["ln3_b"]))
    return x2


# ------------------------------ Pallas kernel -------------------------------
def _decoder_kernel(tgt_ref, mem_ref, *rest):
    p = dict(zip(_PARAM_NAMES, rest[:len(_PARAM_NAMES)]))
    out_ref = rest[len(_PARAM_NAMES)]
    y2 = _decoder_core(
        tgt_ref[0], mem_ref[0], p,
        ld=lambda r: r[...],                            # load weights near use
        recip=lambda v: pl.reciprocal(v, approx=True))  # EUP-path reciprocal
    out_ref[0] = y2


def transformer_decoder_layer(tgt, memory, params):
    """tgt: (T,B,D) complex64, memory: (S,B,D) complex64 -> (T,B,D) complex64."""
    T, B, D = tgt.shape
    S = memory.shape[0]
    d2 = 2 * D

    def to_wide(z):  # (L, B, D) complex -> (B, L, 2D) f32  [real | imag]
        w = jnp.concatenate([jnp.real(z), jnp.imag(z)], axis=-1).astype(_F32)
        return jnp.transpose(w, (1, 0, 2))

    tgt2, mem2 = to_wide(tgt), to_wide(memory)
    plist = [params[n] for n in _PARAM_NAMES]

    def const_spec(x):  # weights: full block, constant index_map (stay resident)
        nd = x.ndim
        return pl.BlockSpec(x.shape, lambda b, _n=nd: (0,) * _n)

    out2 = pl.pallas_call(
        _decoder_kernel,
        out_shape=jax.ShapeDtypeStruct((B, T, d2), _F32),
        grid=(B,),
        in_specs=[pl.BlockSpec((1, T, d2), lambda b: (b, 0, 0)),
                  pl.BlockSpec((1, S, d2), lambda b: (b, 0, 0))]
                 + [const_spec(x) for x in plist],
        out_specs=pl.BlockSpec((1, T, d2), lambda b: (b, 0, 0)),
        compiler_params=pltpu.CompilerParams(
            dimension_semantics=("parallel",)),  # both TCs on v7x; harmless else
    )(tgt2, mem2, *plist)

    out2 = jnp.transpose(out2, (1, 0, 2))  # (T, B, 2D)
    return (out2[..., :D] + 1j * out2[..., D:]).astype(jnp.complex64)


# --------------------------- pure-JAX reference ------------------------------
def reference_forward(tgt, memory, params):
    T, B, D = tgt.shape

    def to_wide(z):
        w = jnp.concatenate([jnp.real(z), jnp.imag(z)], axis=-1).astype(_F32)
        return jnp.transpose(w, (1, 0, 2))

    tgt2, mem2 = to_wide(tgt), to_wide(memory)
    outs = [_decoder_core(tgt2[b], mem2[b], params,
                          ld=lambda a: a, recip=lambda v: 1.0 / v)
            for b in range(B)]
    out2 = jnp.transpose(jnp.stack(outs, 0), (1, 0, 2))
    return (out2[..., :D] + 1j * out2[..., D:]).astype(jnp.complex64)


# ------------------------- deterministic parameters --------------------------
def _stack_complex(wr, wi):
    """(K,N) real/imag weight -> (2K,2N) real weight with [xr|xi] @ W = [yr|yi]."""
    return jnp.concatenate(
        [jnp.concatenate([wr, wi], axis=1),
         jnp.concatenate([-wi, wr], axis=1)], axis=0)


def _head_interleave(d, h):
    """Permutation mapping [all_real | all_imag] columns -> per-head [r|i] blocks."""
    hd = d // h
    idx = []
    for k in range(h):
        idx.extend(range(k * hd, (k + 1) * hd))
        idx.extend(range(d + k * hd, d + (k + 1) * hd))
    return jnp.asarray(idx, dtype=jnp.int32)


def _rotate_heads_cols(w):
    """Per-head column rotation [r|i] -> [i|-r] (produces the 'q_rot' columns)."""
    hd2 = 2 * HEAD_DIM
    parts = []
    for h in range(N_HEAD):
        blk = w[:, h * hd2:(h + 1) * hd2]
        parts.append(jnp.concatenate([blk[:, HEAD_DIM:], -blk[:, :HEAD_DIM]],
                                     axis=1))
    return jnp.concatenate(parts, axis=1)


def init_params(key):
    D, Dff = D_MODEL, D_FF
    ks = jax.random.split(key, 10)

    def cx_xavier(k, fan_in, fan_out):
        bound = math.sqrt(6.0 / (fan_in + fan_out)) / math.sqrt(2.0)
        k1, k2 = jax.random.split(k)
        return (jax.random.uniform(k1, (fan_in, fan_out), _F32, -bound, bound),
                jax.random.uniform(k2, (fan_in, fan_out), _F32, -bound, bound))

    def stacked(k, fan_in, fan_out):
        return _stack_complex(*cx_xavier(k, fan_in, fan_out))

    perm = _head_interleave(D, N_HEAD)
    zeros = lambda s: jnp.zeros(s, _F32)

    # Attention projections get per-head [real|imag] column interleaving so the
    # kernel reads contiguous 2*HEAD_DIM lane slices per head; the "rotated"
    # query columns ([qi|-qr]) are folded in as extra projection columns so the
    # kernel needs no runtime negate/concat; out-proj rows permuted to match so
    # one big K=2D matmul replaces per-head folding.
    sa_w_q = stacked(ks[0], D, D)[:, perm]
    sa_w_k = stacked(ks[1], D, D)[:, perm]
    sa_w_v = stacked(ks[2], D, D)[:, perm]
    sa_w_out = stacked(ks[3], D, D)[perm, :]
    ca_w_q = stacked(ks[4], D, D)[:, perm]
    ca_w_k = stacked(ks[5], D, D)[:, perm]
    ca_w_v = stacked(ks[6], D, D)[:, perm]
    ca_w_out = stacked(ks[7], D, D)[perm, :]
    ff_w1 = stacked(ks[8], D, Dff)
    ff_w2 = stacked(ks[9], Dff, D)

    # complex LayerNorm affine: g_rr = g_ii = 1/sqrt(2), off-diag / bias = 0
    inv_sqrt2 = 1.0 / math.sqrt(2.0)
    ln_g = jnp.zeros((4, D), _F32).at[0].set(inv_sqrt2).at[3].set(inv_sqrt2)
    ln_b = zeros((2, D))

    return {
        "sa_w_qkv": jnp.concatenate(
            [sa_w_q, _rotate_heads_cols(sa_w_q), sa_w_k, sa_w_v],
            axis=1).astype(_BF16),
        "sa_b_qkv": zeros((1, 8 * D)),
        "sa_w_out": sa_w_out.astype(_BF16),
        "sa_b_out": zeros((1, 2 * D)),
        "ca_w_q": jnp.concatenate(
            [ca_w_q, _rotate_heads_cols(ca_w_q)], axis=1).astype(_BF16),
        "ca_b_q": zeros((1, 4 * D)),
        "ca_w_kv": jnp.concatenate([ca_w_k, ca_w_v], axis=1).astype(_BF16),
        "ca_b_kv": zeros((1, 4 * D)),
        "ca_w_out": ca_w_out.astype(_BF16),
        "ca_b_out": zeros((1, 2 * D)),
        "ff_w1": ff_w1.astype(_BF16),
        "ff_b1": zeros((1, 2 * Dff)),
        "ff_w2": ff_w2.astype(_BF16),
        "ff_b2": zeros((1, 2 * D)),
        "ln1_g": ln_g, "ln1_b": ln_b,
        "ln2_g": ln_g, "ln2_b": ln_b,
        "ln3_g": ln_g, "ln3_b": ln_b,
    }


# ----------------------------------- main ------------------------------------
if __name__ == "__main__":
    key = jax.random.PRNGKey(0)
    k_tr, k_ti, k_mr, k_mi, k_p = jax.random.split(key, 5)

    T, S, B = 8, 16, 2
    tgt = (jax.random.normal(k_tr, (T, B, D_MODEL), _F32)
           + 1j * jax.random.normal(k_ti, (T, B, D_MODEL), _F32)).astype(jnp.complex64)
    memory = (jax.random.normal(k_mr, (S, B, D_MODEL), _F32)
              + 1j * jax.random.normal(k_mi, (S, B, D_MODEL), _F32)).astype(jnp.complex64)

    params = init_params(k_p)

    out = jax.block_until_ready(transformer_decoder_layer(tgt, memory, params))
    assert out.shape == (T, B, D_MODEL) and out.dtype == jnp.complex64

    ref = reference_forward(tgt, memory, params)
    assert bool(jnp.all(jnp.isfinite(jnp.real(out))) & jnp.all(jnp.isfinite(jnp.imag(out))))
    assert bool(jnp.allclose(jnp.real(out), jnp.real(ref), atol=5e-2, rtol=5e-2))
    assert bool(jnp.allclose(jnp.imag(out), jnp.imag(ref), atol=5e-2, rtol=5e-2))

    print("KERNEL_OK")
</pallas_src>

<mosaic_0001>
module attributes {stable_mosaic.version = 11 : i64} {
  func.func @_decoder_kernel(%arg0: i32, %arg1: memref<1x8x256xf32, #tpu.memory_space<vmem>>, %arg2: memref<1x16x256xf32, #tpu.memory_space<vmem>>, %arg3: memref<256x1024xbf16, #tpu.memory_space<vmem>>, %arg4: memref<1x1024xf32, #tpu.memory_space<vmem>>, %arg5: memref<256x256xbf16, #tpu.memory_space<vmem>>, %arg6: memref<1x256xf32, #tpu.memory_space<vmem>>, %arg7: memref<256x512xbf16, #tpu.memory_space<vmem>>, %arg8: memref<1x512xf32, #tpu.memory_space<vmem>>, %arg9: memref<256x512xbf16, #tpu.memory_space<vmem>>, %arg10: memref<1x512xf32, #tpu.memory_space<vmem>>, %arg11: memref<256x256xbf16, #tpu.memory_space<vmem>>, %arg12: memref<1x256xf32, #tpu.memory_space<vmem>>, %arg13: memref<256x512xbf16, #tpu.memory_space<vmem>>, %arg14: memref<1x512xf32, #tpu.memory_space<vmem>>, %arg15: memref<512x256xbf16, #tpu.memory_space<vmem>>, %arg16: memref<1x256xf32, #tpu.memory_space<vmem>>, %arg17: memref<4x128xf32, #tpu.memory_space<vmem>>, %arg18: memref<2x128xf32, #tpu.memory_space<vmem>>, %arg19: memref<4x128xf32, #tpu.memory_space<vmem>>, %arg20: memref<2x128xf32, #tpu.memory_space<vmem>>, %arg21: memref<4x128xf32, #tpu.memory_space<vmem>>, %arg22: memref<2x128xf32, #tpu.memory_space<vmem>>, %arg23: memref<1x8x256xf32, #tpu.memory_space<vmem>>) attributes {dimension_semantics = [#tpu.dimension_semantics<parallel>], iteration_bounds = array<i64: 2>, scalar_prefetch = 0 : i64, scratch_operands = 0 : i64, tpu.core_type = #tpu.core_type<tc>, window_params = [{transform_indices = @transform_0, window_bounds = array<i64: 1, 8, 256>}, {transform_indices = @transform_1, window_bounds = array<i64: 1, 16, 256>}, {pipeline_mode = #tpu.pipeline_mode<synchronous>, transform_indices = @transform_2, window_bounds = array<i64: 256, 1024>}, {pipeline_mode = #tpu.pipeline_mode<synchronous>, transform_indices = @transform_3, window_bounds = array<i64: 1, 1024>}, {pipeline_mode = #tpu.pipeline_mode<synchronous>, transform_indices = @transform_4, window_bounds = array<i64: 256, 256>}, {pipeline_mode = #tpu.pipeline_mode<synchronous>, transform_indices = @transform_5, window_bounds = array<i64: 1, 256>}, {pipeline_mode = #tpu.pipeline_mode<synchronous>, transform_indices = @transform_6, window_bounds = array<i64: 256, 512>}, {pipeline_mode = #tpu.pipeline_mode<synchronous>, transform_indices = @transform_7, window_bounds = array<i64: 1, 512>}, {pipeline_mode = #tpu.pipeline_mode<synchronous>, transform_indices = @transform_8, window_bounds = array<i64: 256, 512>}, {pipeline_mode = #tpu.pipeline_mode<synchronous>, transform_indices = @transform_9, window_bounds = array<i64: 1, 512>}, {pipeline_mode = #tpu.pipeline_mode<synchronous>, transform_indices = @transform_10, window_bounds = array<i64: 256, 256>}, {pipeline_mode = #tpu.pipeline_mode<synchronous>, transform_indices = @transform_11, window_bounds = array<i64: 1, 256>}, {pipeline_mode = #tpu.pipeline_mode<synchronous>, transform_indices = @transform_12, window_bounds = array<i64: 256, 512>}, {pipeline_mode = #tpu.pipeline_mode<synchronous>, transform_indices = @transform_13, window_bounds = array<i64: 1, 512>}, {pipeline_mode = #tpu.pipeline_mode<synchronous>, transform_indices = @transform_14, window_bounds = array<i64: 512, 256>}, {pipeline_mode = #tpu.pipeline_mode<synchronous>, transform_indices = @transform_15, window_bounds = array<i64: 1, 256>}, {pipeline_mode = #tpu.pipeline_mode<synchronous>, transform_indices = @transform_16, window_bounds = array<i64: 4, 128>}, {pipeline_mode = #tpu.pipeline_mode<synchronous>, transform_indices = @transform_17, window_bounds = array<i64: 2, 128>}, {pipeline_mode = #tpu.pipeline_mode<synchronous>, transform_indices = @transform_18, window_bounds = array<i64: 4, 128>}, {pipeline_mode = #tpu.pipeline_mode<synchronous>, transform_indices = @transform_19, window_bounds = array<i64: 2, 128>}, {pipeline_mode = #tpu.pipeline_mode<synchronous>, transform_indices = @transform_20, window_bounds = array<i64: 4, 128>}, {pipeline_mode = #tpu.pipeline_mode<synchronous>, transform_indices = @transform_21, window_bounds = array<i64: 2, 128>}, {transform_indices = @transform_22, window_bounds = array<i64: 1, 8, 256>}]} {
    %c0 = arith.constant 0 : index
    %c0_0 = arith.constant 0 : index
    %c0_1 = arith.constant 0 : index
    %0 = vector.load %arg1[%c0, %c0_0, %c0_1] : memref<1x8x256xf32, #tpu.memory_space<vmem>>, vector<1x8x256xf32>
    %1 = vector.shape_cast %0 : vector<1x8x256xf32> to vector<8x256xf32>
    %c0_2 = arith.constant 0 : index
    %c0_3 = arith.constant 0 : index
    %c0_4 = arith.constant 0 : index
    %2 = vector.load %arg2[%c0_2, %c0_3, %c0_4] : memref<1x16x256xf32, #tpu.memory_space<vmem>>, vector<1x16x256xf32>
    %3 = vector.shape_cast %2 : vector<1x16x256xf32> to vector<16x256xf32>
    %c0_5 = arith.constant 0 : index
    %c0_6 = arith.constant 0 : index
    %4 = vector.load %arg3[%c0_5, %c0_6] : memref<256x1024xbf16, #tpu.memory_space<vmem>>, vector<256x1024xbf16>
    %c0_7 = arith.constant 0 : index
    %c0_8 = arith.constant 0 : index
    %5 = vector.load %arg4[%c0_7, %c0_8] : memref<1x1024xf32, #tpu.memory_space<vmem>>, vector<1x1024xf32>
    %6 = arith.truncf %1 : vector<8x256xf32> to vector<8x256xbf16>
    %cst = arith.constant dense<0.000000e+00> : vector<8x1024xf32>
    %7 = tpu.matmul %6, %4, %cst {dimension_numbers = #tpu.dot_dimension_numbers<[1], [0], [0], [1], [0, 0, 1, 1], [], []>} : vector<8x256xbf16>, vector<256x1024xbf16>, vector<8x1024xf32> -> vector<8x1024xf32>
    %8 = vector.broadcast %5 : vector<1x1024xf32> to vector<8x1024xf32>
    %9 = arith.addf %7, %8 : vector<8x1024xf32>
    %10 = vector.extract_strided_slice %9 {offsets = [0, 0], sizes = [8, 256], strides = [1, 1]} : vector<8x1024xf32> to vector<8x256xf32>
    %11 = vector.extract_strided_slice %9 {offsets = [0, 256], sizes = [8, 256], strides = [1, 1]} : vector<8x1024xf32> to vector<8x256xf32>
    %12 = vector.extract_strided_slice %9 {offsets = [0, 512], sizes = [8, 256], strides = [1, 1]} : vector<8x1024xf32> to vector<8x256xf32>
    %13 = vector.extract_strided_slice %9 {offsets = [0, 768], sizes = [8, 256], strides = [1, 1]} : vector<8x1024xf32> to vector<8x256xf32>
    %14 = arith.truncf %10 : vector<8x256xf32> to vector<8x256xbf16>
    %15 = arith.truncf %11 : vector<8x256xf32> to vector<8x256xbf16>
    %16 = arith.truncf %12 : vector<8x256xf32> to vector<8x256xbf16>
    %17 = arith.truncf %13 : vector<8x256xf32> to vector<8x256xbf16>
    %18 = vector.extract_strided_slice %16 {offsets = [0, 0], sizes = [8, 64], strides = [1, 1]} : vector<8x256xbf16> to vector<8x64xbf16>
    %19 = vector.extract_strided_slice %14 {offsets = [0, 0], sizes = [8, 64], strides = [1, 1]} : vector<8x256xbf16> to vector<8x64xbf16>
    "tpu.trace_start"() <{level = 10 : i32, message = "td,sd->ts"}> : () -> ()
    %cst_9 = arith.constant dense<0.000000e+00> : vector<8x8xf32>
    %20 = tpu.matmul %19, %18, %cst_9 {dimension_numbers = #tpu.dot_dimension_numbers<[1], [1], [0], [0], [0, 0, 1, 0], [], []>} : vector<8x64xbf16>, vector<8x64xbf16>, vector<8x8xf32> -> vector<8x8xf32>
    "tpu.trace_stop"() : () -> ()
    %21 = vector.extract_strided_slice %15 {offsets = [0, 0], sizes = [8, 64], strides = [1, 1]} : vector<8x256xbf16> to vector<8x64xbf16>
    "tpu.trace_start"() <{level = 10 : i32, message = "td,sd->ts"}> : () -> ()
    %cst_10 = arith.constant dense<0.000000e+00> : vector<8x8xf32>
    %22 = tpu.matmul %21, %18, %cst_10 {dimension_numbers = #tpu.dot_dimension_numbers<[1], [1], [0], [0], [0, 0, 1, 0], [], []>} : vector<8x64xbf16>, vector<8x64xbf16>, vector<8x8xf32> -> vector<8x8xf32>
    "tpu.trace_stop"() : () -> ()
    %23 = arith.mulf %20, %20 : vector<8x8xf32>
    %24 = arith.mulf %22, %22 : vector<8x8xf32>
    %25 = arith.addf %23, %24 : vector<8x8xf32>
    %26 = math.sqrt %25 : vector<8x8xf32>
    %cst_11 = arith.constant 0.176776692 : f32
    %27 = vector.broadcast %cst_11 : f32 to vector<8x8xf32>
    %28 = arith.mulf %26, %27 : vector<8x8xf32>
    %cst_12 = arith.constant dense<0xFF800000> : vector<8xf32>
    %29 = vector.multi_reduction <maximumf>, %28, %cst_12 [1] : vector<8x8xf32> to vector<8xf32>
    %30 = vector.shape_cast %29 : vector<8xf32> to vector<8x1xf32>
    %31 = vector.broadcast %30 : vector<8x1xf32> to vector<8x8xf32>
    %32 = arith.subf %28, %31 : vector<8x8xf32>
    %33 = math.exp %32 : vector<8x8xf32>
    %cst_13 = arith.constant dense<0.000000e+00> : vector<8xf32>
    %34 = vector.multi_reduction <add>, %33, %cst_13 [1] : vector<8x8xf32> to vector<8xf32>
    %35 = vector.shape_cast %34 : vector<8xf32> to vector<8x1xf32>
    %36 = tpu.reciprocal %35 {approx = true} : vector<8x1xf32> -> vector<8x1xf32>
    %37 = vector.broadcast %36 : vector<8x1xf32> to vector<8x8xf32>
    %38 = arith.mulf %33, %37 : vector<8x8xf32>
    %39 = arith.truncf %38 : vector<8x8xf32> to vector<8x8xbf16>
    %40 = vector.extract_strided_slice %17 {offsets = [0, 0], sizes = [8, 64], strides = [1, 1]} : vector<8x256xbf16> to vector<8x64xbf16>
    %cst_14 = arith.constant dense<0.000000e+00> : vector<8x64xf32>
    %41 = tpu.matmul %39, %40, %cst_14 {dimension_numbers = #tpu.dot_dimension_numbers<[1], [0], [0], [1], [0, 0, 1, 1], [], []>} : vector<8x8xbf16>, vector<8x64xbf16>, vector<8x64xf32> -> vector<8x64xf32>
    %42 = vector.extract_strided_slice %16 {offsets = [0, 64], sizes = [8, 64], strides = [1, 1]} : vector<8x256xbf16> to vector<8x64xbf16>
    %43 = vector.extract_strided_slice %14 {offsets = [0, 64], sizes = [8, 64], strides = [1, 1]} : vector<8x256xbf16> to vector<8x64xbf16>
    "tpu.trace_start"() <{level = 10 : i32, message = "td,sd->ts"}> : () -> ()
    %cst_15 = arith.constant dense<0.000000e+00> : vector<8x8xf32>
    %44 = tpu.matmul %43, %42, %cst_15 {dimension_numbers = #tpu.dot_dimension_numbers<[1], [1], [0], [0], [0, 0, 1, 0], [], []>} : vector<8x64xbf16>, vector<8x64xbf16>, vector<8x8xf32> -> vector<8x8xf32>
    "tpu.trace_stop"() : () -> ()
    %45 = vector.extract_strided_slice %15 {offsets = [0, 64], sizes = [8, 64], strides = [1, 1]} : vector<8x256xbf16> to vector<8x64xbf16>
    "tpu.trace_start"() <{level = 10 : i32, message = "td,sd->ts"}> : () -> ()
    %cst_16 = arith.constant dense<0.000000e+00> : vector<8x8xf32>
    %46 = tpu.matmul %45, %42, %cst_16 {dimension_numbers = #tpu.dot_dimension_numbers<[1], [1], [0], [0], [0, 0, 1, 0], [], []>} : vector<8x64xbf16>, vector<8x64xbf16>, vector<8x8xf32> -> vector<8x8xf32>
    "tpu.trace_stop"() : () -> ()
    %47 = arith.mulf %44, %44 : vector<8x8xf32>
    %48 = arith.mulf %46, %46 : vector<8x8xf32>
    %49 = arith.addf %47, %48 : vector<8x8xf32>
    %50 = math.sqrt %49 : vector<8x8xf32>
    %cst_17 = arith.constant 0.176776692 : f32
    %51 = vector.broadcast %cst_17 : f32 to vector<8x8xf32>
    %52 = arith.mulf %50, %51 : vector<8x8xf32>
    %cst_18 = arith.constant dense<0xFF800000> : vector<8xf32>
    %53 = vector.multi_reduction <maximumf>, %52, %cst_18 [1] : vector<8x8xf32> to vector<8xf32>
    %54 = vector.shape_cast %53 : vector<8xf32> to vector<8x1xf32>
    %55 = vector.broadcast %54 : vector<8x1xf32> to vector<8x8xf32>
    %56 = arith.subf %52, %55 : vector<8x8xf32>
    %57 = math.exp %56 : vector<8x8xf32>
    %cst_19 = arith.constant dense<0.000000e+00> : vector<8xf32>
    %58 = vector.multi_reduction <add>, %57, %cst_19 [1] : vector<8x8xf32> to vector<8xf32>
    %59 = vector.shape_cast %58 : vector<8xf32> to vector<8x1xf32>
    %60 = tpu.reciprocal %59 {approx = true} : vector<8x1xf32> -> vector<8x1xf32>
    %61 = vector.broadcast %60 : vector<8x1xf32> to vector<8x8xf32>
    %62 = arith.mulf %57, %61 : vector<8x8xf32>
    %63 = arith.truncf %62 : vector<8x8xf32> to vector<8x8xbf16>
    %64 = vector.extract_strided_slice %17 {offsets = [0, 64], sizes = [8, 64], strides = [1, 1]} : vector<8x256xbf16> to vector<8x64xbf16>
    %cst_20 = arith.constant dense<0.000000e+00> : vector<8x64xf32>
    %65 = tpu.matmul %63, %64, %cst_20 {dimension_numbers = #tpu.dot_dimension_numbers<[1], [0], [0], [1], [0, 0, 1, 1], [], []>} : vector<8x8xbf16>, vector<8x64xbf16>, vector<8x64xf32> -> vector<8x64xf32>
    %66 = vector.extract_strided_slice %16 {offsets = [0, 128], sizes = [8, 64], strides = [1, 1]} : vector<8x256xbf16> to vector<8x64xbf16>
    %67 = vector.extract_strided_slice %14 {offsets = [0, 128], sizes = [8, 64], strides = [1, 1]} : vector<8x256xbf16> to vector<8x64xbf16>
    "tpu.trace_start"() <{level = 10 : i32, message = "td,sd->ts"}> : () -> ()
    %cst_21 = arith.constant dense<0.000000e+00> : vector<8x8xf32>
    %68 = tpu.matmul %67, %66, %cst_21 {dimension_numbers = #tpu.dot_dimension_numbers<[1], [1], [0], [0], [0, 0, 1, 0], [], []>} : vector<8x64xbf16>, vector<8x64xbf16>, vector<8x8xf32> -> vector<8x8xf32>
    "tpu.trace_stop"() : () -> ()
    %69 = vector.extract_strided_slice %15 {offsets = [0, 128], sizes = [8, 64], strides = [1, 1]} : vector<8x256xbf16> to vector<8x64xbf16>
    "tpu.trace_start"() <{level = 10 : i32, message = "td,sd->ts"}> : () -> ()
    %cst_22 = arith.constant dense<0.000000e+00> : vector<8x8xf32>
    %70 = tpu.matmul %69, %66, %cst_22 {dimension_numbers = #tpu.dot_dimension_numbers<[1], [1], [0], [0], [0, 0, 1, 0], [], []>} : vector<8x64xbf16>, vector<8x64xbf16>, vector<8x8xf32> -> vector<8x8xf32>
    "tpu.trace_stop"() : () -> ()
    %71 = arith.mulf %68, %68 : vector<8x8xf32>
    %72 = arith.mulf %70, %70 : vector<8x8xf32>
    %73 = arith.addf %71, %72 : vector<8x8xf32>
    %74 = math.sqrt %73 : vector<8x8xf32>
    %cst_23 = arith.constant 0.176776692 : f32
    %75 = vector.broadcast %cst_23 : f32 to vector<8x8xf32>
    %76 = arith.mulf %74, %75 : vector<8x8xf32>
    %cst_24 = arith.constant dense<0xFF800000> : vector<8xf32>
    %77 = vector.multi_reduction <maximumf>, %76, %cst_24 [1] : vector<8x8xf32> to vector<8xf32>
    %78 = vector.shape_cast %77 : vector<8xf32> to vector<8x1xf32>
    %79 = vector.broadcast %78 : vector<8x1xf32> to vector<8x8xf32>
    %80 = arith.subf %76, %79 : vector<8x8xf32>
    %81 = math.exp %80 : vector<8x8xf32>
    %cst_25 = arith.constant dense<0.000000e+00> : vector<8xf32>
    %82 = vector.multi_reduction <add>, %81, %cst_25 [1] : vector<8x8xf32> to vector<8xf32>
    %83 = vector.shape_cast %82 : vector<8xf32> to vector<8x1xf32>
    %84 = tpu.reciprocal %83 {approx = true} : vector<8x1xf32> -> vector<8x1xf32>
    %85 = vector.broadcast %84 : vector<8x1xf32> to vector<8x8xf32>
    %86 = arith.mulf %81, %85 : vector<8x8xf32>
    %87 = arith.truncf %86 : vector<8x8xf32> to vector<8x8xbf16>
    %88 = vector.extract_strided_slice %17 {offsets = [0, 128], sizes = [8, 64], strides = [1, 1]} : vector<8x256xbf16> to vector<8x64xbf16>
    %cst_26 = arith.constant dense<0.000000e+00> : vector<8x64xf32>
    %89 = tpu.matmul %87, %88, %cst_26 {dimension_numbers = #tpu.dot_dimension_numbers<[1], [0], [0], [1], [0, 0, 1, 1], [], []>} : vector<8x8xbf16>, vector<8x64xbf16>, vector<8x64xf32> -> vector<8x64xf32>
    %90 = vector.extract_strided_slice %16 {offsets = [0, 192], sizes = [8, 64], strides = [1, 1]} : vector<8x256xbf16> to vector<8x64xbf16>
    %91 = vector.extract_strided_slice %14 {offsets = [0, 192], sizes = [8, 64], strides = [1, 1]} : vector<8x256xbf16> to vector<8x64xbf16>
    "tpu.trace_start"() <{level = 10 : i32, message = "td,sd->ts"}> : () -> ()
    %cst_27 = arith.constant dense<0.000000e+00> : vector<8x8xf32>
    %92 = tpu.matmul %91, %90, %cst_27 {dimension_numbers = #tpu.dot_dimension_numbers<[1], [1], [0], [0], [0, 0, 1, 0], [], []>} : vector<8x64xbf16>, vector<8x64xbf16>, vector<8x8xf32> -> vector<8x8xf32>
    "tpu.trace_stop"() : () -> ()
    %93 = vector.extract_strided_slice %15 {offsets = [0, 192], sizes = [8, 64], strides = [1, 1]} : vector<8x256xbf16> to vector<8x64xbf16>
    "tpu.trace_start"() <{level = 10 : i32, message = "td,sd->ts"}> : () -> ()
    %cst_28 = arith.constant dense<0.000000e+00> : vector<8x8xf32>
    %94 = tpu.matmul %93, %90, %cst_28 {dimension_numbers = #tpu.dot_dimension_numbers<[1], [1], [0], [0], [0, 0, 1, 0], [], []>} : vector<8x64xbf16>, vector<8x64xbf16>, vector<8x8xf32> -> vector<8x8xf32>
    "tpu.trace_stop"() : () -> ()
    %95 = arith.mulf %92, %92 : vector<8x8xf32>
    %96 = arith.mulf %94, %94 : vector<8x8xf32>
    %97 = arith.addf %95, %96 : vector<8x8xf32>
    %98 = math.sqrt %97 : vector<8x8xf32>
    %cst_29 = arith.constant 0.176776692 : f32
    %99 = vector.broadcast %cst_29 : f32 to vector<8x8xf32>
    %100 = arith.mulf %98, %99 : vector<8x8xf32>
    %cst_30 = arith.constant dense<0xFF800000> : vector<8xf32>
    %101 = vector.multi_reduction <maximumf>, %100, %cst_30 [1] : vector<8x8xf32> to vector<8xf32>
    %102 = vector.shape_cast %101 : vector<8xf32> to vector<8x1xf32>
    %103 = vector.broadcast %102 : vector<8x1xf32> to vector<8x8xf32>
    %104 = arith.subf %100, %103 : vector<8x8xf32>
    %105 = math.exp %104 : vector<8x8xf32>
    %cst_31 = arith.constant dense<0.000000e+00> : vector<8xf32>
    %106 = vector.multi_reduction <add>, %105, %cst_31 [1] : vector<8x8xf32> to vector<8xf32>
    %107 = vector.shape_cast %106 : vector<8xf32> to vector<8x1xf32>
    %108 = tpu.reciprocal %107 {approx = true} : vector<8x1xf32> -> vector<8x1xf32>
    %109 = vector.broadcast %108 : vector<8x1xf32> to vector<8x8xf32>
    %110 = arith.mulf %105, %109 : vector<8x8xf32>
    %111 = arith.truncf %110 : vector<8x8xf32> to vector<8x8xbf16>
    %112 = vector.extract_strided_slice %17 {offsets = [0, 192], sizes = [8, 64], strides = [1, 1]} : vector<8x256xbf16> to vector<8x64xbf16>
    %cst_32 = arith.constant dense<0.000000e+00> : vector<8x64xf32>
    %113 = tpu.matmul %111, %112, %cst_32 {dimension_numbers = #tpu.dot_dimension_numbers<[1], [0], [0], [1], [0, 0, 1, 1], [], []>} : vector<8x8xbf16>, vector<8x64xbf16>, vector<8x64xf32> -> vector<8x64xf32>
    %114 = tpu.concatenate %41, %65, %89, %113 in 1 : vector<8x64xf32>, vector<8x64xf32>, vector<8x64xf32>, vector<8x64xf32> -> vector<8x256xf32>
    %c0_33 = arith.constant 0 : index
    %c0_34 = arith.constant 0 : index
    %115 = vector.load %arg5[%c0_33, %c0_34] : memref<256x256xbf16, #tpu.memory_space<vmem>>, vector<256x256xbf16>
    %c0_35 = arith.constant 0 : index
    %c0_36 = arith.constant 0 : index
    %116 = vector.load %arg6[%c0_35, %c0_36] : memref<1x256xf32, #tpu.memory_space<vmem>>, vector<1x256xf32>
    %117 = arith.truncf %114 : vector<8x256xf32> to vector<8x256xbf16>
    %cst_37 = arith.constant dense<0.000000e+00> : vector<8x256xf32>
    %118 = tpu.matmul %117, %115, %cst_37 {dimension_numbers = #tpu.dot_dimension_numbers<[1], [0], [0], [1], [0, 0, 1, 1], [], []>} : vector<8x256xbf16>, vector<256x256xbf16>, vector<8x256xf32> -> vector<8x256xf32>
    %119 = vector.broadcast %116 : vector<1x256xf32> to vector<8x256xf32>
    %120 = arith.addf %118, %119 : vector<8x256xf32>
    %121 = arith.addf %1, %120 : vector<8x256xf32>
    %c0_38 = arith.constant 0 : index
    %c0_39 = arith.constant 0 : index
    %122 = vector.load %arg17[%c0_38, %c0_39] : memref<4x128xf32, #tpu.memory_space<vmem>>, vector<4x128xf32>
    %c0_40 = arith.constant 0 : index
    %c0_41 = arith.constant 0 : index
    %123 = vector.load %arg18[%c0_40, %c0_41] : memref<2x128xf32, #tpu.memory_space<vmem>>, vector<2x128xf32>
    %124 = vector.extract_strided_slice %121 {offsets = [0, 0], sizes = [8, 128], strides = [1, 1]} : vector<8x256xf32> to vector<8x128xf32>
    %125 = vector.extract_strided_slice %121 {offsets = [0, 128], sizes = [8, 128], strides = [1, 1]} : vector<8x256xf32> to vector<8x128xf32>
    %cst_42 = arith.constant dense<0.000000e+00> : vector<8xf32>
    %126 = vector.multi_reduction <add>, %124, %cst_42 [1] : vector<8x128xf32> to vector<8xf32>
    %127 = vector.shape_cast %126 : vector<8xf32> to vector<8x1xf32>
    %cst_43 = arith.constant 1.280000e+02 : f32
    %128 = vector.broadcast %cst_43 : f32 to vector<8x1xf32>
    %129 = arith.divf %127, %128 : vector<8x1xf32>
    %cst_44 = arith.constant dense<0.000000e+00> : vector<8xf32>
    %130 = vector.multi_reduction <add>, %125, %cst_44 [1] : vector<8x128xf32> to vector<8xf32>
    %131 = vector.shape_cast %130 : vector<8xf32> to vector<8x1xf32>
    %cst_45 = arith.constant 1.280000e+02 : f32
    %132 = vector.broadcast %cst_45 : f32 to vector<8x1xf32>
    %133 = arith.divf %131, %132 : vector<8x1xf32>
    %134 = vector.broadcast %129 : vector<8x1xf32> to vector<8x128xf32>
    %135 = arith.subf %124, %134 : vector<8x128xf32>
    %136 = vector.broadcast %133 : vector<8x1xf32> to vector<8x128xf32>
    %137 = arith.subf %125, %136 : vector<8x128xf32>
    %138 = arith.mulf %135, %135 : vector<8x128xf32>
    %cst_46 = arith.constant dense<0.000000e+00> : vector<8xf32>
    %139 = vector.multi_reduction <add>, %138, %cst_46 [1] : vector<8x128xf32> to vector<8xf32>
    %140 = vector.shape_cast %139 : vector<8xf32> to vector<8x1xf32>
    %cst_47 = arith.constant 1.280000e+02 : f32
    %141 = vector.broadcast %cst_47 : f32 to vector<8x1xf32>
    %142 = arith.divf %140, %141 : vector<8x1xf32>
    %cst_48 = arith.constant 9.99999974E-6 : f32
    %143 = vector.broadcast %cst_48 : f32 to vector<8x1xf32>
    %144 = arith.addf %142, %143 : vector<8x1xf32>
    %145 = arith.mulf %137, %137 : vector<8x128xf32>
    %cst_49 = arith.constant dense<0.000000e+00> : vector<8xf32>
    %146 = vector.multi_reduction <add>, %145, %cst_49 [1] : vector<8x128xf32> to vector<8xf32>
    %147 = vector.shape_cast %146 : vector<8xf32> to vector<8x1xf32>
    %cst_50 = arith.constant 1.280000e+02 : f32
    %148 = vector.broadcast %cst_50 : f32 to vector<8x1xf32>
    %149 = arith.divf %147, %148 : vector<8x1xf32>
    %cst_51 = arith.constant 9.99999974E-6 : f32
    %150 = vector.broadcast %cst_51 : f32 to vector<8x1xf32>
    %151 = arith.addf %149, %150 : vector<8x1xf32>
    %152 = arith.mulf %135, %137 : vector<8x128xf32>
    %cst_52 = arith.constant dense<0.000000e+00> : vector<8xf32>
    %153 = vector.multi_reduction <add>, %152, %cst_52 [1] : vector<8x128xf32> to vector<8xf32>
    %154 = vector.shape_cast %153 : vector<8xf32> to vector<8x1xf32>
    %cst_53 = arith.constant 1.280000e+02 : f32
    %155 = vector.broadcast %cst_53 : f32 to vector<8x1xf32>
    %156 = arith.divf %154, %155 : vector<8x1xf32>
    %157 = arith.mulf %144, %151 : vector<8x1xf32>
    %158 = arith.mulf %156, %156 : vector<8x1xf32>
    %159 = arith.subf %157, %158 : vector<8x1xf32>
    %160 = math.sqrt %159 : vector<8x1xf32>
    %161 = arith.addf %144, %151 : vector<8x1xf32>
    %cst_54 = arith.constant 2.000000e+00 : f32
    %162 = vector.broadcast %cst_54 : f32 to vector<8x1xf32>
    %163 = arith.mulf %162, %160 : vector<8x1xf32>
    %164 = arith.addf %161, %163 : vector<8x1xf32>
    %165 = arith.mulf %159, %164 : vector<8x1xf32>
    %166 = math.rsqrt %165 : vector<8x1xf32>
    %167 = arith.addf %151, %160 : vector<8x1xf32>
    %168 = arith.mulf %167, %166 : vector<8x1xf32>
    %169 = arith.addf %144, %160 : vector<8x1xf32>
    %170 = arith.mulf %169, %166 : vector<8x1xf32>
    %cst_55 = arith.constant 0.000000e+00 : f32
    %171 = vector.broadcast %cst_55 : f32 to vector<8x1xf32>
    %172 = arith.subf %171, %156 : vector<8x1xf32>
    %173 = arith.mulf %172, %166 : vector<8x1xf32>
    %174 = vector.broadcast %168 : vector<8x1xf32> to vector<8x128xf32>
    %175 = arith.mulf %174, %135 : vector<8x128xf32>
    %176 = vector.broadcast %173 : vector<8x1xf32> to vector<8x128xf32>
    %177 = arith.mulf %176, %137 : vector<8x128xf32>
    %178 = arith.addf %175, %177 : vector<8x128xf32>
    %179 = vector.broadcast %173 : vector<8x1xf32> to vector<8x128xf32>
    %180 = arith.mulf %179, %135 : vector<8x128xf32>
    %181 = vector.broadcast %170 : vector<8x1xf32> to vector<8x128xf32>
    %182 = arith.mulf %181, %137 : vector<8x128xf32>
    %183 = arith.addf %180, %182 : vector<8x128xf32>
    %184 = vector.extract_strided_slice %122 {offsets = [0, 0], sizes = [1, 128], strides = [1, 1]} : vector<4x128xf32> to vector<1x128xf32>
    %185 = vector.broadcast %184 : vector<1x128xf32> to vector<8x128xf32>
    %186 = arith.mulf %185, %178 : vector<8x128xf32>
    %187 = vector.extract_strided_slice %122 {offsets = [1, 0], sizes = [1, 128], strides = [1, 1]} : vector<4x128xf32> to vector<1x128xf32>
    %188 = vector.broadcast %187 : vector<1x128xf32> to vector<8x128xf32>
    %189 = arith.mulf %188, %183 : vector<8x128xf32>
    %190 = arith.addf %186, %189 : vector<8x128xf32>
    %191 = vector.extract_strided_slice %123 {offsets = [0, 0], sizes = [1, 128], strides = [1, 1]} : vector<2x128xf32> to vector<1x128xf32>
    %192 = vector.broadcast %191 : vector<1x128xf32> to vector<8x128xf32>
    %193 = arith.addf %190, %192 : vector<8x128xf32>
    %194 = vector.extract_strided_slice %122 {offsets = [2, 0], sizes = [1, 128], strides = [1, 1]} : vector<4x128xf32> to vector<1x128xf32>
    %195 = vector.broadcast %194 : vector<1x128xf32> to vector<8x128xf32>
    %196 = arith.mulf %195, %178 : vector<8x128xf32>
    %197 = vector.extract_strided_slice %122 {offsets = [3, 0], sizes = [1, 128], strides = [1, 1]} : vector<4x128xf32> to vector<1x128xf32>
    %198 = vector.broadcast %197 : vector<1x128xf32> to vector<8x128xf32>
    %199 = arith.mulf %198, %183 : vector<8x128xf32>
    %200 = arith.addf %196, %199 : vector<8x128xf32>
    %201 = vector.extract_strided_slice %123 {offsets = [1, 0], sizes = [1, 128], strides = [1, 1]} : vector<2x128xf32> to vector<1x128xf32>
    %202 = vector.broadcast %201 : vector<1x128xf32> to vector<8x128xf32>
    %203 = arith.addf %200, %202 : vector<8x128xf32>
    %204 = tpu.concatenate %193, %203 in 1 : vector<8x128xf32>, vector<8x128xf32> -> vector<8x256xf32>
    %c0_56 = arith.constant 0 : index
    %c0_57 = arith.constant 0 : index
    %205 = vector.load %arg7[%c0_56, %c0_57] : memref<256x512xbf16, #tpu.memory_space<vmem>>, vector<256x512xbf16>
    %c0_58 = arith.constant 0 : index
    %c0_59 = arith.constant 0 : index
    %206 = vector.load %arg8[%c0_58, %c0_59] : memref<1x512xf32, #tpu.memory_space<vmem>>, vector<1x512xf32>
    %207 = arith.truncf %204 : vector<8x256xf32> to vector<8x256xbf16>
    %cst_60 = arith.constant dense<0.000000e+00> : vector<8x512xf32>
    %208 = tpu.matmul %207, %205, %cst_60 {dimension_numbers = #tpu.dot_dimension_numbers<[1], [0], [0], [1], [0, 0, 1, 1], [], []>} : vector<8x256xbf16>, vector<256x512xbf16>, vector<8x512xf32> -> vector<8x512xf32>
    %209 = vector.broadcast %206 : vector<1x512xf32> to vector<8x512xf32>
    %210 = arith.addf %208, %209 : vector<8x512xf32>
    %c0_61 = arith.constant 0 : index
    %c0_62 = arith.constant 0 : index
    %211 = vector.load %arg9[%c0_61, %c0_62] : memref<256x512xbf16, #tpu.memory_space<vmem>>, vector<256x512xbf16>
    %c0_63 = arith.constant 0 : index
    %c0_64 = arith.constant 0 : index
    %212 = vector.load %arg10[%c0_63, %c0_64] : memref<1x512xf32, #tpu.memory_space<vmem>>, vector<1x512xf32>
    %213 = arith.truncf %3 : vector<16x256xf32> to vector<16x256xbf16>
    %cst_65 = arith.constant dense<0.000000e+00> : vector<16x512xf32>
    %214 = tpu.matmul %213, %211, %cst_65 {dimension_numbers = #tpu.dot_dimension_numbers<[1], [0], [0], [1], [0, 0, 1, 1], [], []>} : vector<16x256xbf16>, vector<256x512xbf16>, vector<16x512xf32> -> vector<16x512xf32>
    %215 = vector.broadcast %212 : vector<1x512xf32> to vector<16x512xf32>
    %216 = arith.addf %214, %215 : vector<16x512xf32>
    %217 = vector.extract_strided_slice %210 {offsets = [0, 0], sizes = [8, 256], strides = [1, 1]} : vector<8x512xf32> to vector<8x256xf32>
    %218 = vector.extract_strided_slice %210 {offsets = [0, 256], sizes = [8, 256], strides = [1, 1]} : vector<8x512xf32> to vector<8x256xf32>
    %219 = vector.extract_strided_slice %216 {offsets = [0, 0], sizes = [16, 256], strides = [1, 1]} : vector<16x512xf32> to vector<16x256xf32>
    %220 = vector.extract_strided_slice %216 {offsets = [0, 256], sizes = [16, 256], strides = [1, 1]} : vector<16x512xf32> to vector<16x256xf32>
    %221 = arith.truncf %217 : vector<8x256xf32> to vector<8x256xbf16>
    %222 = arith.truncf %218 : vector<8x256xf32> to vector<8x256xbf16>
    %223 = arith.truncf %219 : vector<16x256xf32> to vector<16x256xbf16>
    %224 = arith.truncf %220 : vector<16x256xf32> to vector<16x256xbf16>
    %225 = vector.extract_strided_slice %223 {offsets = [0, 0], sizes = [16, 64], strides = [1, 1]} : vector<16x256xbf16> to vector<16x64xbf16>
    %226 = vector.extract_strided_slice %221 {offsets = [0, 0], sizes = [8, 64], strides = [1, 1]} : vector<8x256xbf16> to vector<8x64xbf16>
    "tpu.trace_start"() <{level = 10 : i32, message = "td,sd->ts"}> : () -> ()
    %cst_66 = arith.constant dense<0.000000e+00> : vector<8x16xf32>
    %227 = tpu.matmul %226, %225, %cst_66 {dimension_numbers = #tpu.dot_dimension_numbers<[1], [1], [0], [0], [0, 0, 1, 0], [], []>} : vector<8x64xbf16>, vector<16x64xbf16>, vector<8x16xf32> -> vector<8x16xf32>
    "tpu.trace_stop"() : () -> ()
    %228 = vector.extract_strided_slice %222 {offsets = [0, 0], sizes = [8, 64], strides = [1, 1]} : vector<8x256xbf16> to vector<8x64xbf16>
    "tpu.trace_start"() <{level = 10 : i32, message = "td,sd->ts"}> : () -> ()
    %cst_67 = arith.constant dense<0.000000e+00> : vector<8x16xf32>
    %229 = tpu.matmul %228, %225, %cst_67 {dimension_numbers = #tpu.dot_dimension_numbers<[1], [1], [0], [0], [0, 0, 1, 0], [], []>} : vector<8x64xbf16>, vector<16x64xbf16>, vector<8x16xf32> -> vector<8x16xf32>
    "tpu.trace_stop"() : () -> ()
    %230 = arith.mulf %227, %227 : vector<8x16xf32>
    %231 = arith.mulf %229, %229 : vector<8x16xf32>
    %232 = arith.addf %230, %231 : vector<8x16xf32>
    %233 = math.sqrt %232 : vector<8x16xf32>
    %cst_68 = arith.constant 0.176776692 : f32
    %234 = vector.broadcast %cst_68 : f32 to vector<8x16xf32>
    %235 = arith.mulf %233, %234 : vector<8x16xf32>
    %cst_69 = arith.constant dense<0xFF800000> : vector<8xf32>
    %236 = vector.multi_reduction <maximumf>, %235, %cst_69 [1] : vector<8x16xf32> to vector<8xf32>
    %237 = vector.shape_cast %236 : vector<8xf32> to vector<8x1xf32>
    %238 = vector.broadcast %237 : vector<8x1xf32> to vector<8x16xf32>
    %239 = arith.subf %235, %238 : vector<8x16xf32>
    %240 = math.exp %239 : vector<8x16xf32>
    %cst_70 = arith.constant dense<0.000000e+00> : vector<8xf32>
    %241 = vector.multi_reduction <add>, %240, %cst_70 [1] : vector<8x16xf32> to vector<8xf32>
    %242 = vector.shape_cast %241 : vector<8xf32> to vector<8x1xf32>
    %243 = tpu.reciprocal %242 {approx = true} : vector<8x1xf32> -> vector<8x1xf32>
    %244 = vector.broadcast %243 : vector<8x1xf32> to vector<8x16xf32>
    %245 = arith.mulf %240, %244 : vector<8x16xf32>
    %246 = arith.truncf %245 : vector<8x16xf32> to vector<8x16xbf16>
    %247 = vector.extract_strided_slice %224 {offsets = [0, 0], sizes = [16, 64], strides = [1, 1]} : vector<16x256xbf16> to vector<16x64xbf16>
    %cst_71 = arith.constant dense<0.000000e+00> : vector<8x64xf32>
    %248 = tpu.matmul %246, %247, %cst_71 {dimension_numbers = #tpu.dot_dimension_numbers<[1], [0], [0], [1], [0, 0, 1, 1], [], []>} : vector<8x16xbf16>, vector<16x64xbf16>, vector<8x64xf32> -> vector<8x64xf32>
    %249 = vector.extract_strided_slice %223 {offsets = [0, 64], sizes = [16, 64], strides = [1, 1]} : vector<16x256xbf16> to vector<16x64xbf16>
    %250 = vector.extract_strided_slice %221 {offsets = [0, 64], sizes = [8, 64], strides = [1, 1]} : vector<8x256xbf16> to vector<8x64xbf16>
    "tpu.trace_start"() <{level = 10 : i32, message = "td,sd->ts"}> : () -> ()
    %cst_72 = arith.constant dense<0.000000e+00> : vector<8x16xf32>
    %251 = tpu.matmul %250, %249, %cst_72 {dimension_numbers = #tpu.dot_dimension_numbers<[1], [1], [0], [0], [0, 0, 1, 0], [], []>} : vector<8x64xbf16>, vector<16x64xbf16>, vector<8x16xf32> -> vector<8x16xf32>
    "tpu.trace_stop"() : () -> ()
    %252 = vector.extract_strided_slice %222 {offsets = [0, 64], sizes = [8, 64], strides = [1, 1]} : vector<8x256xbf16> to vector<8x64xbf16>
    "tpu.trace_start"() <{level = 10 : i32, message = "td,sd->ts"}> : () -> ()
    %cst_73 = arith.constant dense<0.000000e+00> : vector<8x16xf32>
    %253 = tpu.matmul %252, %249, %cst_73 {dimension_numbers = #tpu.dot_dimension_numbers<[1], [1], [0], [0], [0, 0, 1, 0], [], []>} : vector<8x64xbf16>, vector<16x64xbf16>, vector<8x16xf32> -> vector<8x16xf32>
    "tpu.trace_stop"() : () -> ()
    %254 = arith.mulf %251, %251 : vector<8x16xf32>
    %255 = arith.mulf %253, %253 : vector<8x16xf32>
    %256 = arith.addf %254, %255 : vector<8x16xf32>
    %257 = math.sqrt %256 : vector<8x16xf32>
    %cst_74 = arith.constant 0.176776692 : f32
    %258 = vector.broadcast %cst_74 : f32 to vector<8x16xf32>
    %259 = arith.mulf %257, %258 : vector<8x16xf32>
    %cst_75 = arith.constant dense<0xFF800000> : vector<8xf32>
    %260 = vector.multi_reduction <maximumf>, %259, %cst_75 [1] : vector<8x16xf32> to vector<8xf32>
    %261 = vector.shape_cast %260 : vector<8xf32> to vector<8x1xf32>
    %262 = vector.broadcast %261 : vector<8x1xf32> to vector<8x16xf32>
    %263 = arith.subf %259, %262 : vector<8x16xf32>
    %264 = math.exp %263 : vector<8x16xf32>
    %cst_76 = arith.constant dense<0.000000e+00> : vector<8xf32>
    %265 = vector.multi_reduction <add>, %264, %cst_76 [1] : vector<8x16xf32> to vector<8xf32>
    %266 = vector.shape_cast %265 : vector<8xf32> to vector<8x1xf32>
    %267 = tpu.reciprocal %266 {approx = true} : vector<8x1xf32> -> vector<8x1xf32>
    %268 = vector.broadcast %267 : vector<8x1xf32> to vector<8x16xf32>
    %269 = arith.mulf %264, %268 : vector<8x16xf32>
    %270 = arith.truncf %269 : vector<8x16xf32> to vector<8x16xbf16>
    %271 = vector.extract_strided_slice %224 {offsets = [0, 64], sizes = [16, 64], strides = [1, 1]} : vector<16x256xbf16> to vector<16x64xbf16>
    %cst_77 = arith.constant dense<0.000000e+00> : vector<8x64xf32>
    %272 = tpu.matmul %270, %271, %cst_77 {dimension_numbers = #tpu.dot_dimension_numbers<[1], [0], [0], [1], [0, 0, 1, 1], [], []>} : vector<8x16xbf16>, vector<16x64xbf16>, vector<8x64xf32> -> vector<8x64xf32>
    %273 = vector.extract_strided_slice %223 {offsets = [0, 128], sizes = [16, 64], strides = [1, 1]} : vector<16x256xbf16> to vector<16x64xbf16>
    %274 = vector.extract_strided_slice %221 {offsets = [0, 128], sizes = [8, 64], strides = [1, 1]} : vector<8x256xbf16> to vector<8x64xbf16>
    "tpu.trace_start"() <{level = 10 : i32, message = "td,sd->ts"}> : () -> ()
    %cst_78 = arith.constant dense<0.000000e+00> : vector<8x16xf32>
    %275 = tpu.matmul %274, %273, %cst_78 {dimension_numbers = #tpu.dot_dimension_numbers<[1], [1], [0], [0], [0, 0, 1, 0], [], []>} : vector<8x64xbf16>, vector<16x64xbf16>, vector<8x16xf32> -> vector<8x16xf32>
    "tpu.trace_stop"() : () -> ()
    %276 = vector.extract_strided_slice %222 {offsets = [0, 128], sizes = [8, 64], strides = [1, 1]} : vector<8x256xbf16> to vector<8x64xbf16>
    "tpu.trace_start"() <{level = 10 : i32, message = "td,sd->ts"}> : () -> ()
    %cst_79 = arith.constant dense<0.000000e+00> : vector<8x16xf32>
    %277 = tpu.matmul %276, %273, %cst_79 {dimension_numbers = #tpu.dot_dimension_numbers<[1], [1], [0], [0], [0, 0, 1, 0], [], []>} : vector<8x64xbf16>, vector<16x64xbf16>, vector<8x16xf32> -> vector<8x16xf32>
    "tpu.trace_stop"() : () -> ()
    %278 = arith.mulf %275, %275 : vector<8x16xf32>
    %279 = arith.mulf %277, %277 : vector<8x16xf32>
    %280 = arith.addf %278, %279 : vector<8x16xf32>
    %281 = math.sqrt %280 : vector<8x16xf32>
    %cst_80 = arith.constant 0.176776692 : f32
    %282 = vector.broadcast %cst_80 : f32 to vector<8x16xf32>
    %283 = arith.mulf %281, %282 : vector<8x16xf32>
    %cst_81 = arith.constant dense<0xFF800000> : vector<8xf32>
    %284 = vector.multi_reduction <maximumf>, %283, %cst_81 [1] : vector<8x16xf32> to vector<8xf32>
    %285 = vector.shape_cast %284 : vector<8xf32> to vector<8x1xf32>
    %286 = vector.broadcast %285 : vector<8x1xf32> to vector<8x16xf32>
    %287 = arith.subf %283, %286 : vector<8x16xf32>
    %288 = math.exp %287 : vector<8x16xf32>
    %cst_82 = arith.constant dense<0.000000e+00> : vector<8xf32>
    %289 = vector.multi_reduction <add>, %288, %cst_82 [1] : vector<8x16xf32> to vector<8xf32>
    %290 = vector.shape_cast %289 : vector<8xf32> to vector<8x1xf32>
    %291 = tpu.reciprocal %290 {approx = true} : vector<8x1xf32> -> vector<8x1xf32>
    %292 = vector.broadcast %291 : vector<8x1xf32> to vector<8x16xf32>
    %293 = arith.mulf %288, %292 : vector<8x16xf32>
    %294 = arith.truncf %293 : vector<8x16xf32> to vector<8x16xbf16>
    %295 = vector.extract_strided_slice %224 {offsets = [0, 128], sizes = [16, 64], strides = [1, 1]} : vector<16x256xbf16> to vector<16x64xbf16>
    %cst_83 = arith.constant dense<0.000000e+00> : vector<8x64xf32>
    %296 = tpu.matmul %294, %295, %cst_83 {dimension_numbers = #tpu.dot_dimension_numbers<[1], [0], [0], [1], [0, 0, 1, 1], [], []>} : vector<8x16xbf16>, vector<16x64xbf16>, vector<8x64xf32> -> vector<8x64xf32>
    %297 = vector.extract_strided_slice %223 {offsets = [0, 192], sizes = [16, 64], strides = [1, 1]} : vector<16x256xbf16> to vector<16x64xbf16>
    %298 = vector.extract_strided_slice %221 {offsets = [0, 192], sizes = [8, 64], strides = [1, 1]} : vector<8x256xbf16> to vector<8x64xbf16>
    "tpu.trace_start"() <{level = 10 : i32, message = "td,sd->ts"}> : () -> ()
    %cst_84 = arith.constant dense<0.000000e+00> : vector<8x16xf32>
    %299 = tpu.matmul %298, %297, %cst_84 {dimension_numbers = #tpu.dot_dimension_numbers<[1], [1], [0], [0], [0, 0, 1, 0], [], []>} : vector<8x64xbf16>, vector<16x64xbf16>, vector<8x16xf32> -> vector<8x16xf32>
    "tpu.trace_stop"() : () -> ()
    %300 = vector.extract_strided_slice %222 {offsets = [0, 192], sizes = [8, 64], strides = [1, 1]} : vector<8x256xbf16> to vector<8x64xbf16>
    "tpu.trace_start"() <{level = 10 : i32, message = "td,sd->ts"}> : () -> ()
    %cst_85 = arith.constant dense<0.000000e+00> : vector<8x16xf32>
    %301 = tpu.matmul %300, %297, %cst_85 {dimension_numbers = #tpu.dot_dimension_numbers<[1], [1], [0], [0], [0, 0, 1, 0], [], []>} : vector<8x64xbf16>, vector<16x64xbf16>, vector<8x16xf32> -> vector<8x16xf32>
    "tpu.trace_stop"() : () -> ()
    %302 = arith.mulf %299, %299 : vector<8x16xf32>
    %303 = arith.mulf %301, %301 : vector<8x16xf32>
    %304 = arith.addf %302, %303 : vector<8x16xf32>
    %305 = math.sqrt %304 : vector<8x16xf32>
    %cst_86 = arith.constant 0.176776692 : f32
    %306 = vector.broadcast %cst_86 : f32 to vector<8x16xf32>
    %307 = arith.mulf %305, %306 : vector<8x16xf32>
    %cst_87 = arith.constant dense<0xFF800000> : vector<8xf32>
    %308 = vector.multi_reduction <maximumf>, %307, %cst_87 [1] : vector<8x16xf32> to vector<8xf32>
    %309 = vector.shape_cast %308 : vector<8xf32> to vector<8x1xf32>
    %310 = vector.broadcast %309 : vector<8x1xf32> to vector<8x16xf32>
    %311 = arith.subf %307, %310 : vector<8x16xf32>
    %312 = math.exp %311 : vector<8x16xf32>
    %cst_88 = arith.constant dense<0.000000e+00> : vector<8xf32>
    %313 = vector.multi_reduction <add>, %312, %cst_88 [1] : vector<8x16xf32> to vector<8xf32>
    %314 = vector.shape_cast %313 : vector<8xf32> to vector<8x1xf32>
    %315 = tpu.reciprocal %314 {approx = true} : vector<8x1xf32> -> vector<8x1xf32>
    %316 = vector.broadcast %315 : vector<8x1xf32> to vector<8x16xf32>
    %317 = arith.mulf %312, %316 : vector<8x16xf32>
    %318 = arith.truncf %317 : vector<8x16xf32> to vector<8x16xbf16>
    %319 = vector.extract_strided_slice %224 {offsets = [0, 192], sizes = [16, 64], strides = [1, 1]} : vector<16x256xbf16> to vector<16x64xbf16>
    %cst_89 = arith.constant dense<0.000000e+00> : vector<8x64xf32>
    %320 = tpu.matmul %318, %319, %cst_89 {dimension_numbers = #tpu.dot_dimension_numbers<[1], [0], [0], [1], [0, 0, 1, 1], [], []>} : vector<8x16xbf16>, vector<16x64xbf16>, vector<8x64xf32> -> vector<8x64xf32>
    %321 = tpu.concatenate %248, %272, %296, %320 in 1 : vector<8x64xf32>, vector<8x64xf32>, vector<8x64xf32>, vector<8x64xf32> -> vector<8x256xf32>
    %c0_90 = arith.constant 0 : index
    %c0_91 = arith.constant 0 : index
    %322 = vector.load %arg11[%c0_90, %c0_91] : memref<256x256xbf16, #tpu.memory_space<vmem>>, vector<256x256xbf16>
    %c0_92 = arith.constant 0 : index
    %c0_93 = arith.constant 0 : index
    %323 = vector.load %arg12[%c0_92, %c0_93] : memref<1x256xf32, #tpu.memory_space<vmem>>, vector<1x256xf32>
    %324 = arith.truncf %321 : vector<8x256xf32> to vector<8x256xbf16>
    %cst_94 = arith.constant dense<0.000000e+00> : vector<8x256xf32>
    %325 = tpu.matmul %324, %322, %cst_94 {dimension_numbers = #tpu.dot_dimension_numbers<[1], [0], [0], [1], [0, 0, 1, 1], [], []>} : vector<8x256xbf16>, vector<256x256xbf16>, vector<8x256xf32> -> vector<8x256xf32>
    %326 = vector.broadcast %323 : vector<1x256xf32> to vector<8x256xf32>
    %327 = arith.addf %325, %326 : vector<8x256xf32>
    %328 = arith.addf %204, %327 : vector<8x256xf32>
    %c0_95 = arith.constant 0 : index
    %c0_96 = arith.constant 0 : index
    %329 = vector.load %arg19[%c0_95, %c0_96] : memref<4x128xf32, #tpu.memory_space<vmem>>, vector<4x128xf32>
    %c0_97 = arith.constant 0 : index
    %c0_98 = arith.constant 0 : index
    %330 = vector.load %arg20[%c0_97, %c0_98] : memref<2x128xf32, #tpu.memory_space<vmem>>, vector<2x128xf32>
    %331 = vector.extract_strided_slice %328 {offsets = [0, 0], sizes = [8, 128], strides = [1, 1]} : vector<8x256xf32> to vector<8x128xf32>
    %332 = vector.extract_strided_slice %328 {offsets = [0, 128], sizes = [8, 128], strides = [1, 1]} : vector<8x256xf32> to vector<8x128xf32>
    %cst_99 = arith.constant dense<0.000000e+00> : vector<8xf32>
    %333 = vector.multi_reduction <add>, %331, %cst_99 [1] : vector<8x128xf32> to vector<8xf32>
    %334 = vector.shape_cast %333 : vector<8xf32> to vector<8x1xf32>
    %cst_100 = arith.constant 1.280000e+02 : f32
    %335 = vector.broadcast %cst_100 : f32 to vector<8x1xf32>
    %336 = arith.divf %334, %335 : vector<8x1xf32>
    %cst_101 = arith.constant dense<0.000000e+00> : vector<8xf32>
    %337 = vector.multi_reduction <add>, %332, %cst_101 [1] : vector<8x128xf32> to vector<8xf32>
    %338 = vector.shape_cast %337 : vector<8xf32> to vector<8x1xf32>
    %cst_102 = arith.constant 1.280000e+02 : f32
    %339 = vector.broadcast %cst_102 : f32 to vector<8x1xf32>
    %340 = arith.divf %338, %339 : vector<8x1xf32>
    %341 = vector.broadcast %336 : vector<8x1xf32> to vector<8x128xf32>
    %342 = arith.subf %331, %341 : vector<8x128xf32>
    %343 = vector.broadcast %340 : vector<8x1xf32> to vector<8x128xf32>
    %344 = arith.subf %332, %343 : vector<8x128xf32>
    %345 = arith.mulf %342, %342 : vector<8x128xf32>
    %cst_103 = arith.constant dense<0.000000e+00> : vector<8xf32>
    %346 = vector.multi_reduction <add>, %345, %cst_103 [1] : vector<8x128xf32> to vector<8xf32>
    %347 = vector.shape_cast %346 : vector<8xf32> to vector<8x1xf32>
    %cst_104 = arith.constant 1.280000e+02 : f32
    %348 = vector.broadcast %cst_104 : f32 to vector<8x1xf32>
    %349 = arith.divf %347, %348 : vector<8x1xf32>
    %cst_105 = arith.constant 9.99999974E-6 : f32
    %350 = vector.broadcast %cst_105 : f32 to vector<8x1xf32>
    %351 = arith.addf %349, %350 : vector<8x1xf32>
    %352 = arith.mulf %344, %344 : vector<8x128xf32>
    %cst_106 = arith.constant dense<0.000000e+00> : vector<8xf32>
    %353 = vector.multi_reduction <add>, %352, %cst_106 [1] : vector<8x128xf32> to vector<8xf32>
    %354 = vector.shape_cast %353 : vector<8xf32> to vector<8x1xf32>
    %cst_107 = arith.constant 1.280000e+02 : f32
    %355 = vector.broadcast %cst_107 : f32 to vector<8x1xf32>
    %356 = arith.divf %354, %355 : vector<8x1xf32>
    %cst_108 = arith.constant 9.99999974E-6 : f32
    %357 = vector.broadcast %cst_108 : f32 to vector<8x1xf32>
    %358 = arith.addf %356, %357 : vector<8x1xf32>
    %359 = arith.mulf %342, %344 : vector<8x128xf32>
    %cst_109 = arith.constant dense<0.000000e+00> : vector<8xf32>
    %360 = vector.multi_reduction <add>, %359, %cst_109 [1] : vector<8x128xf32> to vector<8xf32>
    %361 = vector.shape_cast %360 : vector<8xf32> to vector<8x1xf32>
    %cst_110 = arith.constant 1.280000e+02 : f32
    %362 = vector.broadcast %cst_110 : f32 to vector<8x1xf32>
    %363 = arith.divf %361, %362 : vector<8x1xf32>
    %364 = arith.mulf %351, %358 : vector<8x1xf32>
    %365 = arith.mulf %363, %363 : vector<8x1xf32>
    %366 = arith.subf %364, %365 : vector<8x1xf32>
    %367 = math.sqrt %366 : vector<8x1xf32>
    %368 = arith.addf %351, %358 : vector<8x1xf32>
    %cst_111 = arith.constant 2.000000e+00 : f32
    %369 = vector.broadcast %cst_111 : f32 to vector<8x1xf32>
    %370 = arith.mulf %369, %367 : vector<8x1xf32>
    %371 = arith.addf %368, %370 : vector<8x1xf32>
    %372 = arith.mulf %366, %371 : vector<8x1xf32>
    %373 = math.rsqrt %372 : vector<8x1xf32>
    %374 = arith.addf %358, %367 : vector<8x1xf32>
    %375 = arith.mulf %374, %373 : vector<8x1xf32>
    %376 = arith.addf %351, %367 : vector<8x1xf32>
    %377 = arith.mulf %376, %373 : vector<8x1xf32>
    %cst_112 = arith.constant 0.000000e+00 : f32
    %378 = vector.broadcast %cst_112 : f32 to vector<8x1xf32>
    %379 = arith.subf %378, %363 : vector<8x1xf32>
    %380 = arith.mulf %379, %373 : vector<8x1xf32>
    %381 = vector.broadcast %375 : vector<8x1xf32> to vector<8x128xf32>
    %382 = arith.mulf %381, %342 : vector<8x128xf32>
    %383 = vector.broadcast %380 : vector<8x1xf32> to vector<8x128xf32>
    %384 = arith.mulf %383, %344 : vector<8x128xf32>
    %385 = arith.addf %382, %384 : vector<8x128xf32>
    %386 = vector.broadcast %380 : vector<8x1xf32> to vector<8x128xf32>
    %387 = arith.mulf %386, %342 : vector<8x128xf32>
    %388 = vector.broadcast %377 : vector<8x1xf32> to vector<8x128xf32>
    %389 = arith.mulf %388, %344 : vector<8x128xf32>
    %390 = arith.addf %387, %389 : vector<8x128xf32>
    %391 = vector.extract_strided_slice %329 {offsets = [0, 0], sizes = [1, 128], strides = [1, 1]} : vector<4x128xf32> to vector<1x128xf32>
    %392 = vector.broadcast %391 : vector<1x128xf32> to vector<8x128xf32>
    %393 = arith.mulf %392, %385 : vector<8x128xf32>
    %394 = vector.extract_strided_slice %329 {offsets = [1, 0], sizes = [1, 128], strides = [1, 1]} : vector<4x128xf32> to vector<1x128xf32>
    %395 = vector.broadcast %394 : vector<1x128xf32> to vector<8x128xf32>
    %396 = arith.mulf %395, %390 : vector<8x128xf32>
    %397 = arith.addf %393, %396 : vector<8x128xf32>
    %398 = vector.extract_strided_slice %330 {offsets = [0, 0], sizes = [1, 128], strides = [1, 1]} : vector<2x128xf32> to vector<1x128xf32>
    %399 = vector.broadcast %398 : vector<1x128xf32> to vector<8x128xf32>
    %400 = arith.addf %397, %399 : vector<8x128xf32>
    %401 = vector.extract_strided_slice %329 {offsets = [2, 0], sizes = [1, 128], strides = [1, 1]} : vector<4x128xf32> to vector<1x128xf32>
    %402 = vector.broadcast %401 : vector<1x128xf32> to vector<8x128xf32>
    %403 = arith.mulf %402, %385 : vector<8x128xf32>
    %404 = vector.extract_strided_slice %329 {offsets = [3, 0], sizes = [1, 128], strides = [1, 1]} : vector<4x128xf32> to vector<1x128xf32>
    %405 = vector.broadcast %404 : vector<1x128xf32> to vector<8x128xf32>
    %406 = arith.mulf %405, %390 : vector<8x128xf32>
    %407 = arith.addf %403, %406 : vector<8x128xf32>
    %408 = vector.extract_strided_slice %330 {offsets = [1, 0], sizes = [1, 128], strides = [1, 1]} : vector<2x128xf32> to vector<1x128xf32>
    %409 = vector.broadcast %408 : vector<1x128xf32> to vector<8x128xf32>
    %410 = arith.addf %407, %409 : vector<8x128xf32>
    %411 = tpu.concatenate %400, %410 in 1 : vector<8x128xf32>, vector<8x128xf32> -> vector<8x256xf32>
    %c0_113 = arith.constant 0 : index
    %c0_114 = arith.constant 0 : index
    %412 = vector.load %arg13[%c0_113, %c0_114] : memref<256x512xbf16, #tpu.memory_space<vmem>>, vector<256x512xbf16>
    %c0_115 = arith.constant 0 : index
    %c0_116 = arith.constant 0 : index
    %413 = vector.load %arg14[%c0_115, %c0_116] : memref<1x512xf32, #tpu.memory_space<vmem>>, vector<1x512xf32>
    %414 = arith.truncf %411 : vector<8x256xf32> to vector<8x256xbf16>
    %cst_117 = arith.constant dense<0.000000e+00> : vector<8x512xf32>
    %415 = tpu.matmul %414, %412, %cst_117 {dimension_numbers = #tpu.dot_dimension_numbers<[1], [0], [0], [1], [0, 0, 1, 1], [], []>} : vector<8x256xbf16>, vector<256x512xbf16>, vector<8x512xf32> -> vector<8x512xf32>
    %416 = vector.broadcast %413 : vector<1x512xf32> to vector<8x512xf32>
    %417 = arith.addf %415, %416 : vector<8x512xf32>
    %cst_118 = arith.constant 0.000000e+00 : f32
    %418 = vector.broadcast %cst_118 : f32 to vector<8x512xf32>
    %419 = arith.maximumf %417, %418 : vector<8x512xf32>
    %c0_119 = arith.constant 0 : index
    %c0_120 = arith.constant 0 : index
    %420 = vector.load %arg15[%c0_119, %c0_120] : memref<512x256xbf16, #tpu.memory_space<vmem>>, vector<512x256xbf16>
    %c0_121 = arith.constant 0 : index
    %c0_122 = arith.constant 0 : index
    %421 = vector.load %arg16[%c0_121, %c0_122] : memref<1x256xf32, #tpu.memory_space<vmem>>, vector<1x256xf32>
    %422 = arith.truncf %419 : vector<8x512xf32> to vector<8x512xbf16>
    %cst_123 = arith.constant dense<0.000000e+00> : vector<8x256xf32>
    %423 = tpu.matmul %422, %420, %cst_123 {dimension_numbers = #tpu.dot_dimension_numbers<[1], [0], [0], [1], [0, 0, 1, 1], [], []>} : vector<8x512xbf16>, vector<512x256xbf16>, vector<8x256xf32> -> vector<8x256xf32>
    %424 = vector.broadcast %421 : vector<1x256xf32> to vector<8x256xf32>
    %425 = arith.addf %423, %424 : vector<8x256xf32>
    %426 = arith.addf %411, %425 : vector<8x256xf32>
    %c0_124 = arith.constant 0 : index
    %c0_125 = arith.constant 0 : index
    %427 = vector.load %arg21[%c0_124, %c0_125] : memref<4x128xf32, #tpu.memory_space<vmem>>, vector<4x128xf32>
    %c0_126 = arith.constant 0 : index
    %c0_127 = arith.constant 0 : index
    %428 = vector.load %arg22[%c0_126, %c0_127] : memref<2x128xf32, #tpu.memory_space<vmem>>, vector<2x128xf32>
    %429 = vector.extract_strided_slice %426 {offsets = [0, 0], sizes = [8, 128], strides = [1, 1]} : vector<8x256xf32> to vector<8x128xf32>
    %430 = vector.extract_strided_slice %426 {offsets = [0, 128], sizes = [8, 128], strides = [1, 1]} : vector<8x256xf32> to vector<8x128xf32>
    %cst_128 = arith.constant dense<0.000000e+00> : vector<8xf32>
    %431 = vector.multi_reduction <add>, %429, %cst_128 [1] : vector<8x128xf32> to vector<8xf32>
    %432 = vector.shape_cast %431 : vector<8xf32> to vector<8x1xf32>
    %cst_129 = arith.constant 1.280000e+02 : f32
    %433 = vector.broadcast %cst_129 : f32 to vector<8x1xf32>
    %434 = arith.divf %432, %433 : vector<8x1xf32>
    %cst_130 = arith.constant dense<0.000000e+00> : vector<8xf32>
    %435 = vector.multi_reduction <add>, %430, %cst_130 [1] : vector<8x128xf32> to vector<8xf32>
    %436 = vector.shape_cast %435 : vector<8xf32> to vector<8x1xf32>
    %cst_131 = arith.constant 1.280000e+02 : f32
    %437 = vector.broadcast %cst_131 : f32 to vector<8x1xf32>
    %438 = arith.divf %436, %437 : vector<8x1xf32>
    %439 = vector.broadcast %434 : vector<8x1xf32> to vector<8x128xf32>
    %440 = arith.subf %429, %439 : vector<8x128xf32>
    %441 = vector.broadcast %438 : vector<8x1xf32> to vector<8x128xf32>
    %442 = arith.subf %430, %441 : vector<8x128xf32>
    %443 = arith.mulf %440, %440 : vector<8x128xf32>
    %cst_132 = arith.constant dense<0.000000e+00> : vector<8xf32>
    %444 = vector.multi_reduction <add>, %443, %cst_132 [1] : vector<8x128xf32> to vector<8xf32>
    %445 = vector.shape_cast %444 : vector<8xf32> to vector<8x1xf32>
    %cst_133 = arith.constant 1.280000e+02 : f32
    %446 = vector.broadcast %cst_133 : f32 to vector<8x1xf32>
    %447 = arith.divf %445, %446 : vector<8x1xf32>
    %cst_134 = arith.constant 9.99999974E-6 : f32
    %448 = vector.broadcast %cst_134 : f32 to vector<8x1xf32>
    %449 = arith.addf %447, %448 : vector<8x1xf32>
    %450 = arith.mulf %442, %442 : vector<8x128xf32>
    %cst_135 = arith.constant dense<0.000000e+00> : vector<8xf32>
    %451 = vector.multi_reduction <add>, %450, %cst_135 [1] : vector<8x128xf32> to vector<8xf32>
    %452 = vector.shape_cast %451 : vector<8xf32> to vector<8x1xf32>
    %cst_136 = arith.constant 1.280000e+02 : f32
    %453 = vector.broadcast %cst_136 : f32 to vector<8x1xf32>
    %454 = arith.divf %452, %453 : vector<8x1xf32>
    %cst_137 = arith.constant 9.99999974E-6 : f32
    %455 = vector.broadcast %cst_137 : f32 to vector<8x1xf32>
    %456 = arith.addf %454, %455 : vector<8x1xf32>
    %457 = arith.mulf %440, %442 : vector<8x128xf32>
    %cst_138 = arith.constant dense<0.000000e+00> : vector<8xf32>
    %458 = vector.multi_reduction <add>, %457, %cst_138 [1] : vector<8x128xf32> to vector<8xf32>
    %459 = vector.shape_cast %458 : vector<8xf32> to vector<8x1xf32>
    %cst_139 = arith.constant 1.280000e+02 : f32
    %460 = vector.broadcast %cst_139 : f32 to vector<8x1xf32>
    %461 = arith.divf %459, %460 : vector<8x1xf32>
    %462 = arith.mulf %449, %456 : vector<8x1xf32>
    %463 = arith.mulf %461, %461 : vector<8x1xf32>
    %464 = arith.subf %462, %463 : vector<8x1xf32>
    %465 = math.sqrt %464 : vector<8x1xf32>
    %466 = arith.addf %449, %456 : vector<8x1xf32>
    %cst_140 = arith.constant 2.000000e+00 : f32
    %467 = vector.broadcast %cst_140 : f32 to vector<8x1xf32>
    %468 = arith.mulf %467, %465 : vector<8x1xf32>
    %469 = arith.addf %466, %468 : vector<8x1xf32>
    %470 = arith.mulf %464, %469 : vector<8x1xf32>
    %471 = math.rsqrt %470 : vector<8x1xf32>
    %472 = arith.addf %456, %465 : vector<8x1xf32>
    %473 = arith.mulf %472, %471 : vector<8x1xf32>
    %474 = arith.addf %449, %465 : vector<8x1xf32>
    %475 = arith.mulf %474, %471 : vector<8x1xf32>
    %cst_141 = arith.constant 0.000000e+00 : f32
    %476 = vector.broadcast %cst_141 : f32 to vector<8x1xf32>
    %477 = arith.subf %476, %461 : vector<8x1xf32>
    %478 = arith.mulf %477, %471 : vector<8x1xf32>
    %479 = vector.broadcast %473 : vector<8x1xf32> to vector<8x128xf32>
    %480 = arith.mulf %479, %440 : vector<8x128xf32>
    %481 = vector.broadcast %478 : vector<8x1xf32> to vector<8x128xf32>
    %482 = arith.mulf %481, %442 : vector<8x128xf32>
    %483 = arith.addf %480, %482 : vector<8x128xf32>
    %484 = vector.broadcast %478 : vector<8x1xf32> to vector<8x128xf32>
    %485 = arith.mulf %484, %440 : vector<8x128xf32>
    %486 = vector.broadcast %475 : vector<8x1xf32> to vector<8x128xf32>
    %487 = arith.mulf %486, %442 : vector<8x128xf32>
    %488 = arith.addf %485, %487 : vector<8x128xf32>
    %489 = vector.extract_strided_slice %427 {offsets = [0, 0], sizes = [1, 128], strides = [1, 1]} : vector<4x128xf32> to vector<1x128xf32>
    %490 = vector.broadcast %489 : vector<1x128xf32> to vector<8x128xf32>
    %491 = arith.mulf %490, %483 : vector<8x128xf32>
    %492 = vector.extract_strided_slice %427 {offsets = [1, 0], sizes = [1, 128], strides = [1, 1]} : vector<4x128xf32> to vector<1x128xf32>
    %493 = vector.broadcast %492 : vector<1x128xf32> to vector<8x128xf32>
    %494 = arith.mulf %493, %488 : vector<8x128xf32>
    %495 = arith.addf %491, %494 : vector<8x128xf32>
    %496 = vector.extract_strided_slice %428 {offsets = [0, 0], sizes = [1, 128], strides = [1, 1]} : vector<2x128xf32> to vector<1x128xf32>
    %497 = vector.broadcast %496 : vector<1x128xf32> to vector<8x128xf32>
    %498 = arith.addf %495, %497 : vector<8x128xf32>
    %499 = vector.extract_strided_slice %427 {offsets = [2, 0], sizes = [1, 128], strides = [1, 1]} : vector<4x128xf32> to vector<1x128xf32>
    %500 = vector.broadcast %499 : vector<1x128xf32> to vector<8x128xf32>
    %501 = arith.mulf %500, %483 : vector<8x128xf32>
    %502 = vector.extract_strided_slice %427 {offsets = [3, 0], sizes = [1, 128], strides = [1, 1]} : vector<4x128xf32> to vector<1x128xf32>
    %503 = vector.broadcast %502 : vector<1x128xf32> to vector<8x128xf32>
    %504 = arith.mulf %503, %488 : vector<8x128xf32>
    %505 = arith.addf %501, %504 : vector<8x128xf32>
    %506 = vector.extract_strided_slice %428 {offsets = [1, 0], sizes = [1, 128], strides = [1, 1]} : vector<2x128xf32> to vector<1x128xf32>
    %507 = vector.broadcast %506 : vector<1x128xf32> to vector<8x128xf32>
    %508 = arith.addf %505, %507 : vector<8x128xf32>
    %509 = tpu.concatenate %498, %508 in 1 : vector<8x128xf32>, vector<8x128xf32> -> vector<8x256xf32>
    %c0_142 = arith.constant 0 : index
    %c0_143 = arith.constant 0 : index
    %c0_144 = arith.constant 0 : index
    %510 = vector.load %arg23[%c0_142, %c0_143, %c0_144] : memref<1x8x256xf32, #tpu.memory_space<vmem>>, vector<1x8x256xf32>
    %511 = vector.shape_cast %510 : vector<1x8x256xf32> to vector<8x256xf32>
    %512 = vector.shape_cast %509 : vector<8x256xf32> to vector<1x8x256xf32>
    tpu.vector_store %arg23[%c0_142, %c0_143, %c0_144], %512 {strides = array<i32>} : memref<1x8x256xf32, #tpu.memory_space<vmem>>, vector<1x8x256xf32>,
    return
  }
  func.func @transform_0(%arg0: i32) -> (i32, i32, i32) {
    %c0_i32 = arith.constant 0 : i32
    %c0_i32_0 = arith.constant 0 : i32
    %c0_i32_1 = arith.constant 0 : i32
    return %arg0, %c0_i32, %c0_i32_0 : i32, i32, i32
  }
  func.func @transform_1(%arg0: i32) -> (i32, i32, i32) {
    %c0_i32 = arith.constant 0 : i32
    %c0_i32_0 = arith.constant 0 : i32
    %c0_i32_1 = arith.constant 0 : i32
    return %arg0, %c0_i32, %c0_i32_0 : i32, i32, i32
  }
  func.func @transform_2(%arg0: i32) -> (i32, i32) {
    %c0_i32 = arith.constant 0 : i32
    %c0_i32_0 = arith.constant 0 : i32
    %c0_i32_1 = arith.constant 0 : i32
    return %c0_i32, %c0_i32_0 : i32, i32
  }
  func.func @transform_3(%arg0: i32) -> (i32, i32) {
    %c0_i32 = arith.constant 0 : i32
    %c0_i32_0 = arith.constant 0 : i32
    %c0_i32_1 = arith.constant 0 : i32
    return %c0_i32, %c0_i32_0 : i32, i32
  }
  func.func @transform_4(%arg0: i32) -> (i32, i32) {
    %c0_i32 = arith.constant 0 : i32
    %c0_i32_0 = arith.constant 0 : i32
    %c0_i32_1 = arith.constant 0 : i32
    return %c0_i32, %c0_i32_0 : i32, i32
  }
  func.func @transform_5(%arg0: i32) -> (i32, i32) {
    %c0_i32 = arith.constant 0 : i32
    %c0_i32_0 = arith.constant 0 : i32
    %c0_i32_1 = arith.constant 0 : i32
    return %c0_i32, %c0_i32_0 : i32, i32
  }
  func.func @transform_6(%arg0: i32) -> (i32, i32) {
    %c0_i32 = arith.constant 0 : i32
    %c0_i32_0 = arith.constant 0 : i32
    %c0_i32_1 = arith.constant 0 : i32
    return %c0_i32, %c0_i32_0 : i32, i32
  }
  func.func @transform_7(%arg0: i32) -> (i32, i32) {
    %c0_i32 = arith.constant 0 : i32
    %c0_i32_0 = arith.constant 0 : i32
    %c0_i32_1 = arith.constant 0 : i32
    return %c0_i32, %c0_i32_0 : i32, i32
  }
  func.func @transform_8(%arg0: i32) -> (i32, i32) {
    %c0_i32 = arith.constant 0 : i32
    %c0_i32_0 = arith.constant 0 : i32
    %c0_i32_1 = arith.constant 0 : i32
    return %c0_i32, %c0_i32_0 : i32, i32
  }
  func.func @transform_9(%arg0: i32) -> (i32, i32) {
    %c0_i32 = arith.constant 0 : i32
    %c0_i32_0 = arith.constant 0 : i32
    %c0_i32_1 = arith.constant 0 : i32
    return %c0_i32, %c0_i32_0 : i32, i32
  }
  func.func @transform_10(%arg0: i32) -> (i32, i32) {
    %c0_i32 = arith.constant 0 : i32
    %c0_i32_0 = arith.constant 0 : i32
    %c0_i32_1 = arith.constant 0 : i32
    return %c0_i32, %c0_i32_0 : i32, i32
  }
  func.func @transform_11(%arg0: i32) -> (i32, i32) {
    %c0_i32 = arith.constant 0 : i32
    %c0_i32_0 = arith.constant 0 : i32
    %c0_i32_1 = arith.constant 0 : i32
    return %c0_i32, %c0_i32_0 : i32, i32
  }
  func.func @transform_12(%arg0: i32) -> (i32, i32) {
    %c0_i32 = arith.constant 0 : i32
    %c0_i32_0 = arith.constant 0 : i32
    %c0_i32_1 = arith.constant 0 : i32
    return %c0_i32, %c0_i32_0 : i32, i32
  }
  func.func @transform_13(%arg0: i32) -> (i32, i32) {
    %c0_i32 = arith.constant 0 : i32
    %c0_i32_0 = arith.constant 0 : i32
    %c0_i32_1 = arith.constant 0 : i32
    return %c0_i32, %c0_i32_0 : i32, i32
  }
  func.func @transform_14(%arg0: i32) -> (i32, i32) {
    %c0_i32 = arith.constant 0 : i32
    %c0_i32_0 = arith.constant 0 : i32
    %c0_i32_1 = arith.constant 0 : i32
    return %c0_i32, %c0_i32_0 : i32, i32
  }
  func.func @transform_15(%arg0: i32) -> (i32, i32) {
    %c0_i32 = arith.constant 0 : i32
    %c0_i32_0 = arith.constant 0 : i32
    %c0_i32_1 = arith.constant 0 : i32
    return %c0_i32, %c0_i32_0 : i32, i32
  }
  func.func @transform_16(%arg0: i32) -> (i32, i32) {
    %c0_i32 = arith.constant 0 : i32
    %c0_i32_0 = arith.constant 0 : i32
    %c0_i32_1 = arith.constant 0 : i32
    return %c0_i32, %c0_i32_0 : i32, i32
  }
  func.func @transform_17(%arg0: i32) -> (i32, i32) {
    %c0_i32 = arith.constant 0 : i32
    %c0_i32_0 = arith.constant 0 : i32
    %c0_i32_1 = arith.constant 0 : i32
    return %c0_i32, %c0_i32_0 : i32, i32
  }
  func.func @transform_18(%arg0: i32) -> (i32, i32) {
    %c0_i32 = arith.constant 0 : i32
    %c0_i32_0 = arith.constant 0 : i32
    %c0_i32_1 = arith.constant 0 : i32
    return %c0_i32, %c0_i32_0 : i32, i32
  }
  func.func @transform_19(%arg0: i32) -> (i32, i32) {
    %c0_i32 = arith.constant 0 : i32
    %c0_i32_0 = arith.constant 0 : i32
    %c0_i32_1 = arith.constant 0 : i32
    return %c0_i32, %c0_i32_0 : i32, i32
  }
  func.func @transform_20(%arg0: i32) -> (i32, i32) {
    %c0_i32 = arith.constant 0 : i32
    %c0_i32_0 = arith.constant 0 : i32
    %c0_i32_1 = arith.constant 0 : i32
    return %c0_i32, %c0_i32_0 : i32, i32
  }
  func.func @transform_21(%arg0: i32) -> (i32, i32) {
    %c0_i32 = arith.constant 0 : i32
    %c0_i32_0 = arith.constant 0 : i32
    %c0_i32_1 = arith.constant 0 : i32
    return %c0_i32, %c0_i32_0 : i32, i32
  }
  func.func @transform_22(%arg0: i32) -> (i32, i32, i32) {
    %c0_i32 = arith.constant 0 : i32
    %c0_i32_0 = arith.constant 0 : i32
    %c0_i32_1 = arith.constant 0 : i32
    return %arg0, %c0_i32, %c0_i32_0 : i32, i32, i32
  }
}

</mosaic_0001>

<bundles_post_ra>
// kernel: tpu_custom_call.1
= control target key start
LH: loop header
LB: loop body
LE: loop exit
PB: predicated region body
PF: predicated region fallthrough
CT: control target
= control target key end

     0   :  { %s8730_s0 = inlined_call_operand.hbm [shape: f32[2,8,256], index: 0, kind: input, shape index: {}]   ;;  %s8731_s1 = inlined_call_operand.hbm [shape: f32[2,16,256], index: 1, kind: input, shape index: {}]   ;;  %s8732_s2 = inlined_call_operand.hbm [shape: bf16[256,1024], index: 2, kind: input, shape index: {}]   ;;  %s8733_s3 = inlined_call_operand.vmem [shape: f32[1,1024], index: 3, kind: input, shape index: {}]   ;;  %s8734_s4 = inlined_call_operand.hbm [shape: bf16[256,256], index: 4, kind: input, shape index: {}]   ;;  %s8735_s5 = inlined_call_operand.vmem [shape: f32[1,256], index: 5, kind: input, shape index: {}]   ;;  %s8736_s6 = inlined_call_operand.hbm [shape: bf16[256,512], index: 6, kind: input, shape index: {}]   ;;  %s8737_s7 = inlined_call_operand.vmem [shape: f32[1,512], index: 7, kind: input, shape index: {}]   ;;  %s8738_s8 = inlined_call_operand.hbm [shape: bf16[256,512], index: 8, kind: input, shape index: {}]   ;;  %s8739_s9 = inlined_call_operand.vmem [shape: f32[1,512], index: 9, kind: input, shape index: {}]   ;;  %s8740_s10 = inlined_call_operand.hbm [shape: bf16[256,256], index: 10, kind: input, shape index: {}]   ;;  %s8741_s11 = inlined_call_operand.vmem [shape: f32[1,256], index: 11, kind: input, shape index: {}]   ;;  %s8742_s12 = inlined_call_operand.hbm [shape: bf16[256,512], index: 12, kind: input, shape index: {}]   ;;  %s8743_s13 = inlined_call_operand.vmem [shape: f32[1,512], index: 13, kind: input, shape index: {}]   ;;  %s8744_s14 = inlined_call_operand.hbm [shape: bf16[512,256], index: 14, kind: input, shape index: {}]   ;;  %s8745_s15 = inlined_call_operand.vmem [shape: f32[1,256], index: 15, kind: input, shape index: {}]   ;;  %s8746_s16 = inlined_call_operand.vmem [shape: f32[4,128], index: 16, kind: input, shape index: {}]   ;;  %s8747_s17 = inlined_call_operand.vmem [shape: f32[2,128], index: 17, kind: input, shape index: {}]   ;;  %s8748_s18 = inlined_call_operand.vmem [shape: f32[4,128], index: 18, kind: input, shape index: {}]   ;;  %s8749_s19 = inlined_call_operand.vmem [shape: f32[2,128], index: 19, kind: input, shape index: {}]   ;;  %s8750_s20 = inlined_call_operand.vmem [shape: f32[4,128], index: 20, kind: input, shape index: {}]   ;;  %s8751_s21 = inlined_call_operand.vmem [shape: f32[2,128], index: 21, kind: input, shape index: {}]   ;;  %s8752_s22 = inlined_call_operand.hbm [shape: f32[2,8,256], index: 22, kind: output, shape index: {}]  }
   0x1   :  { %8772 = sst [smem:[#allocation25_spill]] %s8730_s0 }
   0x2   :  { %8773 = sst [smem:[#allocation26_spill]] %s8731_s1 }
   0x3   :  { %8774 = sst [smem:[#allocation27_spill]] %s8732_s2 }
   0x4   :  { %8775 = sst [smem:[#allocation28_spill]] %s8733_s3 }
   0x5   :  { %8776 = sst [smem:[#allocation29_spill]] %s8734_s4 }
   0x6   :  { %8777 = sst [smem:[#allocation30_spill]] %s8735_s5 }
   0x7   :  { %8778 = sst [smem:[#allocation31_spill]] %s8736_s6 }
   0x8   :  { %8779 = sst [smem:[#allocation32_spill]] %s8738_s8 }
   0x9   :  { %8780 = sst [smem:[#allocation33_spill]] %s8740_s10 }
   0xa   :  { %8781 = sst [smem:[#allocation34_spill]] %s8741_s11 }
   0xb   :  { %8782 = sst [smem:[#allocation35_spill]] %s8742_s12 }
   0xc   :  { %8783 = sst [smem:[#allocation36_spill]] %s8743_s13 }
   0xd   :  { %8784 = sst [smem:[#allocation37_spill]] %s8744_s14 }
   0xe   :  { %8785 = sst [smem:[#allocation38_spill]] %s8745_s15 }
   0xf   :  { %8786 = sst [smem:[#allocation39_spill]] %s8748_s18 }
  0x10   :  { %8787 = sst [smem:[#allocation40_spill]] %s8749_s19 }
  0x11   :  { %8788 = sst [smem:[#allocation41_spill]] %s8750_s20 }
  0x12   :  { %8789 = sst [smem:[#allocation42_spill]] %s8751_s21 }
  0x13   :  { %8790 = sst [smem:[#allocation43_spill]] %s8752_s22 }
  0x14   :  { %27 = vsyncpa [#allocation3], 0 }
  0x15   :  { %29 = vsyncpa [#allocation3 + $0x1], 0 }
  0x16   :  { %30 = vsyncpa [#allocation6], 0 }
  0x17   :  { %32 = vsyncpa [#allocation6 + $0x1], 0 }
  0x18   :  { %33 = vsyncpa [#allocation9], 0 }
  0x19   :  { %34 = vsyncpa [#allocation12], 0 }
  0x1a   :  { %35 = vsyncpa [#allocation15], 0 }
  0x1b   :  { %36 = vsyncpa [#allocation4], 0 }
  0x1c   :  { %38 = vsyncpa [#allocation4 + $0x1], 0  ;;  %s7912_s3 = smov 0   ;;  %s7914_s28 = smov 0  }
  0x1d   :  { %s7916_s29 = smov 0   ;;  %s7918_s30 = smov 0  }
  0x1e LB: > { %s7778_s4 = smov [#allocation7]   ;;  %s7933_s23 = sadd.s32 4294967295, %s7776_s30   ;;  %s7776_s30 = sphi %s7918_s30, %s8838_s30   ;;  %s7772_s29 = sphi %s7916_s29, %s8837_s29   ;;  %s7768_s28 = sphi %s7914_s28, %s8836_s28   ;;  %s7764_s3 = sphi %s7912_s3, %s8835_s3  }
  0x1f   : > { %s559_s0 = sshll.u32 %s7778_s4, 4  ;;  %p6053_p0 = scmp.ge.s32.totalorder %s7776_s30, 1  ;;  %s7938_s0 = int_to_ptr.vmem [resolvable:$true] %s559_s0 }
  0x20   : > { %p8760_p1 = scmp.eq.s32.totalorder %s7933_s23, 0  ;;  %p547_p2 = scmp.lt.s32.totalorder %s7776_s30, 3 }
  0x21   : > { %s7779_s5 = smov [#allocation8]   ;;  %s8793_s2 = sld [smem:[#allocation27_spill]] }
  0x22   : > { %p7940_p3 = pnand %p6053_p0, %p547_p2  ;;  %s575_s24 = sshll.u32 %s7779_s5, 4  ;;  %s7953_s24 = int_to_ptr.vmem [resolvable:$true] %s575_s24 }
  0x24   : > { %s8791_s1 = scalar_select %p7940_p3, 1, 0 }
  0x25   : > { %p6785_p5 = pneg %p7940_p3 }
  0x27   : > { %p7949_p6 = pnand %p6785_p5, %p8760_p1  ;;  %s7434_s27 = scalar_lea.hbm %s8793_s2, 16384 }
  0x28   : > { %p7435_p7 = scmp.ne.s32.totalorder %s8793_s2, %s7434_s27  ;;  %p7441_p11 = scmp.lt.u32.totalorder %s7434_s27, %s8793_s2 }
  0x29   : > { %p7963_p8 = pneg %p7949_p6 }
  0x2b   : > { %p7437_p9 = pnand %p7963_p8, %p7435_p7 }
  0x2d   : > { %p7438_p10 = pneg %p7437_p9 }
  0x2f   : > { %p7443_p12 = pnand %p7441_p11, %p7438_p10 }
  0x31   : > { %7446 = shalt.err (!%p7443_p12)
}
  0x32   : > { %s7447_s22 = scalar_lea.vmem %s7938_s0, 16384  ;;  %p7455_p5 = scmp.lt.s32.totalorder %s7938_s0, %s7938_s0 }
  0x33   : > { %p7448_p13 = scmp.ne.s32.totalorder %s7938_s0, %s7447_s22  ;;  %p7456_p4 = scmp.lt.s32.totalorder %s7447_s22, %s7447_s22 }
  0x35   : > { %p7450_p0 = pnand %p7448_p13, %p7963_p8  ;;  %p7457_p7 = por %p7456_p4, %p7455_p5 }
  0x37   : > { %p7451_p2 = pneg %p7450_p0 }
  0x39   : > { %p7458_p9 = pnand %p7457_p7, %p7451_p2 }
  0x3b   : > { %7461 = shalt.err (!%p7458_p9)
}
  0x3c   : > { %s7780_s25 = smov 512   ;;  %s7781_s20 = smov 32  }
  0x3d   : > { %6788 = dma.hbm_to_vmem [thread:$0]  (!%p7949_p6), %s8793_s2, 16384, %s7938_s0, [#allocation6], %s7780_s25, %s7780_s25, %s7781_s20  }
  0x3e   : > { %s8795_s15 = sld [smem:[#allocation29_spill]] }
  0x44   : > { %s7462_s13 = scalar_lea.hbm %s8795_s15, 4096 }
  0x45   : > { %p7463_p4 = scmp.ne.s32.totalorder %s8795_s15, %s7462_s13  ;;  %p7469_p12 = scmp.lt.u32.totalorder %s7462_s13, %s8795_s15 }
  0x47   : > { %p7465_p10 = pnand %p7463_p4, %p7963_p8 }
  0x49   : > { %p7466_p11 = pneg %p7465_p10 }
  0x4b   : > { %p7471_p13 = pnand %p7469_p12, %p7466_p11 }
  0x4d   : > { %7474 = shalt.err (!%p7471_p13)
}
  0x4e   : > { %s7475_s0 = scalar_lea.vmem %s7953_s24, 4096  ;;  %p7483_p7 = scmp.lt.s32.totalorder %s7953_s24, %s7953_s24 }
  0x4f   : > { %p7476_p0 = scmp.ne.s32.totalorder %s7953_s24, %s7475_s0  ;;  %p7484_p9 = scmp.lt.s32.totalorder %s7475_s0, %s7475_s0 }
  0x51   : > { %p7478_p2 = pnand %p7476_p0, %p7963_p8  ;;  %p7485_p4 = por %p7484_p9, %p7483_p7 }
  0x53   : > { %p7479_p5 = pneg %p7478_p2 }
  0x55   : > { %p7486_p10 = pnand %p7485_p4, %p7479_p5 }
  0x57   : > { %7489 = shalt.err (!%p7486_p10)
}
  0x58   : > { %s8762_s18 = smov 128   ;;  %s8764_s11 = smov 8  }
  0x59   : > { %6791 = dma.hbm_to_vmem [thread:$0]  (!%p7949_p6), %s8795_s15, 4096, %s7953_s24, [#allocation9], %s8762_s18, %s8762_s18, %s8764_s11  }
  0x5a   : > { %s7784_s25 = smov [#allocation11]   ;;  %s7785_s26 = smov [#allocation14]  }
  0x5b   : > { %s607_s20 = sshll.u32 %s7784_s25, 4  ;;  %s639_s27 = sshll.u32 %s7785_s26, 4  ;;  %s608_s20 = int_to_ptr.vmem [resolvable:$true] %s607_s20  ;;  %s8010_s27 = int_to_ptr.vmem [resolvable:$true] %s639_s27 }
  0x5c   : > { %s8796_s8 = sld [smem:[#allocation32_spill]] }
  0x62   : > { %s7490_s22 = scalar_lea.hbm %s8796_s8, 8192 }
  0x63   : > { %p7491_p11 = scmp.ne.s32.totalorder %s8796_s8, %s7490_s22  ;;  %p7497_p0 = scmp.lt.u32.totalorder %s7490_s22, %s8796_s8 }
  0x65   : > { %p7493_p12 = pnand %p7491_p11, %p7963_p8 }
  0x67   : > { %p7494_p13 = pneg %p7493_p12 }
  0x69   : > { %p7499_p2 = pnand %p7497_p0, %p7494_p13 }
  0x6b   : > { %7502 = shalt.err (!%p7499_p2)
}
  0x6c   : > { %s7503_s19 = scalar_lea.vmem %s608_s20, 8192  ;;  %p7511_p4 = scmp.lt.s32.totalorder %s608_s20, %s608_s20 }
  0x6d   : > { %p7504_p5 = scmp.ne.s32.totalorder %s608_s20, %s7503_s19  ;;  %p7512_p10 = scmp.lt.s32.totalorder %s7503_s19, %s7503_s19 }
  0x6f   : > { %p7506_p7 = pnand %p7504_p5, %p7963_p8  ;;  %p7513_p1 = por %p7512_p10, %p7511_p4 }
  0x71   : > { %p7507_p9 = pneg %p7506_p7 }
  0x73   : > { %p7514_p3 = pnand %p7513_p1, %p7507_p9 }
  0x75   : > { %7517 = shalt.err (!%p7514_p3)
}
  0x76   : > { %s8766_s2 = smov 256   ;;  %s8767_s25 = smov 16  }
  0x77   : > { %6797 = dma.hbm_to_vmem [thread:$0]  (!%p7949_p6), %s8796_s8, 8192, %s608_s20, [#allocation12], %s8766_s2, %s8766_s2, %s8767_s25  }
  0x78   : > { %s8797_s12 = sld [smem:[#allocation35_spill]] }
  0x7e   : > { %s7518_s0 = scalar_lea.hbm %s8797_s12, 8192 }
  0x7f   : > { %p7519_p1 = scmp.ne.s32.totalorder %s8797_s12, %s7518_s0  ;;  %p7525_p12 = scmp.lt.u32.totalorder %s7518_s0, %s8797_s12 }
  0x81   : > { %p7521_p3 = pnand %p7519_p1, %p7963_p8 }
  0x83   : > { %p7522_p11 = pneg %p7521_p3 }
  0x85   : > { %p7527_p13 = pnand %p7525_p12, %p7522_p11 }
  0x87   : > { %7530 = shalt.err (!%p7527_p13)
}
  0x88   : > { %s7531_s20 = scalar_lea.vmem %s8010_s27, 8192  ;;  %p7539_p7 = scmp.lt.s32.totalorder %s8010_s27, %s8010_s27 }
  0x89   : > { %p7532_p0 = scmp.ne.s32.totalorder %s8010_s27, %s7531_s20  ;;  %p7540_p9 = scmp.lt.s32.totalorder %s7531_s20, %s7531_s20 }
  0x8b   : > { %p7534_p2 = pnand %p7532_p0, %p7963_p8  ;;  %p7541_p4 = por %p7540_p9, %p7539_p7 }
  0x8d   : > { %p7535_p5 = pneg %p7534_p2 }
  0x8f   : > { %p7542_p10 = pnand %p7541_p4, %p7535_p5 }
  0x91   : > { %7545 = shalt.err (!%p7542_p10)
}
  0x92   : > { %6803 = dma.hbm_to_vmem [thread:$0]  (!%p7949_p6), %s8797_s12, 8192, %s8010_s27, [#allocation15], %s8766_s2, %s8766_s2, %s8767_s25  }
  0x93   : > { %s7788_s4 = smov [#allocation10]   ;;  %s7789_s22 = smov [#allocation13]  }
  0x94   : > { %s591_s5 = sshll.u32 %s7788_s4, 4  ;;  %s623_s0 = sshll.u32 %s7789_s22, 4  ;;  %s592_s5 = int_to_ptr.vmem [resolvable:$true] %s591_s5  ;;  %s8059_s0 = int_to_ptr.vmem [resolvable:$true] %s623_s0 }
  0x95   : > { %s8798_s19 = sld [smem:[#allocation31_spill]] }
  0x9b   : > { %s7546_s20 = scalar_lea.hbm %s8798_s19, 8192 }
  0x9c   : > { %p7547_p1 = scmp.ne.s32.totalorder %s8798_s19, %s7546_s20  ;;  %p7553_p12 = scmp.lt.u32.totalorder %s7546_s20, %s8798_s19 }
  0x9e   : > { %p7549_p3 = pnand %p7547_p1, %p7963_p8 }
  0xa0   : > { %p7550_p11 = pneg %p7549_p3 }
  0xa2   : > { %p7555_p13 = pnand %p7553_p12, %p7550_p11 }
  0xa4   : > { %7558 = shalt.err (!%p7555_p13)
}
  0xa5   : > { %s7559_s26 = scalar_lea.vmem %s592_s5, 8192  ;;  %p7567_p7 = scmp.lt.s32.totalorder %s592_s5, %s592_s5 }
  0xa6   : > { %p7560_p0 = scmp.ne.s32.totalorder %s592_s5, %s7559_s26  ;;  %p7568_p9 = scmp.lt.s32.totalorder %s7559_s26, %s7559_s26 }
  0xa8   : > { %p7562_p2 = pnand %p7560_p0, %p7963_p8  ;;  %p7569_p4 = por %p7568_p9, %p7567_p7 }
  0xaa   : > { %p7563_p5 = pneg %p7562_p2 }
  0xac   : > { %p7570_p10 = pnand %p7569_p4, %p7563_p5 }
  0xae   : > { %7573 = shalt.err (!%p7570_p10)
}
  0xaf   : > { %6794 = dma.hbm_to_vmem [thread:$0]  (!%p7949_p6), %s8798_s19, 8192, %s592_s5, [#allocation9], %s8766_s2, %s8766_s2, %s8767_s25  }
  0xb0   : > { %s8799_s10 = sld [smem:[#allocation33_spill]] }
  0xb6   : > { %s7574_s13 = scalar_lea.hbm %s8799_s10, 4096 }
  0xb7   : > { %p7575_p1 = scmp.ne.s32.totalorder %s8799_s10, %s7574_s13  ;;  %p7581_p12 = scmp.lt.u32.totalorder %s7574_s13, %s8799_s10 }
  0xb9   : > { %p7577_p3 = pnand %p7575_p1, %p7963_p8 }
  0xbb   : > { %p7578_p11 = pneg %p7577_p3 }
  0xbd   : > { %p7583_p13 = pnand %p7581_p12, %p7578_p11 }
  0xbf   : > { %7586 = shalt.err (!%p7583_p13)
}
  0xc0   : > { %s7587_s5 = scalar_lea.vmem %s8059_s0, 4096  ;;  %p7595_p7 = scmp.lt.s32.totalorder %s8059_s0, %s8059_s0 }
  0xc1   : > { %p7588_p0 = scmp.ne.s32.totalorder %s8059_s0, %s7587_s5  ;;  %p7596_p9 = scmp.lt.s32.totalorder %s7587_s5, %s7587_s5 }
  0xc3   : > { %p7590_p2 = pnand %p7588_p0, %p7963_p8  ;;  %p7597_p4 = por %p7596_p9, %p7595_p7 }
  0xc5   : > { %p7591_p5 = pneg %p7590_p2 }
  0xc7   : > { %p7598_p10 = pnand %p7597_p4, %p7591_p5 }
  0xc9   : > { %7601 = shalt.err (!%p7598_p10)
}
  0xca   : > { %s8800_s26 = smov 8   ;;  %s8801_s8 = smov 128  }
  0xcb   : > { %6800 = dma.hbm_to_vmem [thread:$0]  (!%p7949_p6), %s8799_s10, 4096, %s8059_s0, [#allocation12], %s8801_s8, %s8801_s8, %s8800_s26  }
  0xcc   : > { %s7790_s22 = smov [#allocation16]   ;;  %s8802_s14 = sld [smem:[#allocation37_spill]] }
  0xcd   : > { %s655_s13 = sshll.u32 %s7790_s22, 4  ;;  %s656_s13 = int_to_ptr.vmem [resolvable:$true] %s655_s13 }
  0xd2   : > { %s7602_s18 = scalar_lea.hbm %s8802_s14, 8192 }
  0xd3   : > { %p7603_p1 = scmp.ne.s32.totalorder %s8802_s14, %s7602_s18  ;;  %p7609_p12 = scmp.lt.u32.totalorder %s7602_s18, %s8802_s14 }
  0xd5   : > { %p7605_p3 = pnand %p7603_p1, %p7963_p8 }
  0xd7   : > { %p7606_p11 = pneg %p7605_p3 }
  0xd9   : > { %p7611_p13 = pnand %p7609_p12, %p7606_p11 }
  0xdb   : > { %7614 = shalt.err (!%p7611_p13)
}
  0xdc   : > { %s7615_s0 = scalar_lea.vmem %s656_s13, 8192  ;;  %p7623_p7 = scmp.lt.s32.totalorder %s656_s13, %s656_s13 }
  0xdd   : > { %p7616_p0 = scmp.ne.s32.totalorder %s656_s13, %s7615_s0  ;;  %p7624_p9 = scmp.lt.s32.totalorder %s7615_s0, %s7615_s0 }
  0xdf   : > { %p7618_p2 = pnand %p7616_p0, %p7963_p8  ;;  %p7625_p4 = por %p7624_p9, %p7623_p7 }
  0xe1   : > { %p7619_p5 = pneg %p7618_p2 }
  0xe3   : > { %p7626_p10 = pnand %p7625_p4, %p7619_p5 }
  0xe5   : > { %7629 = shalt.err (!%p7626_p10)
}
  0xe6   : > { %6806 = dma.hbm_to_vmem [thread:$0]  (!%p7949_p6), %s8802_s14, 8192, %s656_s13, [#allocation15], %s8801_s8, %s8801_s8, %s8800_s26  }
  0xe7   : > { %s6052_s21 = sadd.s32 4294967294, %s7776_s30   ;;  %s8131_s6 = sadd.s32 1, %s7776_s30  }
  0xe8   : > { %s51_s11 = sadd.s32 1, %s7772_s29  ;;  %s48_s4 = ssub.s32 %s7776_s30, %s8131_s6 }
  0xe9   : > { %p58_p8 = scmp.ne.s32.totalorder %s7772_s29, %s7768_s28  ;;  %p49_p1 = scmp.eq.s32.totalorder %s48_s4, 0 }
  0xea   : > { %p59_p3 = scmp.eq.s32.totalorder %s7776_s30, 0  ;;  %p64_p11 = scmp.ne.s32.totalorder %s7768_s28, %s7764_s3 }
  0xeb   : > { %p534_p12 = scmp.eq.s32.totalorder %s7933_s23, 1  ;;  %p8803_p0 = scmp.eq.s32.totalorder %s7933_s23, 0 }
  0xec   : > { %s8143_s22 = scalar_select %p49_p1, %s7772_s29, %s51_s11  }
  0xed   : > { %p60_p13 = por %p59_p3, %p58_p8  ;;  %p8147_p2 = por %p8803_p0, %p64_p11 }
  0xee   : > { %p8151_p6 = por %p534_p12, %p58_p8  ;;  %p540_p5 = scmp.eq.s32.totalorder %s6052_s21, 1 }
  0xef   : > { %p6825_p7 = scmp.lt.s32.totalorder %s7776_s30, 2  ;;  %s8157_s8 = sand.u32 1, %s7772_s29  }
  0xf0   : > { %s8805_s26 = scalar_select %p8151_p6, 1, 0 }
  0xf1   : > { %p8159_p9 = por %p540_p5, %p64_p11  ;;  %s6062_s20 = sshll.u32 %s8157_s8, 4 }
  0xf2   : > { %s6556_s18 = sshll.u32 %s7776_s30, 8  ;;  %s8807_s0 = sld [smem:[#allocation25_spill]] }
  0xf3   : > { %s8806_s13 = scalar_select %p8159_p9, 1, 0 }
  0xf4   : > { %s694_s25 = scalar_lea.vmem [#allocation2], %s6062_s20  ;;  %p8170_p4 = pnand %p6825_p7, %p60_p13 }
  0xf5   : > { %s702_s21 = sshll.u32 %s694_s25, 4  ;;  %s691_s10 = scalar_lea.sflag [#allocation3], %s8157_s8  ;;  %s8174_s21 = int_to_ptr.vmem [resolvable:$true] %s702_s21 }
  0xf6   : > { %p7632_p8 = pneg %p8170_p4 }
  0xf8   : > { %s8168_s2 = scalar_lea.hbm %s8807_s0, %s6556_s18  ;;  %s7635_s27 = scalar_lea.hbm %s8807_s0, 512 }
  0xf9   : > { %s7630_s12 = scalar_lea.hbm %s8168_s2, 256  ;;  %p7636_p11 = scmp.lt.u32.totalorder %s8168_s2, %s8807_s0 }
  0xfa   : > { %p7631_p10 = scmp.ne.s32.totalorder %s8168_s2, %s7630_s12  ;;  %p7637_p12 = scmp.lt.u32.totalorder %s7635_s27, %s7630_s12 }
  0xfb   : > { %p7639_p0 = scmp.lt.u32.totalorder %s7630_s12, %s8168_s2 }
  0xfc   : > { %p7633_p1 = pnand %p7632_p8, %p7631_p10  ;;  %p7638_p13 = por %p7637_p12, %p7636_p11 }
  0xfe   : > { %p7634_p3 = pneg %p7633_p1  ;;  %p7640_p5 = por %p7639_p0, %p7638_p13 }
 0x100   : > { %p7641_p7 = pnand %p7640_p5, %p7634_p3 }
 0x102   : > { %7644 = shalt.err (!%p7641_p7)
}
 0x103   : > { %s7645_s4 = scalar_lea.vmem %s8174_s21, 256  ;;  %s7791_s20 = smov [#allocation2]  }
 0x104   : > { %p7646_p10 = scmp.ne.s32.totalorder %s8174_s21, %s7645_s4  ;;  %s7650_s18 = sshll.u32 %s7791_s20, 4  ;;  %s7651_s18 = int_to_ptr.vmem [resolvable:$false] %s7650_s18 }
 0x105   : > { %s7652_s5 = scalar_lea.vmem %s7651_s18, 512  ;;  %p7653_p6 = scmp.lt.s32.totalorder %s8174_s21, %s7651_s18 }
 0x106   : > { %p7648_p1 = pnand %p7646_p10, %p7632_p8  ;;  %p7654_p11 = scmp.lt.s32.totalorder %s7652_s5, %s7645_s4 }
 0x108   : > { %p7649_p9 = pneg %p7648_p1  ;;  %p7655_p12 = por %p7654_p11, %p7653_p6 }
 0x10a   : > { %p7656_p13 = pnand %p7655_p12, %p7649_p9 }
 0x10c   : > { %7659 = shalt.err (!%p7656_p13)
}
 0x10d   : > { %6810 = dma.hbm_to_vmem [thread:$0]  (!%p8170_p4), %s8168_s2, 256, %s8174_s21, %s691_s10  }
 0x10e   : > { %s8809_s12 = sshll.u32 %s8157_s8, 5  ;;  %s709_s20 = sand.u32 1, %s7776_s30  }
 0x10f   : > { %s713_s27 = scalar_lea.vmem [#allocation5], %s8809_s12  ;;  %s6557_s18 = sshll.u32 %s7776_s30, 9 }
 0x110   : > { %s720_s25 = sshll.u32 %s713_s27, 4  ;;  %s8810_s0 = sld [smem:[#allocation26_spill]]  ;;  %s8206_s25 = int_to_ptr.vmem [resolvable:$true] %s720_s25 }
 0x111   : > { %s8214_s15 = scalar_lea.sflag [#allocation6], %s709_s20 }
 0x116   : > { %s8212_s14 = scalar_lea.hbm %s8810_s0, %s6557_s18  ;;  %s7665_s2 = scalar_lea.hbm %s8810_s0, 1024 }
 0x117   : > { %s7660_s19 = scalar_lea.hbm %s8212_s14, 512  ;;  %p7666_p0 = scmp.lt.u32.totalorder %s8212_s14, %s8810_s0 }
 0x118   : > { %p7661_p6 = scmp.ne.s32.totalorder %s8212_s14, %s7660_s19  ;;  %p7667_p5 = scmp.lt.u32.totalorder %s7665_s2, %s7660_s19 }
 0x119   : > { %p7669_p10 = scmp.lt.u32.totalorder %s7660_s19, %s8212_s14 }
 0x11a   : > { %p7663_p9 = pnand %p7661_p6, %p7632_p8  ;;  %p7668_p7 = por %p7667_p5, %p7666_p0 }
 0x11c   : > { %p7664_p3 = pneg %p7663_p9  ;;  %p7670_p1 = por %p7669_p10, %p7668_p7 }
 0x11e   : > { %p7671_p11 = pnand %p7670_p1, %p7664_p3 }
 0x120   : > { %7674 = shalt.err (!%p7671_p11)
}
 0x121   : > { %s7675_s27 = scalar_lea.vmem %s8206_s25, 512  ;;  %s7792_s20 = smov [#allocation5]  }
 0x122   : > { %p7676_p12 = scmp.ne.s32.totalorder %s8206_s25, %s7675_s27  ;;  %s7680_s18 = sshll.u32 %s7792_s20, 4  ;;  %s7681_s18 = int_to_ptr.vmem [resolvable:$false] %s7680_s18 }
 0x123   : > { %s7682_s4 = scalar_lea.vmem %s7681_s18, 1024  ;;  %p7683_p9 = scmp.lt.s32.totalorder %s8206_s25, %s7681_s18 }
 0x124   : > { %p7678_p13 = pnand %p7676_p12, %p7632_p8  ;;  %p7684_p0 = scmp.lt.s32.totalorder %s7682_s4, %s7675_s27 }
 0x126   : > { %p7679_p6 = pneg %p7678_p13  ;;  %p7685_p5 = por %p7684_p0, %p7683_p9 }
 0x128   : > { %p7686_p7 = pnand %p7685_p5, %p7679_p6 }
 0x12a   : > { %7689 = shalt.err (!%p7686_p7)
}
 0x12b   : > { %s8811_s19 = smov 16   ;;  %s8812_s5 = smov 256  }
 0x12c   : > { %6813 = dma.hbm_to_vmem [thread:$0]  (!%p8170_p4), %s8212_s14, 512, %s8206_s25, %s8214_s15, %s8812_s5, %s8812_s5, %s8811_s19  }
 0x12d   : > { %p8813_p8 = scmp.ne.s32.totalorder %s8791_s1, 0 }
 0x12e   : > { %s8246_s10 = sand.u32 (!%p8813_p8), 1, %s7768_s28  }
 0x12f   : > { %732 = sbr.rel (%p8813_p8) target bundleno = 8059 (0x1f7b), region = 108  ;;  %s6069_s8 = sshll.u32 (!%p8813_p8), %s8246_s10, 4 }
 0x130   : > { %s735_s2 = scalar_lea.sflag (!%p8813_p8), [#allocation3], %s8246_s10  ;;  %s8252_s11 = scalar_lea.vmem (!%p8813_p8), [#allocation2], %s6069_s8 }
 0x136   : > { %7735 = dma.done.wait (%p8147_p2), %s735_s2, 256  }
 0x137   : > { %7737 = vsyncadd (%p8147_p2), %s735_s2, 4294967040  ;;  %s743_s14 = sand.u32 1, %s7933_s23   ;;  %s6070_s15 = sshll.u32 %s8246_s10, 5 }
 0x138   : > { %s744_s1 = scalar_lea.sflag [#allocation6], %s743_s14  ;;  %s8260_s25 = scalar_lea.vmem [#allocation5], %s6070_s15 }
 0x139   : > { %7739 = dma.done.wait (%p8147_p2), %s744_s1, 512  }
 0x13a   : > { %7741 = vsyncadd (%p8147_p2), %s744_s1, 4294966784  ;;  %p8814_p4 = scmp.eq.s32.totalorder %s7933_s23, 0 }
 0x13c   : > { %7743 = dma.done.wait (%p8814_p4), [#allocation6], 16384   ;;  %p8815_p3 = pmov %p8814_p4 }
 0x13e   : > { %7745 = vsyncadd (%p8815_p3), [#allocation6], 4294950912  ;;  %p8816_p10 = pmov %p8815_p3 }
 0x13f   : > { %p8817_p1 = pmov %p8815_p3 }
 0x140   : > { %7747 = dma.done.wait (%p8816_p10), [#allocation9], 12288  }
 0x141   : > { %7749 = vsyncadd (%p8817_p1), [#allocation9], 4294955008  ;;  %p8818_p11 = pmov %p8817_p1 }
 0x142   : > { %p8819_p12 = pmov %p8817_p1 }
 0x143   : > { %7751 = dma.done.wait (%p8818_p11), [#allocation12], 12288  }
 0x144   : > { %7753 = vsyncadd (%p8819_p12), [#allocation12], 4294955008  ;;  %p8820_p2 = pmov %p8817_p1 }
 0x145   : > { %p8821_p13 = pmov %p8817_p1 }
 0x146   : > { %7755 = dma.done.wait (%p8820_p2), [#allocation15], 16384  }
 0x147   : > { %7757 = vsyncadd (%p8821_p13), [#allocation15], 4294950912  ;;  %v848_v0 = vld [vmem:[#allocation7] sm:$0xff]  ;;  %v843_v17 = vld [vmem:[%s8252_s11 + $0x8] sm:$0xff]  ;;  %vm7794_vm0 = vmmov 0   ;;  %s8822_s12 = sld [smem:[#allocation28_spill]] }
 0x148   : > { %v852_v1 = vld [vmem:[#allocation7 + $0x20] sm:$0xff]  ;;  %v8283_v18 = vpack.c.bf16 %v843_v17, %v843_v17  ;;  %v849_v23 = vld [vmem:[#allocation7 + $0x8] sm:$0xff]  ;;  %vm1832_vm1 = vcmask 523264   ;;  %s7795_s27 = smov 64   ;;  %vm1949_vm2 = vcmask 1043456   ;;  %vm1933_vm5 = vcmask 64512  }
 0x149   : > { %v856_v2 = vld [vmem:[#allocation7 + $0x40] sm:$0xff]  ;;  %v6080_v3 = vcombine.high %v848_v0, %v852_v1  ;;  %v6079_v4 = vcombine.low %v848_v0, %v852_v1  ;;  %v853_v24 = vld [vmem:[#allocation7 + $0x28] sm:$0xff]  ;;  %s8823_s4 = sld [smem:[#allocation30_spill]]  ;;  %s8825_s18 = sld [smem:[#allocation39_spill]] }
 0x14a   : > { %v860_v5 = vld [vmem:[#allocation7 + $0x60] sm:$0xff]  ;;  %1692 = vmatprep.mubr.bf16.mxu0 %v8283_v18  ;;  %1733 = vmatprep.mubr.bf16.mxu1 %v8283_v18  ;;  %v6082_v25 = vcombine.high %v849_v23, %v853_v24  ;;  %v6081_v26 = vcombine.low %v849_v23, %v853_v24  ;;  %v857_v27 = vld [vmem:[#allocation7 + $0x48] sm:$0xff]  ;;  %s8826_s5 = sld [smem:[#allocation40_spill]]  ;;  %s8827_s14 = sld [smem:[#allocation36_spill]] }
 0x14b   : > { %v6088_v6 = vcombine.high %v856_v2, %v860_v5  ;;  %v864_v7 = vld [vmem:[#allocation7 + $0x80] sm:$0xff]  ;;  %1660 = vmatprep.subr.bf16.mxu0 %v6080_v3  ;;  %v6087_v9 = vcombine.low %v856_v2, %v860_v5  ;;  %v861_v28 = vld [vmem:[#allocation7 + $0x68] sm:$0xff]  ;;  %s840_s19 = scalar_lea.vmem [#allocation17], %s6069_s8  ;;  %p8832_p9 = scmp.ne.s32.totalorder %s8805_s26, 0 }
 0x14c   : > { %v868_v8 = vld [vmem:[#allocation7 + $0xa0] sm:$0xff]  ;;  %1661 = vmatpush1.bf16.msra.mxu0 %v6079_v4  ;;  %v6090_v30 = vcombine.high %v857_v27, %v861_v28  ;;  %v865_v31 = vld [vmem:[#allocation7 + $0x88] sm:$0xff]  ;;  %1701 = vmatprep.subr.bf16.mxu1 %v6082_v25  ;;  %v6089_v36 = vcombine.low %v857_v27, %v861_v28  ;;  %s7796_s8 = smov [#allocation17]  }
 0x14d   : > { %1662 = vmatprep.subr.bf16.mxu0 %v6088_v6  ;;  %v6096_v10 = vcombine.high %v864_v7, %v868_v8  ;;  %v872_v11 = vld [vmem:[#allocation7 + $0xc0] sm:$0xff]  ;;  %v6095_v13 = vcombine.low %v864_v7, %v868_v8  ;;  %v869_v33 = vld [vmem:[#allocation7 + $0xa8] sm:$0xff]  ;;  %1702 = vmatpush1.bf16.msra.mxu1 %v6081_v26 }
 0x14e   : > { %v876_v12 = vld [vmem:[#allocation7 + $0xe0] sm:$0xff]  ;;  %1703 = vmatprep.subr.bf16.mxu1 %v6090_v30  ;;  %v6098_v37 = vcombine.high %v865_v31, %v869_v33  ;;  %v873_v39 = vld [vmem:[#allocation7 + $0xc8] sm:$0xff]  ;;  %v6097_v44 = vcombine.low %v865_v31, %v869_v33 }
 0x14f   : > { %v6104_v14 = vcombine.high %v872_v11, %v876_v12  ;;  %v880_v15 = vld [vmem:[#allocation7 + $0x100] sm:$0xff]  ;;  %v6103_v19 = vcombine.low %v872_v11, %v876_v12  ;;  %v877_v40 = vld [vmem:[#allocation7 + $0xe8] sm:$0xff] }
 0x150   : > { %1663 = vmatpush1.bf16.msra.mxu0 %v6087_v9  ;;  %v884_v16 = vld [vmem:[#allocation7 + $0x120] sm:$0xff]  ;;  %v6106_v45 = vcombine.high %v873_v39, %v877_v40  ;;  %v881_v47 = vld [vmem:[#allocation7 + $0x108] sm:$0xff]  ;;  %v6105_v52 = vcombine.low %v873_v39, %v877_v40 }
 0x151   : > { %1664 = vmatprep.subr.bf16.mxu0 %v6096_v10  ;;  %v6112_v20 = vcombine.high %v880_v15, %v884_v16  ;;  %v888_v21 = vld [vmem:[#allocation7 + $0x140] sm:$0xff]  ;;  %v6111_v29 = vcombine.low %v880_v15, %v884_v16  ;;  %1704 = vmatpush1.bf16.msra.mxu1 %v6089_v36  ;;  %v885_v48 = vld [vmem:[#allocation7 + $0x128] sm:$0xff] }
 0x152   : > { %v892_v22 = vld [vmem:[#allocation7 + $0x160] sm:$0xff]  ;;  %1705 = vmatprep.subr.bf16.mxu1 %v6098_v37  ;;  %v6114_v53 = vcombine.high %v881_v47, %v885_v48  ;;  %v889_v55 = vld [vmem:[#allocation7 + $0x148] sm:$0xff]  ;;  %v6113_v60 = vcombine.low %v881_v47, %v885_v48 }
 0x153   : > { %v6120_v32 = vcombine.high %v888_v21, %v892_v22  ;;  %v896_v34 = vld [vmem:[#allocation7 + $0x180] sm:$0xff]  ;;  %v6119_v38 = vcombine.low %v888_v21, %v892_v22  ;;  %v893_v56 = vld [vmem:[#allocation7 + $0x168] sm:$0xff] }
 0x154   : > { %1665 = vmatpush1.bf16.msra.mxu0 %v6095_v13  ;;  %v900_v35 = vld [vmem:[#allocation7 + $0x1a0] sm:$0xff]  ;;  %v6122_v61 = vcombine.high %v889_v55, %v893_v56  ;;  %v897_v1 = vld [vmem:[#allocation7 + $0x188] sm:$0xff]  ;;  %v6121_v4 = vcombine.low %v889_v55, %v893_v56 }
 0x155   : > { %1666 = vmatprep.subr.bf16.mxu0 %v6104_v14  ;;  %v6128_v41 = vcombine.high %v896_v34, %v900_v35  ;;  %v904_v42 = vld [vmem:[#allocation7 + $0x1c0] sm:$0xff]  ;;  %v6127_v46 = vcombine.low %v896_v34, %v900_v35  ;;  %1706 = vmatpush1.bf16.msra.mxu1 %v6097_v44  ;;  %v901_v2 = vld [vmem:[#allocation7 + $0x1a8] sm:$0xff] }
 0x156   : > { %v908_v43 = vld [vmem:[#allocation7 + $0x1e0] sm:$0xff]  ;;  %1707 = vmatprep.subr.bf16.mxu1 %v6106_v45  ;;  %v905_v5 = vld [vmem:[#allocation7 + $0x1c8] sm:$0xff]  ;;  %v6130_v7 = vcombine.high %v897_v1, %v901_v2  ;;  %v6129_v12 = vcombine.low %v897_v1, %v901_v2 }
 0x157   : > { %v6136_v49 = vcombine.high %v904_v42, %v908_v43  ;;  %v912_v50 = vld [vmem:[#allocation7 + $0x200] sm:$0xff]  ;;  %v6135_v54 = vcombine.low %v904_v42, %v908_v43  ;;  %v909_v6 = vld [vmem:[#allocation7 + $0x1e8] sm:$0xff] }
 0x158   : > { %1667 = vmatpush1.bf16.msra.mxu0 %v6103_v19  ;;  %v916_v51 = vld [vmem:[#allocation7 + $0x220] sm:$0xff]  ;;  %v913_v13 = vld [vmem:[#allocation7 + $0x208] sm:$0xff]  ;;  %v6138_v15 = vcombine.high %v905_v5, %v909_v6  ;;  %v6137_v21 = vcombine.low %v905_v5, %v909_v6  ;;  %v870_v5 = vld [vmem:[#allocation7 + $0xb0] sm:$0xff] }
 0x159   : > { %1668 = vmatprep.subr.bf16.mxu0 %v6112_v20  ;;  %v6144_v57 = vcombine.high %v912_v50, %v916_v51  ;;  %v920_v58 = vld [vmem:[#allocation7 + $0x240] sm:$0xff]  ;;  %1708 = vmatpush1.bf16.msra.mxu1 %v6105_v52  ;;  %v6143_v62 = vcombine.low %v912_v50, %v916_v51  ;;  %v917_v14 = vld [vmem:[#allocation7 + $0x228] sm:$0xff]  ;;  %v850_v50 = vld [vmem:[#allocation7 + $0x10] sm:$0xff] }
 0x15a   : > { %v924_v59 = vld [vmem:[#allocation7 + $0x260] sm:$0xff]  ;;  %1709 = vmatprep.subr.bf16.mxu1 %v6114_v53  ;;  %v921_v22 = vld [vmem:[#allocation7 + $0x248] sm:$0xff]  ;;  %v6146_v24 = vcombine.high %v913_v13, %v917_v14  ;;  %v854_v51 = vld [vmem:[#allocation7 + $0x30] sm:$0xff] }
 0x15b   : > { %v928_v63 = vld [vmem:[#allocation7 + $0x280] sm:$0xff]  ;;  %v6152_v3 = vcombine.high %v920_v58, %v924_v59  ;;  %v6151_v8 = vcombine.low %v920_v58, %v924_v59  ;;  %v925_v23 = vld [vmem:[#allocation7 + $0x268] sm:$0xff]  ;;  %v858_v59 = vld [vmem:[#allocation7 + $0x50] sm:$0xff] }
 0x15c   : > { %1669 = vmatpush1.bf16.msra.mxu0 %v6111_v29  ;;  %v932_v0 = vld [vmem:[#allocation7 + $0x2a0] sm:$0xff]  ;;  %v6145_v29 = vcombine.low %v913_v13, %v917_v14  ;;  %v929_v30 = vld [vmem:[#allocation7 + $0x288] sm:$0xff]  ;;  %v6153_v37 = vcombine.low %v921_v22, %v925_v23  ;;  %v878_v13 = vld [vmem:[#allocation7 + $0xf0] sm:$0xff] }
 0x15d   : > { %1670 = vmatprep.subr.bf16.mxu0 %v6120_v32  ;;  %1710 = vmatpush1.bf16.msra.mxu1 %v6113_v60  ;;  %v936_v9 = vld [vmem:[#allocation7 + $0x2c0] sm:$0xff]  ;;  %v6160_v11 = vcombine.high %v928_v63, %v932_v0  ;;  %v6159_v16 = vcombine.low %v928_v63, %v932_v0  ;;  %v933_v31 = vld [vmem:[#allocation7 + $0x2a8] sm:$0xff]  ;;  %v6154_v32 = vcombine.high %v921_v22, %v925_v23  ;;  %v862_v60 = vld [vmem:[#allocation7 + $0x70] sm:$0xff] }
 0x15e   : > { %1711 = vmatprep.subr.bf16.mxu1 %v6122_v61  ;;  %v940_v10 = vld [vmem:[#allocation7 + $0x2e0] sm:$0xff]  ;;  %v941_v39 = vld [vmem:[#allocation7 + $0x2e8] sm:$0xff]  ;;  %v6162_v40 = vcombine.high %v929_v30, %v933_v31  ;;  %v6161_v45 = vcombine.low %v929_v30, %v933_v31  ;;  %v6084_v61 = vcombine.high %v850_v50, %v854_v51  ;;  %v6092_v6 = vcombine.high %v858_v59, %v862_v60 }
 0x15f   : > { %v944_v17 = vld [vmem:[#allocation7 + $0x300] sm:$0xff]  ;;  %v6168_v20 = vcombine.high %v936_v9, %v940_v10  ;;  %v6167_v25 = vcombine.low %v936_v9, %v940_v10  ;;  %v949_v47 = vld [vmem:[#allocation7 + $0x328] sm:$0xff] }
 0x160   : > { %1671 = vmatpush1.bf16.msra.mxu0 %v6119_v38  ;;  %v948_v19 = vld [vmem:[#allocation7 + $0x320] sm:$0xff]  ;;  %v937_v38 = vld [vmem:[#allocation7 + $0x2c8] sm:$0xff] }
 0x161   : > { %1672 = vmatprep.subr.bf16.mxu0 %v6128_v41  ;;  %1712 = vmatpush1.bf16.msra.mxu1 %v6121_v4  ;;  %v952_v26 = vld [vmem:[#allocation7 + $0x340] sm:$0xff]  ;;  %v6176_v28 = vcombine.high %v944_v17, %v948_v19  ;;  %v6175_v33 = vcombine.low %v944_v17, %v948_v19  ;;  %v6170_v48 = vcombine.high %v937_v38, %v941_v39  ;;  %v953_v55 = vld [vmem:[#allocation7 + $0x348] sm:$0xff]  ;;  %v866_v4 = vld [vmem:[#allocation7 + $0x90] sm:$0xff] }
 0x162   : > { %1713 = vmatprep.subr.bf16.mxu1 %v6130_v7  ;;  %v956_v27 = vld [vmem:[#allocation7 + $0x360] sm:$0xff]  ;;  %v957_v56 = vld [vmem:[#allocation7 + $0x368] sm:$0xff]  ;;  %v6100_v14 = vcombine.high %v866_v4, %v870_v5  ;;  %v6099_v17 = vcombine.low %v866_v4, %v870_v5  ;;  %v882_v19 = vld [vmem:[#allocation7 + $0x110] sm:$0xff] }
 0x163   : > { %v960_v34 = vld [vmem:[#allocation7 + $0x380] sm:$0xff]  ;;  %v6184_v36 = vcombine.high %v952_v26, %v956_v27  ;;  %v6183_v41 = vcombine.low %v952_v26, %v956_v27  ;;  %v961_v63 = vld [vmem:[#allocation7 + $0x388] sm:$0xff]  ;;  %v6186_v2 = vcombine.high %v953_v55, %v957_v56  ;;  %v6185_v7 = vcombine.low %v953_v55, %v957_v56  ;;  %v954_v55 = vld [vmem:[#allocation7 + $0x350] sm:$0xff] }
 0x164   : > { %1673 = vmatpush1.bf16.msra.mxu0 %v6127_v46  ;;  %v964_v35 = vld [vmem:[#allocation7 + $0x3a0] sm:$0xff]  ;;  %v945_v46 = vld [vmem:[#allocation7 + $0x308] sm:$0xff]  ;;  %v958_v56 = vld [vmem:[#allocation7 + $0x370] sm:$0xff] }
 0x165   : > { %1674 = vmatprep.subr.bf16.mxu0 %v6136_v49  ;;  %1714 = vmatpush1.bf16.msra.mxu1 %v6129_v12  ;;  %v968_v42 = vld [vmem:[#allocation7 + $0x3c0] sm:$0xff]  ;;  %v6192_v44 = vcombine.high %v960_v34, %v964_v35  ;;  %v6191_v49 = vcombine.low %v960_v34, %v964_v35  ;;  %v965_v0 = vld [vmem:[#allocation7 + $0x3a8] sm:$0xff]  ;;  %v874_v12 = vld [vmem:[#allocation7 + $0xd0] sm:$0xff] }
 0x166   : > { %1715 = vmatprep.subr.bf16.mxu1 %v6138_v15  ;;  %v972_v43 = vld [vmem:[#allocation7 + $0x3e0] sm:$0xff]  ;;  %v973_v9 = vld [vmem:[#allocation7 + $0x3e8] sm:$0xff]  ;;  %v6194_v10 = vcombine.high %v961_v63, %v965_v0  ;;  %v6193_v15 = vcombine.low %v961_v63, %v965_v0  ;;  %v6107_v23 = vcombine.low %v874_v12, %v878_v13  ;;  %v970_v63 = vld [vmem:[#allocation7 + $0x3d0] sm:$0xff] }
 0x167   : > { %v6200_v52 = vcombine.high %v968_v42, %v972_v43  ;;  %v842_v53 = vld [vmem:[%s8252_s11] sm:$0xff]  ;;  %v6199_v58 = vcombine.low %v968_v42, %v972_v43 }
 0x168   : > { %1675 = vmatpush1.bf16.msra.mxu0 %v6135_v54  ;;  %v6169_v54 = vcombine.low %v937_v38, %v941_v39  ;;  %v8288_v1 = vpack.c.bf16 %v842_v53, %v842_v53  ;;  %v930_v43 = vld [vmem:[#allocation7 + $0x290] sm:$0xff] }
 0x169   : > { %1676 = vmatprep.subr.bf16.mxu0 %v6144_v57  ;;  %1716 = vmatpush1.bf16.msra.mxu1 %v6137_v21  ;;  %v6178_v57 = vcombine.high %v945_v46, %v949_v47  ;;  %v6108_v21 = vcombine.high %v874_v12, %v878_v13  ;;  %v974_v0 = vld [vmem:[#allocation7 + $0x3f0] sm:$0xff] }
 0x16a   : > { %1717 = vmatprep.subr.bf16.mxu1 %v6146_v24  ;;  %v890_v24 = vld [vmem:[#allocation7 + $0x150] sm:$0xff]  ;;  %v6204_v4 = vcombine.high %v970_v63, %v974_v0  ;;  %v6203_v5 = vcombine.low %v970_v63, %v974_v0 }
 0x16c   : > { %1677 = vmatpush1.bf16.msra.mxu0 %v6143_v62  ;;  %v6177_v62 = vcombine.low %v945_v46, %v949_v47  ;;  %v938_v47 = vld [vmem:[#allocation7 + $0x2d0] sm:$0xff] }
 0x16d   : > { %1678 = vmatprep.subr.bf16.mxu0 %v6152_v3  ;;  %1718 = vmatpush1.bf16.msra.mxu1 %v6145_v29  ;;  %v6083_v3 = vcombine.low %v850_v50, %v854_v51  ;;  %v902_v29 = vld [vmem:[#allocation7 + $0x1b0] sm:$0xff] }
 0x16e   : > { %1719 = vmatprep.subr.bf16.mxu1 %v6154_v32  ;;  %v906_v32 = vld [vmem:[#allocation7 + $0x1d0] sm:$0xff] }
 0x16f   : > { %v946_v51 = vld [vmem:[#allocation7 + $0x310] sm:$0xff] }
 0x170   : > { %1679 = vmatpush1.bf16.msra.mxu0 %v6151_v8  ;;  %v969_v8 = vld [vmem:[#allocation7 + $0x3c8] sm:$0xff] }
 0x171   : > { %1680 = vmatprep.subr.bf16.mxu0 %v6160_v11  ;;  %1720 = vmatpush1.bf16.msra.mxu1 %v6153_v37  ;;  %v6091_v11 = vcombine.low %v858_v59, %v862_v60  ;;  %v6201_v22 = vcombine.low %v969_v8, %v973_v9  ;;  %v918_v37 = vld [vmem:[#allocation7 + $0x230] sm:$0xff] }
 0x172   : > { %1721 = vmatprep.subr.bf16.mxu1 %v6162_v40  ;;  %v922_v40 = vld [vmem:[#allocation7 + $0x250] sm:$0xff] }
 0x173   : > { %v962_v59 = vld [vmem:[#allocation7 + $0x390] sm:$0xff] }
 0x174   : > { %1681 = vmatpush1.bf16.msra.mxu0 %v6159_v16  ;;  %v6202_v16 = vcombine.high %v969_v8, %v973_v9  ;;  %v966_v60 = vld [vmem:[#allocation7 + $0x3b0] sm:$0xff] }
 0x175   : > { %1682 = vmatprep.subr.bf16.mxu0 %v6168_v20  ;;  %1722 = vmatpush1.bf16.msra.mxu1 %v6161_v45  ;;  %v886_v20 = vld [vmem:[#allocation7 + $0x130] sm:$0xff] }
 0x176   : > { %1723 = vmatprep.subr.bf16.mxu1 %v6170_v48  ;;  %v6116_v26 = vcombine.high %v882_v19, %v886_v20  ;;  %v6115_v27 = vcombine.low %v882_v19, %v886_v20  ;;  %v942_v48 = vld [vmem:[#allocation7 + $0x2f0] sm:$0xff]  ;;  %v879_v20 = vld [vmem:[#allocation7 + $0xf8] sm:$0xff] }
 0x177   : > { %v6172_v53 = vcombine.high %v938_v47, %v942_v48 }
 0x178   : > { %1683 = vmatpush1.bf16.msra.mxu0 %v6167_v25  ;;  %v894_v25 = vld [vmem:[#allocation7 + $0x170] sm:$0xff] }
 0x179   : > { %1684 = vmatprep.subr.bf16.mxu0 %v6176_v28  ;;  %1724 = vmatpush1.bf16.msra.mxu1 %v6169_v54  ;;  %v898_v28 = vld [vmem:[#allocation7 + $0x190] sm:$0xff]  ;;  %v6124_v30 = vcombine.high %v890_v24, %v894_v25  ;;  %v6123_v31 = vcombine.low %v890_v24, %v894_v25  ;;  %v6171_v54 = vcombine.low %v938_v47, %v942_v48 }
 0x17a   : > { %1725 = vmatprep.subr.bf16.mxu1 %v6178_v57  ;;  %v6132_v34 = vcombine.high %v898_v28, %v902_v29  ;;  %v6131_v35 = vcombine.low %v898_v28, %v902_v29 }
 0x17c   : > { %1685 = vmatpush1.bf16.msra.mxu0 %v6175_v33  ;;  %v910_v33 = vld [vmem:[#allocation7 + $0x1f0] sm:$0xff] }
 0x17d   : > { %1686 = vmatprep.subr.bf16.mxu0 %v6184_v36  ;;  %1726 = vmatpush1.bf16.msra.mxu1 %v6177_v62  ;;  %v914_v36 = vld [vmem:[#allocation7 + $0x210] sm:$0xff]  ;;  %v6140_v38 = vcombine.high %v906_v32, %v910_v33  ;;  %v6139_v39 = vcombine.low %v906_v32, %v910_v33  ;;  %v6187_v62 = vcombine.low %v954_v55, %v958_v56 }
 0x17e   : > { %1727 = vmatprep.subr.bf16.mxu1 %v6186_v2  ;;  %v6148_v42 = vcombine.high %v914_v36, %v918_v37  ;;  %v6196_v2 = vcombine.high %v962_v59, %v966_v60 }
 0x180   : > { %1687 = vmatpush1.bf16.msra.mxu0 %v6183_v41  ;;  %v926_v41 = vld [vmem:[#allocation7 + $0x270] sm:$0xff] }
 0x181   : > { %1688 = vmatprep.subr.bf16.mxu0 %v6192_v44  ;;  %1728 = vmatpush1.bf16.msra.mxu1 %v6185_v7  ;;  %v934_v44 = vld [vmem:[#allocation7 + $0x2b0] sm:$0xff]  ;;  %v6156_v45 = vcombine.high %v922_v40, %v926_v41  ;;  %v6155_v46 = vcombine.low %v922_v40, %v926_v41  ;;  %v855_v7 = vld [vmem:[#allocation7 + $0x38] sm:$0xff] }
 0x182   : > { %1729 = vmatprep.subr.bf16.mxu1 %v6194_v10  ;;  %v6163_v50 = vcombine.low %v930_v43, %v934_v44  ;;  %v859_v10 = vld [vmem:[#allocation7 + $0x58] sm:$0xff] }
 0x184   : > { %1689 = vmatpush1.bf16.msra.mxu0 %v6191_v49  ;;  %v6164_v49 = vcombine.high %v930_v43, %v934_v44 }
 0x185   : > { %1690 = vmatprep.subr.bf16.mxu0 %v6200_v52  ;;  %1730 = vmatpush1.bf16.msra.mxu1 %v6193_v15  ;;  %v950_v52 = vld [vmem:[#allocation7 + $0x330] sm:$0xff]  ;;  %v871_v15 = vld [vmem:[#allocation7 + $0xb8] sm:$0xff] }
 0x186   : > { %1731 = vmatprep.subr.bf16.mxu1 %v6202_v16  ;;  %v6180_v57 = vcombine.high %v946_v51, %v950_v52  ;;  %v875_v16 = vld [vmem:[#allocation7 + $0xd8] sm:$0xff] }
 0x187   : > { %v6109_v24 = vcombine.low %v875_v16, %v879_v20 }
 0x188   : > { %1691 = vmatpush1.bf16.msra.mxu0 %v6199_v58  ;;  %v6179_v58 = vcombine.low %v946_v51, %v950_v52 }
 0x189   : > { %1742 = vmatprep.subr.bf16.mxu0 %v6084_v61  ;;  %1732 = vmatpush1.bf16.msra.mxu1 %v6201_v22  ;;  %v6188_v61 = vcombine.high %v954_v55, %v958_v56  ;;  %v883_v22 = vld [vmem:[#allocation7 + $0x118] sm:$0xff] }
 0x18b   : > { %1693 = vmatmul.mubr.bf16.vlgmr.msra.gmra.mrb[0].mxu0 %v8288_v1 }
 0x18c   : > { %1743 = vmatpush1.bf16.msra.mxu0 %v6083_v3  ;;  %1774 = vmatprep.mubr.bf16.mxu0 %v8283_v18  ;;  %v6195_v3 = vcombine.low %v962_v59, %v966_v60 }
 0x18d   : > { %1744 = vmatprep.subr.bf16.mxu0 %v6092_v6  ;;  %1734 = vmatmul.mubr.bf16.vlgmr.msra.gmra.mrb[0].mxu1 %v8288_v1  ;;  %v851_v6 = vld [vmem:[#allocation7 + $0x18] sm:$0xff] }
 0x18e   : > { %1815 = vmatprep.mubr.bf16.mxu1 %v8283_v18  ;;  %v6147_v18 = vcombine.low %v914_v36, %v918_v37  ;;  %v6086_v8 = vcombine.high %v851_v6, %v855_v7  ;;  %v6085_v9 = vcombine.low %v851_v6, %v855_v7  ;;  %v7793_v7 = vmov 0.0  }
 0x190   : > { %1745 = vmatpush1.bf16.msra.mxu0 %v6091_v11  ;;  %1783 = vmatprep.subr.bf16.mxu1 %v6086_v8  ;;  %v863_v11 = vld [vmem:[#allocation7 + $0x78] sm:$0xff] }
 0x191   : > { %1746 = vmatprep.subr.bf16.mxu0 %v6100_v14  ;;  %1784 = vmatpush1.bf16.msra.mxu1 %v6085_v9  ;;  %v6094_v12 = vcombine.high %v859_v10, %v863_v11  ;;  %v6093_v13 = vcombine.low %v859_v10, %v863_v11  ;;  %v867_v14 = vld [vmem:[#allocation7 + $0x98] sm:$0xff] }
 0x192   : > { %v6102_v19 = vcombine.high %v867_v14, %v871_v15 }
 0x193   : > { %1785 = vmatprep.subr.bf16.mxu1 %v6094_v12 }
 0x194   : > { %1747 = vmatpush1.bf16.msra.mxu0 %v6099_v17  ;;  %v6101_v17 = vcombine.low %v867_v14, %v871_v15  ;;  %v980_v15 = vlaneseq }
 0x195   : > { %1748 = vmatprep.subr.bf16.mxu0 %v6108_v21  ;;  %1786 = vmatpush1.bf16.msra.mxu1 %v6093_v13  ;;  %v6110_v21 = vcombine.high %v875_v16, %v879_v20  ;;  %v8315_v20 = vld [vmem:[%s8822_s12] sm:$0xff]  ;;  %s8824_s12 = sld [smem:[#allocation34_spill]] }
 0x196   : > { %1787 = vmatprep.subr.bf16.mxu1 %v6102_v19  ;;  %v8306_v16 = vshrl.u32 %v980_v15, 7 }
 0x198   : > { %1749 = vmatpush1.bf16.msra.mxu0 %v6107_v23  ;;  %v887_v23 = vld [vmem:[#allocation7 + $0x138] sm:$0xff]  ;;  %v8310_v19 = vsub.s32 0, %v8306_v16 }
 0x199   : > { %1750 = vmatprep.subr.bf16.mxu0 %v6116_v26  ;;  %1788 = vmatpush1.bf16.msra.mxu1 %v6101_v17  ;;  %v6118_v25 = vcombine.high %v883_v22, %v887_v23  ;;  %v891_v26 = vld [vmem:[#allocation7 + $0x158] sm:$0xff]  ;;  %v6117_v28 = vcombine.low %v883_v22, %v887_v23  ;;  %v998_v17 = vsub.s32 4, %v8306_v16 }
 0x19a   : > { %1789 = vmatprep.subr.bf16.mxu1 %v6110_v21  ;;  %v983_v22 = vrot.slane %v8315_v20, %v8310_v19 }
 0x19b   : > { %v999_v21 = vrot.slane %v8315_v20, %v998_v17 }
 0x19c   : > { %1751 = vmatpush1.bf16.msra.mxu0 %v6115_v27  ;;  %v895_v27 = vld [vmem:[#allocation7 + $0x178] sm:$0xff] }
 0x19d   : > { %1752 = vmatprep.subr.bf16.mxu0 %v6124_v30  ;;  %1790 = vmatpush1.bf16.msra.mxu1 %v6109_v24  ;;  %v6126_v29 = vcombine.high %v891_v26, %v895_v27  ;;  %v899_v30 = vld [vmem:[#allocation7 + $0x198] sm:$0xff]  ;;  %v6125_v32 = vcombine.low %v891_v26, %v895_v27 }
 0x19e   : > { %1791 = vmatprep.subr.bf16.mxu1 %v6118_v25 }
 0x1a0   : > { %1753 = vmatpush1.bf16.msra.mxu0 %v6123_v31  ;;  %v903_v31 = vld [vmem:[#allocation7 + $0x1b8] sm:$0xff] }
 0x1a1   : > { %1754 = vmatprep.subr.bf16.mxu0 %v6132_v34  ;;  %1792 = vmatpush1.bf16.msra.mxu1 %v6117_v28  ;;  %v6134_v33 = vcombine.high %v899_v30, %v903_v31  ;;  %v907_v34 = vld [vmem:[#allocation7 + $0x1d8] sm:$0xff]  ;;  %v6133_v36 = vcombine.low %v899_v30, %v903_v31  ;;  %v8325_v31 = vsub.s32 2, %v8306_v16 }
 0x1a2   : > { %1793 = vmatprep.subr.bf16.mxu1 %v6126_v29 }
 0x1a4   : > { %1755 = vmatpush1.bf16.msra.mxu0 %v6131_v35  ;;  %v911_v35 = vld [vmem:[#allocation7 + $0x1f8] sm:$0xff] }
 0x1a5   : > { %1756 = vmatprep.subr.bf16.mxu0 %v6140_v38  ;;  %1794 = vmatpush1.bf16.msra.mxu1 %v6125_v32  ;;  %v6142_v37 = vcombine.high %v907_v34, %v911_v35  ;;  %v915_v38 = vld [vmem:[#allocation7 + $0x218] sm:$0xff]  ;;  %v6141_v40 = vcombine.low %v907_v34, %v911_v35 }
 0x1a6   : > { %1795 = vmatprep.subr.bf16.mxu1 %v6134_v33  ;;  %v991_v33 = vrot.slane %v8315_v20, %v8325_v31 }
 0x1a8   : > { %1757 = vmatpush1.bf16.msra.mxu0 %v6139_v39  ;;  %v919_v39 = vld [vmem:[#allocation7 + $0x238] sm:$0xff] }
 0x1a9   : > { %1758 = vmatprep.subr.bf16.mxu0 %v6148_v42  ;;  %1796 = vmatpush1.bf16.msra.mxu1 %v6133_v36  ;;  %v6150_v41 = vcombine.high %v915_v38, %v919_v39  ;;  %v923_v42 = vld [vmem:[#allocation7 + $0x258] sm:$0xff]  ;;  %v6149_v43 = vcombine.low %v915_v38, %v919_v39  ;;  %v1006_v36 = vsub.s32 6, %v8306_v16 }
 0x1aa   : > { %1797 = vmatprep.subr.bf16.mxu1 %v6142_v37  ;;  %v1010_v37 = vsub.s32 7, %v8306_v16 }
 0x1ab   : > { %v1007_v38 = vrot.slane %v8315_v20, %v1006_v36 }
 0x1ac   : > { %1759 = vmatpush1.bf16.msra.mxu0 %v6147_v18  ;;  %v927_v18 = vld [vmem:[#allocation7 + $0x278] sm:$0xff]  ;;  %v1011_v39 = vrot.slane %v8315_v20, %v1010_v37 }
 0x1ad   : > { %1760 = vmatprep.subr.bf16.mxu0 %v6156_v45  ;;  %1798 = vmatpush1.bf16.msra.mxu1 %v6141_v40  ;;  %v6158_v44 = vcombine.high %v923_v42, %v927_v18  ;;  %v931_v45 = vld [vmem:[#allocation7 + $0x298] sm:$0xff]  ;;  %v6157_v47 = vcombine.low %v923_v42, %v927_v18 }
 0x1ae   : > { %1799 = vmatprep.subr.bf16.mxu1 %v6150_v41 }
 0x1b0   : > { %1761 = vmatpush1.bf16.msra.mxu0 %v6155_v46  ;;  %v935_v46 = vld [vmem:[#allocation7 + $0x2b8] sm:$0xff] }
 0x1b1   : > { %1762 = vmatprep.subr.bf16.mxu0 %v6164_v49  ;;  %1800 = vmatpush1.bf16.msra.mxu1 %v6149_v43  ;;  %v6166_v48 = vcombine.high %v931_v45, %v935_v46  ;;  %v939_v49 = vld [vmem:[#allocation7 + $0x2d8] sm:$0xff]  ;;  %v6165_v51 = vcombine.low %v931_v45, %v935_v46 }
 0x1b2   : > { %1801 = vmatprep.subr.bf16.mxu1 %v6158_v44 }
 0x1b4   : > { %1763 = vmatpush1.bf16.msra.mxu0 %v6163_v50  ;;  %v943_v50 = vld [vmem:[#allocation7 + $0x2f8] sm:$0xff] }
 0x1b5   : > { %1764 = vmatprep.subr.bf16.mxu0 %v6172_v53  ;;  %1802 = vmatpush1.bf16.msra.mxu1 %v6157_v47  ;;  %v6174_v52 = vcombine.high %v939_v49, %v943_v50  ;;  %v947_v53 = vld [vmem:[#allocation7 + $0x318] sm:$0xff]  ;;  %v6173_v55 = vcombine.low %v939_v49, %v943_v50 }
 0x1b6   : > { %1803 = vmatprep.subr.bf16.mxu1 %v6166_v48 }
 0x1b8   : > { %1765 = vmatpush1.bf16.msra.mxu0 %v6171_v54  ;;  %v951_v54 = vld [vmem:[#allocation7 + $0x338] sm:$0xff] }
 0x1b9   : > { %1766 = vmatprep.subr.bf16.mxu0 %v6180_v57  ;;  %1804 = vmatpush1.bf16.msra.mxu1 %v6165_v51  ;;  %v6182_v56 = vcombine.high %v947_v53, %v951_v54  ;;  %v955_v57 = vld [vmem:[#allocation7 + $0x358] sm:$0xff]  ;;  %v6181_v59 = vcombine.low %v947_v53, %v951_v54 }
 0x1ba   : > { %1805 = vmatprep.subr.bf16.mxu1 %v6174_v52 }
 0x1bc   : > { %1767 = vmatpush1.bf16.msra.mxu0 %v6179_v58  ;;  %v959_v58 = vld [vmem:[#allocation7 + $0x378] sm:$0xff] }
 0x1bd   : > { %1768 = vmatprep.subr.bf16.mxu0 %v6188_v61  ;;  %1806 = vmatpush1.bf16.msra.mxu1 %v6173_v55  ;;  %v6190_v60 = vcombine.high %v955_v57, %v959_v58  ;;  %v963_v61 = vld [vmem:[#allocation7 + $0x398] sm:$0xff]  ;;  %v6189_v63 = vcombine.low %v955_v57, %v959_v58 }
 0x1be   : > { %1807 = vmatprep.subr.bf16.mxu1 %v6182_v56 }
 0x1c0   : > { %1769 = vmatpush1.bf16.msra.mxu0 %v6187_v62  ;;  %v967_v62 = vld [vmem:[#allocation7 + $0x3b8] sm:$0xff] }
 0x1c1   : > { %1770 = vmatprep.subr.bf16.mxu0 %v6196_v2  ;;  %1808 = vmatpush1.bf16.msra.mxu1 %v6181_v59  ;;  %v6198_v0 = vcombine.high %v963_v61, %v967_v62  ;;  %v971_v2 = vld [vmem:[#allocation7 + $0x3d8] sm:$0xff] }
 0x1c2   : > { %1809 = vmatprep.subr.bf16.mxu1 %v6190_v60 }
 0x1c4   : > { %1771 = vmatpush1.bf16.msra.mxu0 %v6195_v3  ;;  %v975_v3 = vld [vmem:[#allocation7 + $0x3f8] sm:$0xff] }
 0x1c5   : > { %1772 = vmatprep.subr.bf16.mxu0 %v6204_v4  ;;  %1810 = vmatpush1.bf16.msra.mxu1 %v6189_v63  ;;  %v6197_v4 = vcombine.low %v963_v61, %v967_v62  ;;  %v6205_v6 = vcombine.low %v971_v2, %v975_v3 }
 0x1c6   : > { %1811 = vmatprep.subr.bf16.mxu1 %v6198_v0 }
 0x1c8   : > { %1773 = vmatpush1.bf16.msra.mxu0 %v6203_v5  ;;  %v6206_v5 = vcombine.high %v971_v2, %v975_v3 }
 0x1c9   : > { %1812 = vmatpush1.bf16.msra.mxu1 %v6197_v4  ;;  %6655 = vmatprep.subr.bf16.mxu0 %v7793_v7 }
 0x1ca   : > { %1813 = vmatprep.subr.bf16.mxu1 %v6206_v5 }
 0x1cb   : > { %1775 = vmatmul.mubr.bf16.vlgmr.msra.gmra.mrb[4].mxu0 %v8288_v1 }
 0x1cc   : > { %6657 = vmatprep.mubr.msk.bf16.mxu0 %vm7794_vm0, %v7793_v7 }
 0x1cd   : > { %1814 = vmatpush1.bf16.msra.mxu1 %v6205_v6 }
 0x1ce   : > { %6607 = vmatprep.subr.bf16.mxu1 %v7793_v7 }
 0x1d0   : > { %1816 = vmatmul.mubr.bf16.vlgmr.msra.gmra.mrb[4].mxu1 %v8288_v1 }
 0x1d1   : > { %6609 = vmatprep.mubr.msk.bf16.mxu1 %vm7794_vm0, %v7793_v7 }
 0x25e   : > { %v1694_v8 = vpop.f32.mrb[0].mxu0 }
 0x25f   : > { %v8302_v9 = vpop.f32.mrb[1].mxu0  ;;  %v1695_v27 = vadd.f32 %v1694_v8, %v983_v22 }
 0x260   : > { %v1698_v10 = vpop.f32.mrb[2].mxu0  ;;  %v1735_v12 = vpop.f32.mrb[0].mxu1 }
 0x261   : > { %v1699_v11 = vpop.f32.mrb[3].mxu0  ;;  %v8304_v13 = vpop.f32.mrb[1].mxu1  ;;  %v1824_v32 = vpack.c.bf16 %v1695_v27, %v1695_v27  ;;  %v1736_v34 = vadd.f32 %v1735_v12, %v991_v33 }
 0x262   : > { %v1739_v1 = vpop.f32.mrb[2].mxu1 }
 0x263   : > { %v1740_v14 = vpop.f32.mrb[3].mxu1  ;;  %v1826_v35 = vpack.c.bf16 %v1736_v34, %v1736_v34 }
 0x29e   : > { %v1776_v23 = vpop.f32.mrb[4].mxu0 }
 0x29f   : > { %v1777_v24 = vadd.f32 %v1776_v23, %v999_v21  ;;  %v8320_v25 = vpop.f32.mrb[5].mxu0 }
 0x2a0   : > { %v1780_v26 = vpop.f32.mrb[6].mxu0 }
 0x2a1   : > { %v1828_v28 = vpack.c.bf16 %v1777_v24, %v1777_v24  ;;  %v1781_v29 = vpop.f32.mrb[7].mxu0 }
 0x2a3   : > { %v1837_v30 = vsel %vm1832_vm1, %v1828_v28, 0  ;;  %1997 = vrot.lane.b32.xlu1 %v1828_v28, %s7795_s27  ;;  %v1817_v40 = vpop.f32.mrb[4].mxu1 }
 0x2a4   : > { %6608 = vmatpush3.bf16.xpose.msra.mxu1 %v1837_v30  ;;  %v1818_v41 = vadd.f32 %v1817_v40, %v1007_v38  ;;  %v1819_v42 = vpop.f32.mrb[5].mxu1 }
 0x2a5   : > { %6613 = vmatprep.subr.bf16.mxu1 %v7793_v7  ;;  %v1820_v18 = vadd.f32 %v1819_v42, %v1011_v39  ;;  %v1821_v43 = vpop.f32.mrb[6].mxu1 }
 0x2a6   : > { %v8342_v44 = vpack.c.bf16 %v1818_v41, %v1818_v41  ;;  %v1822_v45 = vpop.f32.mrb[7].mxu1 }
 0x2a7   : > { %1994 = vrot.lane.b32.xlu1 %v1824_v32, %s7795_s27  ;;  %v8344_v46 = vpack.c.bf16 %v1820_v18, %v1820_v18 }
 0x2a8   : > { %v1951_v47 = vsel %vm1949_vm2, %v8342_v44, 0 }
 0x2a9   : > { %v2279_v48 = vsel %vm1949_vm2, %v8344_v46, 0 }
 0x2aa   : > { %6656 = vmatpush3.bf16.msra.mxu0 %v2279_v48 }
 0x2ab   : > { %6610 = vmatmul.mubr.msk.bf16.vlgmr.msra.gmra.mrb[8].mxu1 %vm1832_vm1, %v1824_v32  ;;  %6667 = vmatprep.subr.bf16.mxu0 %v7793_v7 }
 0x2ac   : > { %6614 = vmatpush3.bf16.xpose.msra.mxu1 %v1837_v30  ;;  %6615 = vmatprep.mubr.msk.bf16.mxu1 %vm7794_vm0, %v7793_v7 }
 0x2ad   : > { %6619 = vmatprep.subr.bf16.mxu1 %v7793_v7 }
 0x2b3   : > { %6616 = vmatmul.mubr.msk.bf16.vlgmr.msra.gmra.mrb[12].mxu1 %vm1832_vm1, %v1826_v35 }
 0x2b4   : > { %6621 = vmatprep.mubr.msk.bf16.mxu1 %vm7794_vm0, %v7793_v7  ;;  %6620 = vmatpush3.bf16.msra.mxu1 %v1951_v47 }
 0x2b5   : > { %6625 = vmatprep.subr.bf16.mxu1 %v7793_v7 }
 0x315   : > { %v1998_v14 = vpop.permute.xlu1 %1997 }
 0x316   : > { %v2003_v17 = vsel %vm1832_vm1, %v1998_v14, 0 }
 0x319   : > { %v1995_v21 = vpop.permute.xlu1 %1994 }
 0x37e   : > { %v1873_v49 = vpop.f32.mrb[8].mxu1 }
 0x37f   : > { %v6611_v50 = vpop.f32.mrb[9].mxu1  ;;  %v1922_v54 = vmul.f32 %v1873_v49, %v1873_v49 }
 0x380   : > { %v1876_v51 = vpop.f32.mrb[10].mxu1 }
 0x381   : > { %v6612_v52 = vpop.f32.mrb[11].mxu1 }
 0x386   : > { %v1916_v53 = vpop.f32.mrb[12].mxu1 }
 0x387   : > { %v1923_v55 = vmul.f32 %v1916_v53, %v1916_v53  ;;  %v6617_v56 = vpop.f32.mrb[13].mxu1 }
 0x388   : > { %v1919_v57 = vpop.f32.mrb[14].mxu1 }
 0x389   : > { %v1924_v58 = vadd.f32 %v1923_v55, %v1922_v54  ;;  %v6618_v59 = vpop.f32.mrb[15].mxu1  ;;  %v1002_v55 = vsub.s32 5, %v8306_v16 }
 0x38b   : > { %7372 = vrsqrt.f32 %v1924_v58  ;;  %vm1927_vm3 = vcmp.eq.f32.partialorder %v1924_v58, inf  ;;  %v1930_v62 = vand.u32 2147483648, %v1924_v58  ;;  %vm1929_vm4 = vcmp.eq.f32.partialorder %v1924_v58, 0.0 }
 0x395   : > { %v7373_v60 = vpop.eup %7372 }
 0x396   : > { %v1926_v61 = vmul.f32 %v7373_v60, %v1924_v58 }
 0x398   : > { %v1928_v63 = vsel %vm1927_vm3, %v1924_v58, %v1926_v61  ;;  %v8379_v58 = vsub.s32 1, %v8306_v16 }
 0x399   : > { %v1931_v0 = vsel %vm1929_vm4, %v1930_v62, %v1928_v63 }
 0x39a   : > { %v1932_v2 = vmul.f32 0.17677669, %v1931_v0  ;;  %v987_v62 = vrot.slane %v8315_v20, %v8379_v58 }
 0x39c   : > { %v1934_v3 = vsel %vm1933_vm5, %v1932_v2, -inf }
 0x39d   : > { %1935 = vmax.xlane.f32.xlu0 %v1934_v3 }
 0x42a   : > { %v1936_v4 = vpop.xlane.xlu0 %1935 }
 0x42b   : > { %v1937_v5 = vsub.f32 %v1932_v2, %v1936_v4  ;;  %v8389_v2 = vsub.s32 3, %v8306_v16 }
 0x42d   : > { %v1938_v6 = vmul.f32 1.442695, %v1937_v5  ;;  %v995_v4 = vrot.slane %v8315_v20, %v8389_v2 }
 0x42f   : > { %7374 = vpow2.f32 %v1938_v6  ;;  %v1738_v5 = vadd.f32 %v8304_v13, %v995_v4 }
 0x439   : > { %v7375_v8 = vpop.eup %7374 }
 0x43a   : > { %v1940_v10 = vsel %vm1933_vm5, %v7375_v8, 0.0 }
 0x43b   : > { %1941 = vadd.xlane.f32.xlu0 %v1940_v10 }
 0x451   : > { %2046 = vrot.lane.b32.xlu0 %v1826_v35, %s7795_s27 }
 0x4c8   : > { %v1942_v11 = vpop.xlane.xlu0 %1941 }
 0x4c9   : > { %7376 = vrcp.f32 %v1942_v11 }
 0x4cc   : > { %v2047_v22 = vpop.permute.xlu0 %2046 }
 0x4d3   : > { %v7377_v12 = vpop.eup %7376 }
 0x4d4   : > { %v1944_v1 = vmul.f32 %v7377_v12, %v7375_v8 }
 0x4d6   : > { %v1945_v15 = vpack.c.bf16 %v1944_v1, %v1944_v1 }
 0x4d8   : > { %6622 = vmatmul.mubr.msk.bf16.vlgmr.msra.gmra.mrb[16].mxu1 %vm1933_vm5, %v1945_v15 }
 0x4d9   : > { %6626 = vmatpush3.bf16.xpose.msra.mxu1 %v2003_v17  ;;  %6627 = vmatprep.mubr.msk.bf16.mxu1 %vm7794_vm0, %v7793_v7 }
 0x4da   : > { %6631 = vmatprep.subr.bf16.mxu1 %v7793_v7 }
 0x4e0   : > { %6628 = vmatmul.mubr.msk.bf16.vlgmr.msra.gmra.mrb[20].mxu1 %vm1832_vm1, %v1995_v21 }
 0x4e1   : > { %6632 = vmatpush3.bf16.xpose.msra.mxu1 %v2003_v17  ;;  %6633 = vmatprep.mubr.msk.bf16.mxu1 %vm7794_vm0, %v7793_v7 }
 0x4e2   : > { %6637 = vmatprep.subr.bf16.mxu1 %v7793_v7 }
 0x4e8   : > { %6634 = vmatmul.mubr.msk.bf16.vlgmr.msra.gmra.mrb[24].mxu1 %vm1832_vm1, %v2047_v22 }
 0x4e9   : > { %6639 = vmatprep.mubr.msk.bf16.mxu1 %vm7794_vm0, %v7793_v7 }
 0x5ab   : > { %v8367_v23 = vpop.f32.mrb[16].mxu1 }
 0x5ac   : > { %v6623_v24 = vpop.f32.mrb[17].mxu1 }
 0x5ad   : > { %v1990_v26 = vpop.f32.mrb[18].mxu1 }
 0x5ae   : > { %v6624_v27 = vpop.f32.mrb[19].mxu1 }
 0x5b3   : > { %v2039_v28 = vpop.f32.mrb[20].mxu1 }
 0x5b4   : > { %v6629_v29 = vpop.f32.mrb[21].mxu1  ;;  %v2091_v34 = vmul.f32 %v2039_v28, %v2039_v28 }
 0x5b5   : > { %v2042_v30 = vpop.f32.mrb[22].mxu1 }
 0x5b6   : > { %v6630_v32 = vpop.f32.mrb[23].mxu1 }
 0x5bb   : > { %v2085_v33 = vpop.f32.mrb[24].mxu1 }
 0x5bc   : > { %v2092_v35 = vmul.f32 %v2085_v33, %v2085_v33  ;;  %v6635_v36 = vpop.f32.mrb[25].mxu1 }
 0x5bd   : > { %v2088_v37 = vpop.f32.mrb[26].mxu1 }
 0x5be   : > { %v2093_v38 = vadd.f32 %v2092_v35, %v2091_v34  ;;  %v6636_v39 = vpop.f32.mrb[27].mxu1 }
 0x5c0   : > { %7378 = vrsqrt.f32 %v2093_v38  ;;  %vm2096_vm6 = vcmp.eq.f32.partialorder %v2093_v38, inf  ;;  %v2099_v42 = vand.u32 2147483648, %v2093_v38  ;;  %vm2098_vm7 = vcmp.eq.f32.partialorder %v2093_v38, 0.0 }
 0x5ca   : > { %v7379_v40 = vpop.eup %7378 }
 0x5cb   : > { %v2095_v41 = vmul.f32 %v7379_v40, %v2093_v38 }
 0x5cd   : > { %v2097_v18 = vsel %vm2096_vm6, %v2093_v38, %v2095_v41 }
 0x5ce   : > { %v2100_v43 = vsel %vm2098_vm7, %v2099_v42, %v2097_v18 }
 0x5cf   : > { %v2101_v45 = vmul.f32 0.17677669, %v2100_v43 }
 0x5d1   : > { %v2102_v47 = vsel %vm1933_vm5, %v2101_v45, -inf }
 0x5d2   : > { %2103 = vmax.xlane.f32.xlu1 %v2102_v47 }
 0x5e3   : > { %2115 = vrot.lane.b32.xlu1 %v8342_v44, %s7795_s27  ;;  %v1003_v44 = vrot.slane %v8315_v20, %v1002_v55 }
 0x5e5   : > { %v1779_v57 = vadd.f32 %v8320_v25, %v1003_v44  ;;  %v1697_v25 = vadd.f32 %v8302_v9, %v987_v62  ;;  %v1827_v9 = vpack.c.bf16 %v1738_v5, %v1738_v5 }
 0x5e7   : > { %v1829_v60 = vpack.c.bf16 %v1779_v57, %v1779_v57  ;;  %v1825_v3 = vpack.c.bf16 %v1697_v25, %v1697_v25 }
 0x5e9   : > { %v2167_v0 = vsel %vm1832_vm1, %v1829_v60, 0 }
 0x65f   : > { %v2104_v48 = vpop.xlane.xlu1 %2103 }
 0x660   : > { %v2105_v49 = vsub.f32 %v2101_v45, %v2104_v48 }
 0x662   : > { %v2106_v50 = vmul.f32 1.442695, %v2105_v49 }
 0x663   : > { %v2116_v51 = vpop.permute.xlu1 %2115 }
 0x664   : > { %7380 = vpow2.f32 %v2106_v50  ;;  %v2121_v52 = vsel %vm1949_vm2, %v2116_v51, 0 }
 0x665   : > { %6638 = vmatpush3.bf16.msra.mxu1 %v2121_v52 }
 0x666   : > { %6643 = vmatprep.subr.bf16.mxu1 %v7793_v7 }
 0x66e   : > { %v7381_v53 = vpop.eup %7380 }
 0x66f   : > { %v2108_v54 = vsel %vm1933_vm5, %v7381_v53, 0.0 }
 0x670   : > { %2109 = vadd.xlane.f32.xlu0 %v2108_v54 }
 0x6fd   : > { %v2110_v56 = vpop.xlane.xlu0 %2109 }
 0x6fe   : > { %7382 = vrcp.f32 %v2110_v56 }
 0x708   : > { %v7383_v59 = vpop.eup %7382 }
 0x709   : > { %v2112_v61 = vmul.f32 %v7383_v59, %v7381_v53 }
 0x70b   : > { %v2113_v63 = vpack.c.bf16 %v2112_v61, %v2112_v61 }
 0x70d   : > { %6640 = vmatmul.mubr.msk.bf16.vlgmr.msra.gmra.mrb[28].mxu1 %vm1933_vm5, %v2113_v63 }
 0x70e   : > { %6644 = vmatpush3.bf16.xpose.msra.mxu1 %v2167_v0  ;;  %6645 = vmatprep.mubr.msk.bf16.mxu1 %vm7794_vm0, %v7793_v7 }
 0x70f   : > { %6649 = vmatprep.subr.bf16.mxu1 %v7793_v7 }
 0x715   : > { %6646 = vmatmul.mubr.msk.bf16.vlgmr.msra.gmra.mrb[32].mxu1 %vm1832_vm1, %v1825_v3 }
 0x716   : > { %6650 = vmatpush3.bf16.xpose.msra.mxu1 %v2167_v0  ;;  %6651 = vmatprep.mubr.msk.bf16.mxu1 %vm7794_vm0, %v7793_v7 }
 0x717   : > { %6661 = vmatprep.subr.bf16.mxu1 %v7793_v7 }
 0x71d   : > { %6652 = vmatmul.mubr.msk.bf16.vlgmr.msra.gmra.mrb[36].mxu1 %vm1832_vm1, %v1827_v9 }
 0x71e   : > { %6663 = vmatprep.mubr.msk.bf16.mxu1 %vm7794_vm0, %v7793_v7 }
 0x7e0   : > { %v8402_v16 = vpop.f32.mrb[28].mxu1 }
 0x7e1   : > { %v6641_v6 = vpop.f32.mrb[29].mxu1 }
 0x7e2   : > { %v2160_v20 = vpop.f32.mrb[30].mxu1 }
 0x7e3   : > { %v6642_v8 = vpop.f32.mrb[31].mxu1 }
 0x7e8   : > { %v2203_v10 = vpop.f32.mrb[32].mxu1 }
 0x7e9   : > { %v6647_v11 = vpop.f32.mrb[33].mxu1  ;;  %v2252_v15 = vmul.f32 %v2203_v10, %v2203_v10 }
 0x7ea   : > { %v2206_v12 = vpop.f32.mrb[34].mxu1 }
 0x7eb   : > { %v6648_v1 = vpop.f32.mrb[35].mxu1 }
 0x7f0   : > { %v2246_v14 = vpop.f32.mrb[36].mxu1 }
 0x7f1   : > { %v2253_v13 = vmul.f32 %v2246_v14, %v2246_v14  ;;  %v6653_v17 = vpop.f32.mrb[37].mxu1 }
 0x7f2   : > { %v2249_v21 = vpop.f32.mrb[38].mxu1 }
 0x7f3   : > { %v2254_v22 = vadd.f32 %v2253_v13, %v2252_v15  ;;  %v6654_v24 = vpop.f32.mrb[39].mxu1  ;;  %v6892_v21 = vld [vmem:[#allocation8] ss:$8 sps:$4 sm:$0xff]  }
 0x7f4   : > { %v6897_v24 = vld [vmem:[#allocation8 + $0x14] ss:$8 sps:$4 sm:$0xff]  }
 0x7f5   : > { %7384 = vrsqrt.f32 %v2254_v22  ;;  %vm2257_vm8 = vcmp.eq.f32.partialorder %v2254_v22, inf  ;;  %v2260_v28 = vand.u32 2147483648, %v2254_v22  ;;  %vm2259_vm9 = vcmp.eq.f32.partialorder %v2254_v22, 0.0 }
 0x7ff   : > { %v7385_v26 = vpop.eup %7384 }
 0x800   : > { %v2256_v27 = vmul.f32 %v7385_v26, %v2254_v22  ;;  %v6895_v26 = vld [vmem:[#allocation8 + $0x10] ss:$8 sps:$4 sm:$0xff]  }
 0x802   : > { %v2258_v29 = vsel %vm2257_vm8, %v2254_v22, %v2256_v27  ;;  %v6894_v22 = vld [vmem:[#allocation8 + $0x4] ss:$8 sps:$4 sm:$0xff]  }
 0x803   : > { %v2261_v30 = vsel %vm2259_vm9, %v2260_v28, %v2258_v29  ;;  %v6900_v27 = vld [vmem:[#allocation8 + $0x24] ss:$8 sps:$4 sm:$0xff]   ;;  %v6903_v28 = vld [vmem:[#allocation8 + $0x34] ss:$8 sps:$4 sm:$0xff]   ;;  %v6901_v29 = vld [vmem:[#allocation8 + $0x30] ss:$8 sps:$4 sm:$0xff]  }
 0x804   : > { %v2262_v32 = vmul.f32 0.17677669, %v2261_v30  ;;  %v6906_v30 = vld [vmem:[#allocation8 + $0x44] ss:$8 sps:$4 sm:$0xff]  }
 0x806   : > { %v2263_v33 = vsel %vm1933_vm5, %v2262_v32, -inf }
 0x807   : > { %2264 = vmax.xlane.f32.xlu0 %v2263_v33  ;;  %v6909_v33 = vld [vmem:[#allocation8 + $0x54] ss:$8 sps:$4 sm:$0xff]  }
 0x81d   : > { %2325 = vrot.lane.b32.xlu0 %v1829_v60, %s7795_s27 }
 0x821   : > { %2322 = vrot.lane.b32.xlu0 %v1825_v3, %s7795_s27 }
 0x825   : > { %2374 = vrot.lane.b32.xlu0 %v1827_v9, %s7795_s27 }
 0x894   : > { %v2265_v34 = vpop.xlane.xlu0 %2264 }
 0x895   : > { %v2266_v35 = vsub.f32 %v2262_v32, %v2265_v34  ;;  %v6904_v32 = vld [vmem:[#allocation8 + $0x40] ss:$8 sps:$4 sm:$0xff]   ;;  %v6907_v34 = vld [vmem:[#allocation8 + $0x50] ss:$8 sps:$4 sm:$0xff]  }
 0x897   : > { %v2267_v36 = vmul.f32 1.442695, %v2266_v35  ;;  %v6912_v35 = vld [vmem:[#allocation8 + $0x64] ss:$8 sps:$4 sm:$0xff]  }
 0x898   : > { %v2326_v37 = vpop.permute.xlu0 %2325 }
 0x899   : > { %7386 = vpow2.f32 %v2267_v36  ;;  %v2331_v38 = vsel %vm1832_vm1, %v2326_v37, 0  ;;  %v6910_v36 = vld [vmem:[#allocation8 + $0x60] ss:$8 sps:$4 sm:$0xff]   ;;  %v6915_v37 = vld [vmem:[#allocation8 + $0x74] ss:$8 sps:$4 sm:$0xff]  }
 0x89a   : > { %6662 = vmatpush3.bf16.xpose.msra.mxu1 %v2331_v38 }
 0x89b   : > { %6673 = vmatprep.subr.bf16.mxu1 %v7793_v7 }
 0x89c   : > { %v2323_v39 = vpop.permute.xlu0 %2322 }
 0x8a0   : > { %v2375_v47 = vpop.permute.xlu0 %2374 }
 0x8a1   : > { %6664 = vmatmul.mubr.msk.bf16.vlgmr.msra.gmra.mrb[40].mxu1 %vm1832_vm1, %v2323_v39  ;;  %v6918_v39 = vld [vmem:[#allocation8 + $0x84] ss:$8 sps:$4 sm:$0xff]  }
 0x8a2   : > { %6675 = vmatprep.mubr.msk.bf16.mxu1 %vm7794_vm0, %v7793_v7 }
 0x8a3   : > { %v7387_v40 = vpop.eup %7386 }
 0x8a4   : > { %v2269_v41 = vsel %vm1933_vm5, %v7387_v40, 0.0 }
 0x8a5   : > { %2270 = vadd.xlane.f32.xlu1 %v2269_v41  ;;  %v6921_v41 = vld [vmem:[#allocation8 + $0x94] ss:$8 sps:$4 sm:$0xff]  }
 0x932   : > { %v2271_v42 = vpop.xlane.xlu1 %2270 }
 0x933   : > { %7388 = vrcp.f32 %v2271_v42  ;;  %v6919_v42 = vld [vmem:[#allocation8 + $0x90] ss:$8 sps:$4 sm:$0xff]  }
 0x93d   : > { %v7389_v18 = vpop.eup %7388 }
 0x93e   : > { %v2273_v43 = vmul.f32 %v7389_v18, %v7387_v40  ;;  %v6916_v40 = vld [vmem:[#allocation8 + $0x80] ss:$8 sps:$4 sm:$0xff]   ;;  %v6924_v18 = vld [vmem:[#allocation8 + $0xa4] ss:$8 sps:$4 sm:$0xff]  }
 0x940   : > { %v2274_v45 = vpack.c.bf16 %v2273_v43, %v2273_v43  ;;  %v6922_v43 = vld [vmem:[#allocation8 + $0xa0] ss:$8 sps:$4 sm:$0xff]  }
 0x942   : > { %6658 = vmatmul.mubr.msk.bf16.vlgmr.msra.gmra.mrb[8].mxu0 %vm1933_vm5, %v2274_v45  ;;  %v6927_v45 = vld [vmem:[#allocation8 + $0xb4] ss:$8 sps:$4 sm:$0xff]  }
 0x943   : > { %6668 = vmatpush3.bf16.xpose.msra.mxu0 %v2331_v38  ;;  %6669 = vmatprep.mubr.msk.bf16.mxu0 %vm7794_vm0, %v7793_v7  ;;  %v6913_v38 = vld [vmem:[#allocation8 + $0x70] ss:$8 sps:$4 sm:$0xff]  }
 0x944   : > { %2707 = vmatprep.subr.bf16.mxu0 %v6894_v22  ;;  %v6945_v22 = vld [vmem:[#allocation10 + $0xc] ss:$16 sps:$4 sm:$0xff]  }
 0x94a   : > { %6670 = vmatmul.mubr.msk.bf16.vlgmr.msra.gmra.mrb[12].mxu0 %vm1832_vm1, %v2375_v47  ;;  %v6925_v47 = vld [vmem:[#allocation8 + $0xb0] ss:$8 sps:$4 sm:$0xff]  }
 0x94b   : > { %2708 = vmatpush1.bf16.msra.mxu0 %v6892_v21  ;;  %v6943_v21 = vld [vmem:[#allocation10 + $0x8] ss:$16 sps:$4 sm:$0xff]  }
 0x94c   : > { %2709 = vmatprep.subr.bf16.mxu0 %v6897_v24 }
 0x94f   : > { %2710 = vmatpush1.bf16.msra.mxu0 %v6895_v26 }
 0x950   : > { %2711 = vmatprep.subr.bf16.mxu0 %v6900_v27 }
 0x974   : > { %v2367_v48 = vpop.f32.mrb[40].mxu1 }
 0x975   : > { %v6665_v49 = vpop.f32.mrb[41].mxu1  ;;  %v2419_v44 = vmul.f32 %v2367_v48, %v2367_v48  ;;  %v6930_v48 = vld [vmem:[#allocation8 + $0xc4] ss:$8 sps:$4 sm:$0xff]  }
 0x976   : > { %v2370_v50 = vpop.f32.mrb[42].mxu1  ;;  %v6928_v49 = vld [vmem:[#allocation8 + $0xc0] ss:$8 sps:$4 sm:$0xff]  }
 0x977   : > { %v6666_v51 = vpop.f32.mrb[43].mxu1  ;;  %v6933_v50 = vld [vmem:[#allocation8 + $0xd4] ss:$8 sps:$4 sm:$0xff]  }
 0x978   : > { %v6931_v51 = vld [vmem:[#allocation8 + $0xd0] ss:$8 sps:$4 sm:$0xff]  }
 0xa15   : > { %v8418_v52 = vpop.f32.mrb[8].mxu0 }
 0xa16   : > { %v6659_v53 = vpop.f32.mrb[9].mxu0 }
 0xa17   : > { %v2318_v54 = vpop.f32.mrb[10].mxu0  ;;  %v6936_v53 = vld [vmem:[#allocation8 + $0xe4] ss:$8 sps:$4 sm:$0xff]  }
 0xa18   : > { %v6660_v55 = vpop.f32.mrb[11].mxu0  ;;  %v6934_v54 = vld [vmem:[#allocation8 + $0xe0] ss:$8 sps:$4 sm:$0xff]  }
 0xa19   : > { %v6939_v55 = vld [vmem:[#allocation8 + $0xf4] ss:$8 sps:$4 sm:$0xff]  }
 0xa1d   : > { %v2413_v56 = vpop.f32.mrb[12].mxu0 }
 0xa1e   : > { %v2420_v57 = vmul.f32 %v2413_v56, %v2413_v56  ;;  %v6671_v59 = vpop.f32.mrb[13].mxu0  ;;  %v6937_v56 = vld [vmem:[#allocation8 + $0xf0] ss:$8 sps:$4 sm:$0xff]  }
 0xa1f   : > { %v2416_v60 = vpop.f32.mrb[14].mxu0 }
 0xa20   : > { %v2421_v61 = vadd.f32 %v2420_v57, %v2419_v44  ;;  %v6672_v62 = vpop.f32.mrb[15].mxu0 }
 0xa22   : > { %7390 = vrsqrt.f32 %v2421_v61  ;;  %vm2424_vm10 = vcmp.eq.f32.partialorder %v2421_v61, inf  ;;  %v2427_v25 = vand.u32 2147483648, %v2421_v61  ;;  %vm2426_vm11 = vcmp.eq.f32.partialorder %v2421_v61, 0.0 }
 0xa2c   : > { %v7391_v63 = vpop.eup %7390 }
 0xa2d   : > { %v2423_v0 = vmul.f32 %v7391_v63, %v2421_v61 }
 0xa2f   : > { %v2425_v3 = vsel %vm2424_vm10, %v2421_v61, %v2423_v0 }
 0xa30   : > { %v2428_v4 = vsel %vm2426_vm11, %v2427_v25, %v2425_v3 }
 0xa31   : > { %v2429_v5 = vmul.f32 0.17677669, %v2428_v4 }
 0xa33   : > { %v2430_v9 = vsel %vm1933_vm5, %v2429_v5, -inf }
 0xa34   : > { %2431 = vmax.xlane.f32.xlu0 %v2430_v9 }
 0xac1   : > { %v2432_v6 = vpop.xlane.xlu0 %2431 }
 0xac2   : > { %v2433_v20 = vsub.f32 %v2429_v5, %v2432_v6 }
 0xac4   : > { %v2434_v8 = vmul.f32 1.442695, %v2433_v20 }
 0xac6   : > { %7392 = vpow2.f32 %v2434_v8 }
 0xad0   : > { %v7393_v10 = vpop.eup %7392 }
 0xad1   : > { %v2436_v11 = vsel %vm1933_vm5, %v7393_v10, 0.0 }
 0xad2   : > { %2437 = vadd.xlane.f32.xlu1 %v2436_v11 }
 0xae3   : > { %2443 = vrot.lane.b32.xlu1 %v8344_v46, %s7795_s27  ;;  %v6898_v46 = vld [vmem:[#allocation8 + $0x20] ss:$8 sps:$4 sm:$0xff]  }
 0xae4   : > { %2712 = vmatpush1.bf16.msra.mxu0 %v6898_v46 }
 0xae5   : > { %2713 = vmatprep.subr.bf16.mxu0 %v6903_v28 }
 0xae8   : > { %2714 = vmatpush1.bf16.msra.mxu0 %v6901_v29 }
 0xae9   : > { %2715 = vmatprep.subr.bf16.mxu0 %v6906_v30 }
 0xaec   : > { %2716 = vmatpush1.bf16.msra.mxu0 %v6904_v32 }
 0xaed   : > { %2717 = vmatprep.subr.bf16.mxu0 %v6909_v33 }
 0xaf0   : > { %2718 = vmatpush1.bf16.msra.mxu0 %v6907_v34  ;;  %v6948_v34 = vld [vmem:[#allocation10 + $0x24] ss:$16 sps:$4 sm:$0xff]  }
 0xaf1   : > { %2719 = vmatprep.subr.bf16.mxu0 %v6912_v35  ;;  %v6946_v35 = vld [vmem:[#allocation10 + $0x20] ss:$16 sps:$4 sm:$0xff]  }
 0xaf4   : > { %2720 = vmatpush1.bf16.msra.mxu0 %v6910_v36  ;;  %v6951_v36 = vld [vmem:[#allocation10 + $0x2c] ss:$16 sps:$4 sm:$0xff]  }
 0xaf5   : > { %2721 = vmatprep.subr.bf16.mxu0 %v6915_v37  ;;  %v6949_v37 = vld [vmem:[#allocation10 + $0x28] ss:$16 sps:$4 sm:$0xff]  }
 0xaf8   : > { %2722 = vmatpush1.bf16.msra.mxu0 %v6913_v38  ;;  %v6954_v38 = vld [vmem:[#allocation10 + $0x44] ss:$16 sps:$4 sm:$0xff]  }
 0xaf9   : > { %2723 = vmatprep.subr.bf16.mxu0 %v6918_v39  ;;  %v6952_v39 = vld [vmem:[#allocation10 + $0x40] ss:$16 sps:$4 sm:$0xff]  }
 0xafc   : > { %2724 = vmatpush1.bf16.msra.mxu0 %v6916_v40  ;;  %v6957_v40 = vld [vmem:[#allocation10 + $0x4c] ss:$16 sps:$4 sm:$0xff]  }
 0xafd   : > { %2725 = vmatprep.subr.bf16.mxu0 %v6921_v41  ;;  %v6955_v41 = vld [vmem:[#allocation10 + $0x48] ss:$16 sps:$4 sm:$0xff]  }
 0xb00   : > { %2726 = vmatpush1.bf16.msra.mxu0 %v6919_v42  ;;  %v6960_v42 = vld [vmem:[#allocation10 + $0x64] ss:$16 sps:$4 sm:$0xff]  }
 0xb01   : > { %2727 = vmatprep.subr.bf16.mxu0 %v6924_v18  ;;  %v6958_v18 = vld [vmem:[#allocation10 + $0x60] ss:$16 sps:$4 sm:$0xff]  }
 0xb04   : > { %2728 = vmatpush1.bf16.msra.mxu0 %v6922_v43  ;;  %v6963_v43 = vld [vmem:[#allocation10 + $0x6c] ss:$16 sps:$4 sm:$0xff]  }
 0xb05   : > { %2729 = vmatprep.subr.bf16.mxu0 %v6927_v45  ;;  %v6961_v45 = vld [vmem:[#allocation10 + $0x68] ss:$16 sps:$4 sm:$0xff]  }
 0xb08   : > { %2730 = vmatpush1.bf16.msra.mxu0 %v6925_v47  ;;  %v6966_v47 = vld [vmem:[#allocation10 + $0x84] ss:$16 sps:$4 sm:$0xff]  }
 0xb09   : > { %2731 = vmatprep.subr.bf16.mxu0 %v6930_v48  ;;  %v6964_v48 = vld [vmem:[#allocation10 + $0x80] ss:$16 sps:$4 sm:$0xff]  }
 0xb0c   : > { %2732 = vmatpush1.bf16.msra.mxu0 %v6928_v49  ;;  %v6969_v49 = vld [vmem:[#allocation10 + $0x8c] ss:$16 sps:$4 sm:$0xff]  }
 0xb0d   : > { %2733 = vmatprep.subr.bf16.mxu0 %v6933_v50  ;;  %v6967_v50 = vld [vmem:[#allocation10 + $0x88] ss:$16 sps:$4 sm:$0xff]  }
 0xb10   : > { %2734 = vmatpush1.bf16.msra.mxu0 %v6931_v51  ;;  %v6972_v51 = vld [vmem:[#allocation10 + $0xa4] ss:$16 sps:$4 sm:$0xff]  }
 0xb11   : > { %2735 = vmatprep.subr.bf16.mxu0 %v6936_v53  ;;  %v6970_v53 = vld [vmem:[#allocation10 + $0xa0] ss:$16 sps:$4 sm:$0xff]  }
 0xb14   : > { %2736 = vmatpush1.bf16.msra.mxu0 %v6934_v54  ;;  %v6975_v54 = vld [vmem:[#allocation10 + $0xac] ss:$16 sps:$4 sm:$0xff]  }
 0xb15   : > { %2737 = vmatprep.subr.bf16.mxu0 %v6939_v55  ;;  %v6973_v55 = vld [vmem:[#allocation10 + $0xa8] ss:$16 sps:$4 sm:$0xff]  }
 0xb18   : > { %2738 = vmatpush1.bf16.msra.mxu0 %v6937_v56  ;;  %v6978_v56 = vld [vmem:[#allocation10 + $0xc4] ss:$16 sps:$4 sm:$0xff]  }
 0xb19   : > { %3283 = vmatprep.subr.bf16.mxu0 %v6945_v22  ;;  %v7018_v22 = vld [vmem:[#allocation10 + $0x1a0] ss:$16 sps:$4 sm:$0xff]  }
 0xb5f   : > { %v2438_v12 = vpop.xlane.xlu1 %2437 }
 0xb60   : > { %7394 = vrcp.f32 %v2438_v12 }
 0xb63   : > { %v2444_v1 = vpop.permute.xlu1 %2443 }
 0xb64   : > { %v2449_v14 = vsel %vm1949_vm2, %v2444_v1, 0  ;;  %vm3926_vm2 = vcmask 130048  }
 0xb65   : > { %6674 = vmatpush3.bf16.msra.mxu1 %v2449_v14  ;;  %v7433_v14 = vld [vmem:[%s8252_s11 + $0x8] sm:$0xff] }
 0xb6a   : > { %v7395_v15 = vpop.eup %7394 }
 0xb6b   : > { %v2440_v13 = vmul.f32 %v7395_v15, %v7393_v10 }
 0xb6d   : > { %v2441_v17 = vpack.c.bf16 %v2440_v13, %v2440_v13  ;;  %v6940_v13 = vld [vmem:[#allocation10] ss:$16 sps:$4 sm:$0xff]  }
 0xb6f   : > { %6676 = vmatmul.mubr.msk.bf16.vlgmr.msra.gmra.mrb[44].mxu1 %vm1933_vm5, %v2441_v17  ;;  %v6942_v17 = vld [vmem:[#allocation10 + $0x4] ss:$16 sps:$4 sm:$0xff]  }
 0xb70   : > { %3242 = vmatprep.subr.bf16.mxu1 %v6942_v17  ;;  %v7015_v17 = vld [vmem:[#allocation10 + $0x188] ss:$16 sps:$4 sm:$0xff]  }
 0xb71   : > { %3243 = vmatpush1.bf16.msra.mxu1 %v6940_v13  ;;  %v7017_v13 = vld [vmem:[#allocation10 + $0x18c] ss:$16 sps:$4 sm:$0xff]  }
 0xb72   : > { %3244 = vmatprep.subr.bf16.mxu1 %v6948_v34  ;;  %v7030_v34 = vld [vmem:[#allocation10 + $0x1e0] ss:$16 sps:$4 sm:$0xff]  }
 0xb75   : > { %3245 = vmatpush1.bf16.msra.mxu1 %v6946_v35  ;;  %v7035_v35 = vld [vmem:[#allocation10 + $0x1ec] ss:$16 sps:$4 sm:$0xff]  }
 0xb76   : > { %3246 = vmatprep.subr.bf16.mxu1 %v6954_v38 }
 0xb79   : > { %3247 = vmatpush1.bf16.msra.mxu1 %v6952_v39 }
 0xb7a   : > { %3248 = vmatprep.subr.bf16.mxu1 %v6960_v42 }
 0xb7d   : > { %3249 = vmatpush1.bf16.msra.mxu1 %v6958_v18 }
 0xb7e   : > { %3250 = vmatprep.subr.bf16.mxu1 %v6966_v47 }
 0xb81   : > { %3251 = vmatpush1.bf16.msra.mxu1 %v6964_v48 }
 0xb82   : > { %3252 = vmatprep.subr.bf16.mxu1 %v6972_v51 }
 0xb85   : > { %3253 = vmatpush1.bf16.msra.mxu1 %v6970_v53 }
 0xb86   : > { %3254 = vmatprep.subr.bf16.mxu1 %v6978_v56 }
 0xc42   : > { %v2485_v44 = vpop.f32.mrb[44].mxu1 }
 0xc43   : > { %v6882_v57 = vpack.i.bf16 %v8402_v16, %v2485_v44  ;;  %v6677_v59 = vpop.f32.mrb[45].mxu1  ;;  %v2533_v16 = vld [vmem:[%s8823_s4] sm:$0x3]  ;;  %s6558_s4 = sshll.u32 %s7933_s23, 8  ;;  %s5879_s23 = scalar_lea.sflag [#allocation4], %s8246_s10 }
 0xc44   : > { %v2488_v60 = vpop.f32.mrb[46].mxu1  ;;  %v2540_v9 = vrot.slane %v2533_v16, %v8310_v19  ;;  %v2544_v6 = vrot.slane %v2533_v16, %v8379_v58  ;;  %v6976_v44 = vld [vmem:[#allocation10 + $0xc0] ss:$16 sps:$4 sm:$0xff]   ;;  %v6979_v59 = vld [vmem:[#allocation10 + $0xc8] ss:$16 sps:$4 sm:$0xff]  }
 0xc45   : > { %6883 = vrot.lane.b32.xlu1 %v6882_v57, %s7795_s27  ;;  %v6678_v61 = vpop.f32.mrb[47].mxu1  ;;  %v6981_v57 = vld [vmem:[#allocation10 + $0xcc] ss:$16 sps:$4 sm:$0xff]   ;;  %3255 = vmatpush1.bf16.msra.mxu1 %v6976_v44  ;;  %v6984_v60 = vld [vmem:[#allocation10 + $0xe4] ss:$16 sps:$4 sm:$0xff]  }
 0xc46   : > { %v6982_v61 = vld [vmem:[#allocation10 + $0xe0] ss:$16 sps:$4 sm:$0xff]   ;;  %3256 = vmatprep.subr.bf16.mxu1 %v6984_v60 }
 0xc47   : > { %v6994_v16 = vld [vmem:[#allocation10 + $0x120] ss:$16 sps:$4 sm:$0xff]  }
 0xc48   : > { %v2750_v60 = vld [vmem:[%s8746_s16] sm:$0xf] }
 0xc49   : > { %3257 = vmatpush1.bf16.msra.mxu1 %v6982_v61 }
 0xcb7   : > { %v6884_v62 = vpop.permute.xlu1 %6883 }
 0xcb8   : > { %v6886_v63 = vunpack.i.h.bf16 %v6884_v62  ;;  %v6885_v0 = vunpack.i.l.bf16 %v6884_v62  ;;  %v6987_v62 = vld [vmem:[#allocation10 + $0xec] ss:$16 sps:$4 sm:$0xff]  }
 0xcba   : > { %v2499_v25 = vsel %vm1832_vm1, %v8367_v23, %v6886_v63  ;;  %v2500_v3 = vsel %vm1832_vm1, %v8418_v52, %v6885_v0  ;;  %v7432_v52 = vld [vmem:[%s8252_s11] sm:$0xff]  ;;  %v6985_v63 = vld [vmem:[#allocation10 + $0xe8] ss:$16 sps:$4 sm:$0xff]  }
 0xcbb   : > { %v2534_v4 = vpack.c.bf16 %v2499_v25, %v2499_v25  ;;  %v2535_v5 = vpack.c.bf16 %v2500_v3, %v2500_v3  ;;  %v6990_v0 = vld [vmem:[#allocation10 + $0x104] ss:$16 sps:$4 sm:$0xff]   ;;  %v6988_v25 = vld [vmem:[#allocation10 + $0x100] ss:$16 sps:$4 sm:$0xff]   ;;  %v6993_v3 = vld [vmem:[#allocation10 + $0x10c] ss:$16 sps:$4 sm:$0xff]  }
 0xcbc   : > { %3258 = vmatprep.subr.bf16.mxu1 %v6990_v0 }
 0xcbd   : > { %2739 = vmatprep.mubr.bf16.mxu0 %v2535_v5  ;;  %3259 = vmatpush1.bf16.msra.mxu1 %v6988_v25  ;;  %v6996_v5 = vld [vmem:[#allocation10 + $0x124] ss:$16 sps:$4 sm:$0xff]  }
 0xcbe   : > { %2740 = vmatmul.mubr.bf16.vlgmr.msra.gmra.mrb[16].mxu0 %v2534_v4  ;;  %v6991_v4 = vld [vmem:[#allocation10 + $0x108] ss:$16 sps:$4 sm:$0xff]   ;;  %3260 = vmatprep.subr.bf16.mxu1 %v6996_v5  ;;  %v2805_v5 = vrot.slane %v2750_v60, %v8310_v19 }
 0xcbf   : > { %3284 = vmatpush1.bf16.msra.mxu0 %v6943_v21  ;;  %v7020_v21 = vld [vmem:[#allocation10 + $0x1a4] ss:$16 sps:$4 sm:$0xff]  }
 0xcc0   : > { %3285 = vmatprep.subr.bf16.mxu0 %v6951_v36  ;;  %v7033_v36 = vld [vmem:[#allocation10 + $0x1e8] ss:$16 sps:$4 sm:$0xff]  }
 0xcc1   : > { %3261 = vmatpush1.bf16.msra.mxu1 %v6994_v16  ;;  %v2810_v16 = vrot.slane %v2750_v60, %v8379_v58 }
 0xcc3   : > { %3286 = vmatpush1.bf16.msra.mxu0 %v6949_v37  ;;  %v7038_v37 = vld [vmem:[#allocation11 + $0x4] ss:$16 sps:$4 sm:$0xff]  }
 0xcc4   : > { %3287 = vmatprep.subr.bf16.mxu0 %v6957_v40 }
 0xcc7   : > { %3288 = vmatpush1.bf16.msra.mxu0 %v6955_v41 }
 0xcc8   : > { %3289 = vmatprep.subr.bf16.mxu0 %v6963_v43 }
 0xccb   : > { %3290 = vmatpush1.bf16.msra.mxu0 %v6961_v45 }
 0xccc   : > { %3291 = vmatprep.subr.bf16.mxu0 %v6969_v49 }
 0xccf   : > { %3292 = vmatpush1.bf16.msra.mxu0 %v6967_v50 }
 0xcd0   : > { %3293 = vmatprep.subr.bf16.mxu0 %v6975_v54 }
 0xcd3   : > { %3294 = vmatpush1.bf16.msra.mxu0 %v6973_v55 }
 0xcd4   : > { %3295 = vmatprep.subr.bf16.mxu0 %v6981_v57 }
 0xcd7   : > { %3296 = vmatpush1.bf16.msra.mxu0 %v6979_v59 }
 0xcd8   : > { %3297 = vmatprep.subr.bf16.mxu0 %v6987_v62 }
 0xcdb   : > { %3298 = vmatpush1.bf16.msra.mxu0 %v6985_v63 }
 0xcdc   : > { %3299 = vmatprep.subr.bf16.mxu0 %v6993_v3 }
 0xcdf   : > { %3300 = vmatpush1.bf16.msra.mxu0 %v6991_v4 }
 0xd91   : > { %v2741_v20 = vpop.f32.mrb[16].mxu0 }
 0xd92   : > { %v2742_v8 = vadd.f32 %v2741_v20, %v2540_v9  ;;  %v2743_v10 = vpop.f32.mrb[17].mxu0  ;;  %v6999_v9 = vld [vmem:[#allocation10 + $0x12c] ss:$16 sps:$4 sm:$0xff]   ;;  %v7002_v20 = vld [vmem:[#allocation10 + $0x144] ss:$16 sps:$4 sm:$0xff]  }
 0xd93   : > { %v2744_v23 = vadd.f32 %v2743_v10, %v2544_v6  ;;  %v2745_v11 = vpop.f32.mrb[18].mxu0  ;;  %v6997_v6 = vld [vmem:[#allocation10 + $0x128] ss:$16 sps:$4 sm:$0xff]   ;;  %3301 = vmatprep.subr.bf16.mxu0 %v6999_v9  ;;  %v7005_v10 = vld [vmem:[#allocation10 + $0x14c] ss:$16 sps:$4 sm:$0xff]   ;;  %3262 = vmatprep.subr.bf16.mxu1 %v7002_v20  ;;  %v2821_v9 = vrot.slane %v2750_v60, %v8325_v31 }
 0xd94   : > { %v2746_v12 = vpop.f32.mrb[19].mxu0  ;;  %v2748_v1 = vadd.f32 %v7432_v52, %v2742_v8  ;;  %3302 = vmatpush1.bf16.msra.mxu0 %v6997_v6  ;;  %v7000_v8 = vld [vmem:[#allocation10 + $0x140] ss:$16 sps:$4 sm:$0xff]   ;;  %v7008_v11 = vld [vmem:[#allocation10 + $0x164] ss:$16 sps:$4 sm:$0xff]   ;;  %v2826_v6 = vrot.slane %v2750_v60, %v8389_v2 }
 0xd95   : > { %v2749_v15 = vadd.f32 %v7433_v14, %v2744_v23  ;;  %v7003_v23 = vld [vmem:[#allocation10 + $0x148] ss:$16 sps:$4 sm:$0xff]   ;;  %3263 = vmatpush1.bf16.msra.mxu1 %v7000_v8  ;;  %3303 = vmatprep.subr.bf16.mxu0 %v7005_v10  ;;  %v7006_v12 = vld [vmem:[#allocation10 + $0x160] ss:$16 sps:$4 sm:$0xff]   ;;  %v7011_v52 = vld [vmem:[#allocation10 + $0x16c] ss:$16 sps:$4 sm:$0xff]  }
 0xd96   : > { %2752 = vadd.xlane.f32.xlu1 %v2748_v1  ;;  %3264 = vmatprep.subr.bf16.mxu1 %v7008_v11  ;;  %v7014_v14 = vld [vmem:[#allocation10 + $0x184] ss:$16 sps:$4 sm:$0xff]   ;;  %v2751_v11 = vld [vmem:[%s8747_s17] sm:$0x3] }
 0xd97   : > { %2756 = vadd.xlane.f32.xlu0 %v2749_v15  ;;  %v7077_v60 = vld [vmem:[#allocation11 + $0x1a4] ss:$16 sps:$4 sm:$0xff]  }
 0xd98   : > { %3304 = vmatpush1.bf16.msra.mxu0 %v7003_v23 }
 0xd99   : > { %3265 = vmatpush1.bf16.msra.mxu1 %v7006_v12  ;;  %3305 = vmatprep.subr.bf16.mxu0 %v7011_v52 }
 0xd9a   : > { %3266 = vmatprep.subr.bf16.mxu1 %v7014_v14  ;;  %v2832_v14 = vrot.slane %v2751_v11, %v8379_v58 }
 0xe23   : > { %v2753_v24 = vpop.xlane.xlu1 %2752 }
 0xe24   : > { %v2755_v26 = vmul.f32 0.0078125, %v2753_v24  ;;  %v2757_v27 = vpop.xlane.xlu0 %2756  ;;  %v7023_v24 = vld [vmem:[#allocation10 + $0x1ac] ss:$16 sps:$4 sm:$0xff]  }
 0xe25   : > { %v2758_v46 = vmul.f32 0.0078125, %v2757_v27  ;;  %v7026_v27 = vld [vmem:[#allocation10 + $0x1c4] ss:$16 sps:$4 sm:$0xff]  }
 0xe26   : > { %v8439_v28 = vsub.f32 %v2748_v1, %v2755_v26  ;;  %v7009_v1 = vld [vmem:[#allocation10 + $0x168] ss:$16 sps:$4 sm:$0xff]  }
 0xe27   : > { %v8441_v29 = vsub.f32 %v2749_v15, %v2758_v46  ;;  %3306 = vmatpush1.bf16.msra.mxu0 %v7009_v1  ;;  %v7012_v15 = vld [vmem:[#allocation10 + $0x180] ss:$16 sps:$4 sm:$0xff]   ;;  %v7021_v26 = vld [vmem:[#allocation10 + $0x1a8] ss:$16 sps:$4 sm:$0xff]   ;;  %v2816_v1 = vrot.slane %v2751_v11, %v8310_v19 }
 0xe28   : > { %v2761_v30 = vmul.f32 %v8439_v28, %v8439_v28  ;;  %3267 = vmatpush1.bf16.msra.mxu1 %v7012_v15  ;;  %3307 = vmatprep.subr.bf16.mxu0 %v7017_v13  ;;  %v7024_v46 = vld [vmem:[#allocation10 + $0x1c0] ss:$16 sps:$4 sm:$0xff]  }
 0xe29   : > { %v2766_v32 = vmul.f32 %v8441_v29, %v8441_v29  ;;  %v2771_v33 = vmul.f32 %v8441_v29, %v8439_v28  ;;  %3268 = vmatprep.subr.bf16.mxu1 %v7020_v21 }
 0xe2a   : > { %2762 = vadd.xlane.f32.xlu0 %v2761_v30  ;;  %v7027_v30 = vld [vmem:[#allocation10 + $0x1c8] ss:$16 sps:$4 sm:$0xff]  }
 0xe2b   : > { %3308 = vmatpush1.bf16.msra.mxu0 %v7015_v17 }
 0xe2c   : > { %3269 = vmatpush1.bf16.msra.mxu1 %v7018_v22  ;;  %3309 = vmatprep.subr.bf16.mxu0 %v7023_v24 }
 0xe2d   : > { %3270 = vmatprep.subr.bf16.mxu1 %v7026_v27 }
 0xe2e   : > { %2767 = vadd.xlane.f32.xlu0 %v2766_v32  ;;  %v7029_v32 = vld [vmem:[#allocation10 + $0x1cc] ss:$16 sps:$4 sm:$0xff]  }
 0xe2f   : > { %3310 = vmatpush1.bf16.msra.mxu0 %v7021_v26  ;;  %v845_v26 = vld [vmem:[%s8260_s25 + $0x8] sm:$0xff] }
 0xe30   : > { %3271 = vmatpush1.bf16.msra.mxu1 %v7024_v46  ;;  %3311 = vmatprep.subr.bf16.mxu0 %v7029_v32 }
 0xe32   : > { %2772 = vadd.xlane.f32.xlu0 %v2771_v33  ;;  %v7032_v33 = vld [vmem:[#allocation10 + $0x1e4] ss:$16 sps:$4 sm:$0xff]  }
 0xe33   : > { %3312 = vmatpush1.bf16.msra.mxu0 %v7027_v30  ;;  %3272 = vmatprep.subr.bf16.mxu1 %v7032_v33  ;;  %v7036_v30 = vld [vmem:[#allocation11] ss:$16 sps:$4 sm:$0xff]  }
 0xe34   : > { %3313 = vmatprep.subr.bf16.mxu0 %v7035_v35  ;;  %3273 = vmatpush1.bf16.msra.mxu1 %v7030_v34  ;;  %v7041_v34 = vld [vmem:[#allocation11 + $0x24] ss:$16 sps:$4 sm:$0xff]   ;;  %v7039_v35 = vld [vmem:[#allocation11 + $0x20] ss:$16 sps:$4 sm:$0xff]  }
 0xe35   : > { %3732 = vmatprep.subr.bf16.mxu1 %v7038_v37  ;;  %v7042_v37 = vld [vmem:[#allocation11 + $0x40] ss:$16 sps:$4 sm:$0xff]  }
 0xe37   : > { %3314 = vmatpush1.bf16.msra.mxu0 %v7033_v36  ;;  %v7044_v36 = vld [vmem:[#allocation11 + $0x44] ss:$16 sps:$4 sm:$0xff]  }
 0xeb7   : > { %v2763_v38 = vpop.xlane.xlu0 %2762 }
 0xeb8   : > { %v2764_v40 = vmul.f32 0.0078125, %v2763_v38  ;;  %v7047_v38 = vld [vmem:[#allocation11 + $0x64] ss:$16 sps:$4 sm:$0xff]  }
 0xeba   : > { %v2765_v43 = vadd.f32 1e-05, %v2764_v40  ;;  %v7050_v40 = vld [vmem:[#allocation11 + $0x84] ss:$16 sps:$4 sm:$0xff]  }
 0xebb   : > { %v2768_v39 = vpop.xlane.xlu0 %2767 }
 0xebc   : > { %v2769_v41 = vmul.f32 0.0078125, %v2768_v39  ;;  %v7045_v39 = vld [vmem:[#allocation11 + $0x60] ss:$16 sps:$4 sm:$0xff]  }
 0xebe   : > { %v2770_v42 = vadd.f32 1e-05, %v2769_v41  ;;  %v7048_v41 = vld [vmem:[#allocation11 + $0x80] ss:$16 sps:$4 sm:$0xff]  }
 0xebf   : > { %v2773_v18 = vpop.xlane.xlu0 %2772 }
 0xec0   : > { %v2774_v45 = vmul.f32 0.0078125, %v2773_v18  ;;  %v2775_v47 = vmul.f32 %v2770_v42, %v2765_v43  ;;  %v2785_v56 = vadd.f32 %v2770_v42, %v2765_v43  ;;  %v7051_v18 = vld [vmem:[#allocation11 + $0xa0] ss:$16 sps:$4 sm:$0xff]  }
 0xec2   : > { %v2776_v48 = vmul.f32 %v2774_v45, %v2774_v45  ;;  %v2794_v63 = vsub.f32 0.0, %v2774_v45  ;;  %v7054_v45 = vld [vmem:[#allocation11 + $0xc0] ss:$16 sps:$4 sm:$0xff]  }
 0xec4   : > { %v2777_v49 = vsub.f32 %v2775_v47, %v2776_v48  ;;  %v7059_v47 = vld [vmem:[#allocation11 + $0xe4] ss:$16 sps:$4 sm:$0xff]   ;;  %v7057_v48 = vld [vmem:[#allocation11 + $0xe0] ss:$16 sps:$4 sm:$0xff]  }
 0xec6   : > { %7396 = vrsqrt.f32 %v2777_v49  ;;  %vm2780_vm12 = vcmp.eq.f32.partialorder %v2777_v49, inf  ;;  %v2783_v53 = vand.u32 2147483648, %v2777_v49  ;;  %vm2782_vm13 = vcmp.eq.f32.partialorder %v2777_v49, 0.0 }
 0xed0   : > { %v7397_v50 = vpop.eup %7396 }
 0xed1   : > { %v2779_v51 = vmul.f32 %v7397_v50, %v2777_v49  ;;  %v7060_v50 = vld [vmem:[#allocation11 + $0x100] ss:$16 sps:$4 sm:$0xff]  }
 0xed3   : > { %v2781_v54 = vsel %vm2780_vm12, %v2777_v49, %v2779_v51  ;;  %v7065_v51 = vld [vmem:[#allocation11 + $0x124] ss:$16 sps:$4 sm:$0xff]  }
 0xed4   : > { %v2784_v55 = vsel %vm2782_vm13, %v2783_v53, %v2781_v54  ;;  %v7063_v53 = vld [vmem:[#allocation11 + $0x120] ss:$16 sps:$4 sm:$0xff]   ;;  %v7068_v54 = vld [vmem:[#allocation11 + $0x144] ss:$16 sps:$4 sm:$0xff]  }
 0xed5   : > { %v2786_v44 = vmul.f32 2.0, %v2784_v55  ;;  %v2790_v61 = vadd.f32 %v2784_v55, %v2770_v42  ;;  %v2792_v62 = vadd.f32 %v2784_v55, %v2765_v43  ;;  %v7053_v42 = vld [vmem:[#allocation11 + $0xa4] ss:$16 sps:$4 sm:$0xff]   ;;  %v7066_v55 = vld [vmem:[#allocation11 + $0x140] ss:$16 sps:$4 sm:$0xff]  }
 0xed6   : > { %v7056_v43 = vld [vmem:[#allocation11 + $0xc4] ss:$16 sps:$4 sm:$0xff]  }
 0xed7   : > { %v2787_v57 = vadd.f32 %v2786_v44, %v2785_v56  ;;  %v7071_v56 = vld [vmem:[#allocation11 + $0x164] ss:$16 sps:$4 sm:$0xff]   ;;  %v7069_v44 = vld [vmem:[#allocation11 + $0x160] ss:$16 sps:$4 sm:$0xff]  }
 0xed9   : > { %v2788_v59 = vmul.f32 %v2787_v57, %v2777_v49  ;;  %v7062_v49 = vld [vmem:[#allocation11 + $0x104] ss:$16 sps:$4 sm:$0xff]  }
 0xeda   : > { %v7074_v57 = vld [vmem:[#allocation11 + $0x184] ss:$16 sps:$4 sm:$0xff]  }
 0xedb   : > { %7398 = vrsqrt.f32 %v2788_v59  ;;  %v7072_v59 = vld [vmem:[#allocation11 + $0x180] ss:$16 sps:$4 sm:$0xff]  }
 0xee5   : > { %v7399_v0 = vpop.eup %7398 }
 0xee6   : > { %v2791_v25 = vmul.f32 %v7399_v0, %v2790_v61  ;;  %v2793_v3 = vmul.f32 %v7399_v0, %v2792_v62  ;;  %v2795_v4 = vmul.f32 %v7399_v0, %v2794_v63  ;;  %v7075_v61 = vld [vmem:[#allocation11 + $0x1a0] ss:$16 sps:$4 sm:$0xff]   ;;  %v7080_v62 = vld [vmem:[#allocation11 + $0x1c4] ss:$16 sps:$4 sm:$0xff]  }
 0xee7   : > { %v7078_v63 = vld [vmem:[#allocation11 + $0x1c0] ss:$16 sps:$4 sm:$0xff]   ;;  %v7083_v0 = vld [vmem:[#allocation11 + $0x1e4] ss:$16 sps:$4 sm:$0xff]  }
 0xee8   : > { %v2796_v20 = vmul.f32 %v2791_v25, %v8439_v28  ;;  %v2797_v8 = vmul.f32 %v2795_v4, %v8441_v29  ;;  %v2799_v10 = vmul.f32 %v2795_v4, %v8439_v28  ;;  %v2800_v23 = vmul.f32 %v2793_v3, %v8441_v29  ;;  %v847_v28 = vld [vmem:[%s8260_s25 + $0x18] sm:$0xff]  ;;  %v7081_v25 = vld [vmem:[#allocation11 + $0x1e0] ss:$16 sps:$4 sm:$0xff]  }
 0xee9   : > { %v3390_v33 = vpack.c.bf16 %v847_v28, %v845_v26  ;;  %v844_v3 = vld [vmem:[%s8260_s25] sm:$0xff]  ;;  %v846_v4 = vld [vmem:[%s8260_s25 + $0x10] sm:$0xff]  ;;  %s8828_s25 = sld [smem:[#allocation38_spill]] }
 0xeea   : > { %v2798_v12 = vadd.f32 %v2797_v8, %v2796_v20  ;;  %v2801_v52 = vadd.f32 %v2800_v23, %v2799_v10 }
 0xeec   : > { %v2806_v15 = vmul.f32 %v2805_v5, %v2798_v12  ;;  %v2811_v13 = vmul.f32 %v2810_v16, %v2801_v52  ;;  %v2822_v17 = vmul.f32 %v2821_v9, %v2798_v12  ;;  %v2827_v21 = vmul.f32 %v2826_v6, %v2801_v52  ;;  %v8486_v16 = vld [vmem:[%s8737_s7] sm:$0xf] }
 0xeed   : > { %v8477_v5 = vpack.c.bf16 %v846_v4, %v844_v3  ;;  %v2905_v9 = vrot.slane %v8486_v16, %v8310_v19  ;;  %v7120_v3 = vld [vmem:[#allocation11 + $0x188] ss:$16 sps:$4 sm:$0xff]   ;;  %v7125_v4 = vld [vmem:[#allocation11 + $0x1ac] ss:$16 sps:$4 sm:$0xff]  }
 0xeee   : > { %v2828_v22 = vadd.f32 %v2827_v21, %v2822_v17  ;;  %v2812_v24 = vadd.f32 %v2811_v13, %v2806_v15  ;;  %v8498_v15 = vld [vmem:[%s8739_s9] sm:$0xf] }
 0xeef   : > { %v3395_v13 = vrot.slane %v8498_v15, %v8310_v19  ;;  %v3399_v21 = vrot.slane %v8498_v15, %v8379_v58 }
 0xef0   : > { %v8467_v27 = vadd.f32 %v2832_v14, %v2828_v22  ;;  %v8469_v29 = vadd.f32 %v2816_v1, %v2812_v24 }
 0xef2   : > { %v2900_v46 = vpack.c.bf16 %v8467_v27, %v8467_v27  ;;  %v2899_v32 = vpack.c.bf16 %v8469_v29, %v8469_v29 }
 0xef4   : > { %3274 = vmatprep.mubr.bf16.mxu1 %v2900_v46  ;;  %3315 = vmatprep.mubr.bf16.mxu0 %v2900_v46 }
 0xef5   : > { %3275 = vmatmul.mubr.bf16.vlgmr.msra.gmra.mrb[48].mxu1 %v2899_v32  ;;  %3316 = vmatmul.mubr.bf16.vlgmr.msra.gmra.mrb[20].mxu0 %v2899_v32 }
 0xef6   : > { %3733 = vmatpush1.bf16.msra.mxu1 %v7036_v30  ;;  %3764 = vmatprep.mubr.bf16.mxu1 %v3390_v33 }
 0xef7   : > { %3734 = vmatprep.subr.bf16.mxu1 %v7041_v34  ;;  %3807 = vmatprep.mubr.bf16.mxu0 %v3390_v33 }
 0xefa   : > { %3735 = vmatpush1.bf16.msra.mxu1 %v7039_v35 }
 0xefb   : > { %3736 = vmatprep.subr.bf16.mxu1 %v7044_v36  ;;  %v2913_v36 = vrot.slane %v8486_v16, %v8325_v31 }
 0xefe   : > { %3737 = vmatpush1.bf16.msra.mxu1 %v7042_v37 }
 0xeff   : > { %3738 = vmatprep.subr.bf16.mxu1 %v7047_v38 }
 0xf02   : > { %3739 = vmatpush1.bf16.msra.mxu1 %v7045_v39  ;;  %v7084_v39 = vld [vmem:[#allocation11 + $0x8] ss:$16 sps:$4 sm:$0xff]  }
 0xf03   : > { %3740 = vmatprep.subr.bf16.mxu1 %v7050_v40  ;;  %v7086_v40 = vld [vmem:[#allocation11 + $0xc] ss:$16 sps:$4 sm:$0xff]  }
 0xf04   : > { %3775 = vmatprep.subr.bf16.mxu0 %v7086_v40 }
 0xf05   : > { %3776 = vmatpush1.bf16.msra.mxu0 %v7084_v39 }
 0xf06   : > { %3741 = vmatpush1.bf16.msra.mxu1 %v7048_v41  ;;  %v7089_v41 = vld [vmem:[#allocation11 + $0x2c] ss:$16 sps:$4 sm:$0xff]  }
 0xf07   : > { %3742 = vmatprep.subr.bf16.mxu1 %v7053_v42  ;;  %v7087_v42 = vld [vmem:[#allocation11 + $0x28] ss:$16 sps:$4 sm:$0xff]   ;;  %3777 = vmatprep.subr.bf16.mxu0 %v7089_v41 }
 0xf09   : > { %3778 = vmatpush1.bf16.msra.mxu0 %v7087_v42  ;;  %v3403_v42 = vrot.slane %v8498_v15, %v8325_v31 }
 0xf0a   : > { %3743 = vmatpush1.bf16.msra.mxu1 %v7051_v18  ;;  %v7092_v18 = vld [vmem:[#allocation11 + $0x4c] ss:$16 sps:$4 sm:$0xff]  }
 0xf0b   : > { %3744 = vmatprep.subr.bf16.mxu1 %v7056_v43  ;;  %v7090_v43 = vld [vmem:[#allocation11 + $0x48] ss:$16 sps:$4 sm:$0xff]   ;;  %3779 = vmatprep.subr.bf16.mxu0 %v7092_v18 }
 0xf0d   : > { %3780 = vmatpush1.bf16.msra.mxu0 %v7090_v43 }
 0xf0e   : > { %3745 = vmatpush1.bf16.msra.mxu1 %v7054_v45  ;;  %v7095_v45 = vld [vmem:[#allocation11 + $0x6c] ss:$16 sps:$4 sm:$0xff]  }
 0xf0f   : > { %3746 = vmatprep.subr.bf16.mxu1 %v7059_v47  ;;  %v7093_v47 = vld [vmem:[#allocation11 + $0x68] ss:$16 sps:$4 sm:$0xff]   ;;  %3781 = vmatprep.subr.bf16.mxu0 %v7095_v45 }
 0xf11   : > { %3782 = vmatpush1.bf16.msra.mxu0 %v7093_v47 }
 0xf12   : > { %3747 = vmatpush1.bf16.msra.mxu1 %v7057_v48  ;;  %v7098_v48 = vld [vmem:[#allocation11 + $0x8c] ss:$16 sps:$4 sm:$0xff]  }
 0xf13   : > { %3748 = vmatprep.subr.bf16.mxu1 %v7062_v49  ;;  %v7096_v49 = vld [vmem:[#allocation11 + $0x88] ss:$16 sps:$4 sm:$0xff]   ;;  %3783 = vmatprep.subr.bf16.mxu0 %v7098_v48 }
 0xf15   : > { %3784 = vmatpush1.bf16.msra.mxu0 %v7096_v49 }
 0xf16   : > { %3749 = vmatpush1.bf16.msra.mxu1 %v7060_v50  ;;  %v7101_v50 = vld [vmem:[#allocation11 + $0xac] ss:$16 sps:$4 sm:$0xff]  }
 0xf17   : > { %3750 = vmatprep.subr.bf16.mxu1 %v7065_v51  ;;  %v7099_v51 = vld [vmem:[#allocation11 + $0xa8] ss:$16 sps:$4 sm:$0xff]   ;;  %3785 = vmatprep.subr.bf16.mxu0 %v7101_v50 }
 0xf19   : > { %3786 = vmatpush1.bf16.msra.mxu0 %v7099_v51 }
 0xf1a   : > { %3751 = vmatpush1.bf16.msra.mxu1 %v7063_v53  ;;  %v7104_v53 = vld [vmem:[#allocation11 + $0xcc] ss:$16 sps:$4 sm:$0xff]  }
 0xf1b   : > { %3752 = vmatprep.subr.bf16.mxu1 %v7068_v54  ;;  %v7102_v54 = vld [vmem:[#allocation11 + $0xc8] ss:$16 sps:$4 sm:$0xff]   ;;  %3787 = vmatprep.subr.bf16.mxu0 %v7104_v53  ;;  %v3407_v53 = vrot.slane %v8498_v15, %v8389_v2 }
 0xf1d   : > { %3788 = vmatpush1.bf16.msra.mxu0 %v7102_v54 }
 0xf1e   : > { %3753 = vmatpush1.bf16.msra.mxu1 %v7066_v55  ;;  %v7107_v55 = vld [vmem:[#allocation11 + $0xec] ss:$16 sps:$4 sm:$0xff]  }
 0xf1f   : > { %3754 = vmatprep.subr.bf16.mxu1 %v7071_v56  ;;  %v7105_v56 = vld [vmem:[#allocation11 + $0xe8] ss:$16 sps:$4 sm:$0xff]   ;;  %3789 = vmatprep.subr.bf16.mxu0 %v7107_v55 }
 0xf21   : > { %3790 = vmatpush1.bf16.msra.mxu0 %v7105_v56 }
 0xf22   : > { %3755 = vmatpush1.bf16.msra.mxu1 %v7069_v44  ;;  %v7110_v44 = vld [vmem:[#allocation11 + $0x10c] ss:$16 sps:$4 sm:$0xff]  }
 0xf23   : > { %3756 = vmatprep.subr.bf16.mxu1 %v7074_v57  ;;  %v7108_v57 = vld [vmem:[#allocation11 + $0x108] ss:$16 sps:$4 sm:$0xff]   ;;  %3791 = vmatprep.subr.bf16.mxu0 %v7110_v44 }
 0xf25   : > { %3792 = vmatpush1.bf16.msra.mxu0 %v7108_v57 }
 0xf26   : > { %3757 = vmatpush1.bf16.msra.mxu1 %v7072_v59  ;;  %v7113_v59 = vld [vmem:[#allocation11 + $0x12c] ss:$16 sps:$4 sm:$0xff]  }
 0xf27   : > { %3758 = vmatprep.subr.bf16.mxu1 %v7077_v60  ;;  %v7111_v60 = vld [vmem:[#allocation11 + $0x128] ss:$16 sps:$4 sm:$0xff]   ;;  %3793 = vmatprep.subr.bf16.mxu0 %v7113_v59 }
 0xf29   : > { %3794 = vmatpush1.bf16.msra.mxu0 %v7111_v60 }
 0xf2a   : > { %3759 = vmatpush1.bf16.msra.mxu1 %v7075_v61  ;;  %v7116_v61 = vld [vmem:[#allocation11 + $0x14c] ss:$16 sps:$4 sm:$0xff]  }
 0xf2b   : > { %3760 = vmatprep.subr.bf16.mxu1 %v7080_v62  ;;  %v7114_v62 = vld [vmem:[#allocation11 + $0x148] ss:$16 sps:$4 sm:$0xff]   ;;  %3795 = vmatprep.subr.bf16.mxu0 %v7116_v61 }
 0xf2d   : > { %3796 = vmatpush1.bf16.msra.mxu0 %v7114_v62 }
 0xf2e   : > { %3761 = vmatpush1.bf16.msra.mxu1 %v7078_v63  ;;  %v7119_v63 = vld [vmem:[#allocation11 + $0x16c] ss:$16 sps:$4 sm:$0xff]  }
 0xf2f   : > { %3762 = vmatprep.subr.bf16.mxu1 %v7083_v0  ;;  %v7117_v0 = vld [vmem:[#allocation11 + $0x168] ss:$16 sps:$4 sm:$0xff]   ;;  %3797 = vmatprep.subr.bf16.mxu0 %v7119_v63 }
 0xf31   : > { %3798 = vmatpush1.bf16.msra.mxu0 %v7117_v0 }
 0xf32   : > { %3763 = vmatpush1.bf16.msra.mxu1 %v7081_v25  ;;  %v7122_v25 = vld [vmem:[#allocation11 + $0x18c] ss:$16 sps:$4 sm:$0xff]  }
 0xf33   : > { %6679 = vmatprep.subr.bf16.mxu1 %v7793_v7  ;;  %3799 = vmatprep.subr.bf16.mxu0 %v7122_v25 }
 0xf35   : > { %3765 = vmatmul.mubr.bf16.vlgmr.msra.gmra.mrb[52].mxu1 %v8477_v5  ;;  %3800 = vmatpush1.bf16.msra.mxu0 %v7120_v3 }
 0xf36   : > { %6681 = vmatprep.mubr.msk.bf16.mxu1 %vm7794_vm0, %v7793_v7  ;;  %3801 = vmatprep.subr.bf16.mxu0 %v7125_v4 }
 0xfc8   : > { %v3276_v6 = vpop.f32.mrb[48].mxu1  ;;  %v3317_v20 = vpop.f32.mrb[20].mxu0 }
 0xfc9   : > { %v3277_v8 = vadd.f32 %v3276_v6, %v2905_v9  ;;  %v8490_v10 = vpop.f32.mrb[49].mxu1  ;;  %v8492_v23 = vpop.f32.mrb[21].mxu0  ;;  %v3318_v37 = vadd.f32 %v3317_v20, %v2913_v36  ;;  %v7123_v9 = vld [vmem:[#allocation11 + $0x1a8] ss:$16 sps:$4 sm:$0xff]   ;;  %v7128_v6 = vld [vmem:[#allocation11 + $0x1cc] ss:$16 sps:$4 sm:$0xff]  }
 0xfca   : > { %v3280_v11 = vpop.f32.mrb[50].mxu1  ;;  %v3321_v12 = vpop.f32.mrb[22].mxu0  ;;  %3802 = vmatpush1.bf16.msra.mxu0 %v7123_v9  ;;  %v7126_v20 = vld [vmem:[#allocation11 + $0x1c8] ss:$16 sps:$4 sm:$0xff]  }
 0xfcb   : > { %v3818_v52 = vpack.c.bf16 %v3277_v8, %v3277_v8  ;;  %v3281_v1 = vpop.f32.mrb[51].mxu1  ;;  %v3322_v14 = vpop.f32.mrb[23].mxu0  ;;  %v8517_v38 = vpack.c.bf16 %v3318_v37, %v3318_v37  ;;  %3803 = vmatprep.subr.bf16.mxu0 %v7128_v6  ;;  %v7131_v8 = vld [vmem:[#allocation11 + $0x1ec] ss:$16 sps:$4 sm:$0xff]   ;;  %v7129_v11 = vld [vmem:[#allocation11 + $0x1e8] ss:$16 sps:$4 sm:$0xff]  }
 0xfcd   : > { %3983 = vrot.lane.b32.xlu1 %v3818_v52, %s7795_s27 }
 0xfce   : > { %3804 = vmatpush1.bf16.msra.mxu0 %v7126_v20 }
 0xfcf   : > { %3805 = vmatprep.subr.bf16.mxu0 %v7131_v8 }
 0xfd2   : > { %3806 = vmatpush1.bf16.msra.mxu0 %v7129_v11 }
 0xfd3   : > { %6727 = vmatprep.subr.bf16.mxu0 %v7793_v7 }
 0xfd5   : > { %3808 = vmatmul.mubr.bf16.vlgmr.msra.gmra.mrb[24].mxu0 %v8477_v5 }
 0xfd6   : > { %6729 = vmatprep.mubr.msk.bf16.mxu0 %vm7794_vm0, %v7793_v7 }
0x1008   : > { %v3766_v17 = vpop.f32.mrb[52].mxu1 }
0x1009   : > { %v3768_v22 = vpop.f32.mrb[53].mxu1  ;;  %v3767_v26 = vadd.f32 %v3766_v17, %v3395_v13 }
0x100a   : > { %v3770_v24 = vpop.f32.mrb[54].mxu1  ;;  %v3769_v30 = vadd.f32 %v3768_v22, %v3399_v21 }
0x100b   : > { %v3771_v28 = vadd.f32 %v3770_v24, %v3395_v13  ;;  %v3772_v46 = vpop.f32.mrb[55].mxu1 }
0x100c   : > { %v3773_v32 = vadd.f32 %v3772_v46, %v3399_v21 }
0x100d   : > { %v8504_v33 = vpack.c.bf16 %v3771_v28, %v3767_v26 }
0x100e   : > { %v8506_v34 = vpack.c.bf16 %v3773_v32, %v3769_v30 }
0x100f   : > { %v3830_v35 = vsel %vm1832_vm1, %v8504_v33, 0 }
0x1010   : > { %6680 = vmatpush3.bf16.xpose.msra.mxu1 %v3830_v35 }
0x1011   : > { %6685 = vmatprep.subr.bf16.mxu1 %v7793_v7 }
0x1017   : > { %6682 = vmatmul.mubr.msk.bf16.vlgmr.msra.gmra.mrb[56].mxu1 %vm1832_vm1, %v3818_v52 }
0x1018   : > { %6686 = vmatpush3.bf16.xpose.msra.mxu1 %v3830_v35  ;;  %6687 = vmatprep.mubr.msk.bf16.mxu1 %vm7794_vm0, %v7793_v7 }
0x1019   : > { %6691 = vmatprep.subr.bf16.mxu1 %v7793_v7 }
0x101f   : > { %6688 = vmatmul.mubr.msk.bf16.vlgmr.msra.gmra.mrb[60].mxu1 %vm1832_vm1, %v8517_v38 }
0x1020   : > { %6693 = vmatprep.mubr.msk.bf16.mxu1 %vm7794_vm0, %v7793_v7 }
0x10a8   : > { %v3809_v18 = vpop.f32.mrb[24].mxu0 }
0x10a9   : > { %v3810_v43 = vadd.f32 %v3809_v18, %v3403_v42  ;;  %v3811_v45 = vpop.f32.mrb[25].mxu0 }
0x10aa   : > { %v3813_v47 = vpop.f32.mrb[26].mxu0  ;;  %v3812_v54 = vadd.f32 %v3811_v45, %v3407_v53 }
0x10ab   : > { %v3814_v48 = vadd.f32 %v3813_v47, %v3403_v42  ;;  %v3815_v55 = vpop.f32.mrb[27].mxu0 }
0x10ac   : > { %v3816_v56 = vadd.f32 %v3815_v55, %v3407_v53 }
0x10ad   : > { %v8530_v49 = vpack.c.bf16 %v3814_v48, %v3810_v43  ;;  %v4154_v48 = vsel %vm1832_vm1, %v8506_v34, 0 }
0x10ae   : > { %v8537_v44 = vpack.c.bf16 %v3816_v56, %v3812_v54 }
0x10af   : > { %6692 = vmatpush3.bf16.msra.mxu1 %v8530_v49 }
0x10b0   : > { %6697 = vmatprep.subr.bf16.mxu1 %v7793_v7  ;;  %6728 = vmatpush3.bf16.msra.mxu0 %v8537_v44 }
0x10b1   : > { %6739 = vmatprep.subr.bf16.mxu0 %v7793_v7 }
0x10ea   : > { %v3866_v12 = vpop.f32.mrb[56].mxu1 }
0x10eb   : > { %v6683_v52 = vpop.f32.mrb[57].mxu1  ;;  %v3915_v17 = vmul.f32 %v3866_v12, %v3866_v12 }
0x10ec   : > { %v3869_v1 = vpop.f32.mrb[58].mxu1 }
0x10ed   : > { %v6684_v14 = vpop.f32.mrb[59].mxu1 }
0x10f2   : > { %v3909_v13 = vpop.f32.mrb[60].mxu1 }
0x10f3   : > { %v3916_v21 = vmul.f32 %v3909_v13, %v3909_v13  ;;  %v6689_v22 = vpop.f32.mrb[61].mxu1 }
0x10f4   : > { %v3912_v24 = vpop.f32.mrb[62].mxu1 }
0x10f5   : > { %v3917_v26 = vadd.f32 %v3916_v21, %v3915_v17  ;;  %v6690_v28 = vpop.f32.mrb[63].mxu1 }
0x10f7   : > { %7400 = vrsqrt.f32 %v3917_v26  ;;  %vm3920_vm14 = vcmp.eq.f32.partialorder %v3917_v26, inf  ;;  %v3923_v32 = vand.u32 2147483648, %v3917_v26  ;;  %vm3922_vm15 = vcmp.eq.f32.partialorder %v3917_v26, 0.0 }
0x1101   : > { %v7401_v46 = vpop.eup %7400 }
0x1102   : > { %v3919_v30 = vmul.f32 %v7401_v46, %v3917_v26 }
0x1104   : > { %v3921_v5 = vsel %vm3920_vm14, %v3917_v26, %v3919_v30 }
0x1105   : > { %v3924_v35 = vsel %vm3922_vm15, %v3923_v32, %v3921_v5 }
0x1106   : > { %v3925_v36 = vmul.f32 0.17677669, %v3924_v35 }
0x1108   : > { %v3927_v37 = vsel %vm3926_vm2, %v3925_v36, -inf }
0x1109   : > { %3928 = vmax.xlane.f32.xlu0 %v3927_v37  ;;  %v2909_v37 = vrot.slane %v8486_v16, %v8379_v58 }
0x1196   : > { %v3929_v39 = vpop.xlane.xlu0 %3928 }
0x1197   : > { %v3930_v40 = vsub.f32 %v3925_v36, %v3929_v39  ;;  %v3279_v39 = vadd.f32 %v8490_v10, %v2909_v37 }
0x1199   : > { %v3931_v41 = vmul.f32 1.442695, %v3930_v40  ;;  %v2917_v40 = vrot.slane %v8486_v16, %v8389_v2 }
0x119b   : > { %7402 = vpow2.f32 %v3931_v41  ;;  %v3819_v41 = vpack.c.bf16 %v3279_v39, %v3279_v39  ;;  %v3320_v42 = vadd.f32 %v8492_v23, %v2917_v40 }
0x119d   : > { %v3821_v18 = vpack.c.bf16 %v3320_v42, %v3320_v42 }
0x11a5   : > { %v7403_v50 = vpop.eup %7402 }
0x11a6   : > { %v3933_v51 = vsel %vm3926_vm2, %v7403_v50, 0.0 }
0x11a7   : > { %3934 = vadd.xlane.f32.xlu0 %v3933_v51 }
0x11bd   : > { %3986 = vrot.lane.b32.xlu0 %v8504_v33, %s7795_s27  ;;  %v3984_v33 = vpop.permute.xlu1 %3983 }
0x11c1   : > { %4035 = vrot.lane.b32.xlu0 %v8517_v38, %s7795_s27 }
0x1234   : > { %v3935_v57 = vpop.xlane.xlu0 %3934 }
0x1235   : > { %7404 = vrcp.f32 %v3935_v57 }
0x1238   : > { %v3987_v15 = vpop.permute.xlu0 %3986 }
0x1239   : > { %v3992_v62 = vsel %vm1832_vm1, %v3987_v15, 0 }
0x123c   : > { %v4036_v38 = vpop.permute.xlu0 %4035 }
0x123f   : > { %v7405_v59 = vpop.eup %7404 }
0x1240   : > { %v3937_v60 = vmul.f32 %v7405_v59, %v7403_v50 }
0x1242   : > { %v3938_v61 = vpack.c.bf16 %v3937_v60, %v3937_v60 }
0x1244   : > { %6694 = vmatmul.mubr.msk.bf16.vlgmr.msra.gmra.mrb[64].mxu1 %vm3926_vm2, %v3938_v61 }
0x1245   : > { %6698 = vmatpush3.bf16.xpose.msra.mxu1 %v3992_v62  ;;  %6699 = vmatprep.mubr.msk.bf16.mxu1 %vm7794_vm0, %v7793_v7 }
0x1246   : > { %6703 = vmatprep.subr.bf16.mxu1 %v7793_v7 }
0x124c   : > { %6700 = vmatmul.mubr.msk.bf16.vlgmr.msra.gmra.mrb[68].mxu1 %vm1832_vm1, %v3984_v33 }
0x124d   : > { %6704 = vmatpush3.bf16.xpose.msra.mxu1 %v3992_v62  ;;  %6705 = vmatprep.mubr.msk.bf16.mxu1 %vm7794_vm0, %v7793_v7 }
0x124e   : > { %6709 = vmatprep.subr.bf16.mxu1 %v7793_v7 }
0x1254   : > { %6706 = vmatmul.mubr.msk.bf16.vlgmr.msra.gmra.mrb[72].mxu1 %vm1832_vm1, %v4036_v38 }
0x1255   : > { %6711 = vmatprep.mubr.msk.bf16.mxu1 %vm7794_vm0, %v7793_v7 }
0x1317   : > { %v8557_v63 = vpop.f32.mrb[64].mxu1 }
0x1318   : > { %v6695_v0 = vpop.f32.mrb[65].mxu1 }
0x1319   : > { %v3979_v25 = vpop.f32.mrb[66].mxu1 }
0x131a   : > { %v6696_v3 = vpop.f32.mrb[67].mxu1 }
0x131f   : > { %v4028_v4 = vpop.f32.mrb[68].mxu1 }
0x1320   : > { %v6701_v9 = vpop.f32.mrb[69].mxu1  ;;  %v4080_v11 = vmul.f32 %v4028_v4, %v4028_v4 }
0x1321   : > { %v4031_v6 = vpop.f32.mrb[70].mxu1 }
0x1322   : > { %v6702_v20 = vpop.f32.mrb[71].mxu1 }
0x1327   : > { %v4074_v8 = vpop.f32.mrb[72].mxu1 }
0x1328   : > { %v4081_v12 = vmul.f32 %v4074_v8, %v4074_v8  ;;  %v6707_v52 = vpop.f32.mrb[73].mxu1 }
0x1329   : > { %v4077_v1 = vpop.f32.mrb[74].mxu1 }
0x132a   : > { %v4082_v14 = vadd.f32 %v4081_v12, %v4080_v11  ;;  %v6708_v13 = vpop.f32.mrb[75].mxu1 }
0x132c   : > { %7406 = vrsqrt.f32 %v4082_v14  ;;  %vm4085_vm3 = vcmp.eq.f32.partialorder %v4082_v14, inf  ;;  %v4088_v22 = vand.u32 2147483648, %v4082_v14  ;;  %vm4087_vm4 = vcmp.eq.f32.partialorder %v4082_v14, 0.0 }
0x1336   : > { %v7407_v17 = vpop.eup %7406 }
0x1337   : > { %v4084_v21 = vmul.f32 %v7407_v17, %v4082_v14 }
0x1339   : > { %v4086_v24 = vsel %vm4085_vm3, %v4082_v14, %v4084_v21 }
0x133a   : > { %v4089_v26 = vsel %vm4087_vm4, %v4088_v22, %v4086_v24 }
0x133b   : > { %v4090_v28 = vmul.f32 0.17677669, %v4089_v26 }
0x133d   : > { %v4091_v46 = vsel %vm3926_vm2, %v4090_v28, -inf }
0x133e   : > { %4092 = vmax.xlane.f32.xlu1 %v4091_v46 }
0x13cb   : > { %v4093_v30 = vpop.xlane.xlu1 %4092 }
0x13cc   : > { %v4094_v32 = vsub.f32 %v4090_v28, %v4093_v30 }
0x13ce   : > { %v4095_v5 = vmul.f32 1.442695, %v4094_v32 }
0x13d0   : > { %7408 = vpow2.f32 %v4095_v5 }
0x13da   : > { %v7409_v35 = vpop.eup %7408 }
0x13db   : > { %v4097_v36 = vsel %vm3926_vm2, %v7409_v35, 0.0 }
0x13dc   : > { %4098 = vadd.xlane.f32.xlu0 %v4097_v36 }
0x13f2   : > { %4104 = vrot.lane.b32.xlu0 %v8530_v49, %s7795_s27 }
0x13f6   : > { %4306 = vrot.lane.b32.xlu0 %v3819_v41, %s7795_s27 }
0x13fa   : > { %4358 = vrot.lane.b32.xlu0 %v3821_v18, %s7795_s27 }
0x1469   : > { %v4099_v43 = vpop.xlane.xlu0 %4098 }
0x146a   : > { %7410 = vrcp.f32 %v4099_v43 }
0x146d   : > { %v4105_v45 = vpop.permute.xlu0 %4104 }
0x146e   : > { %6710 = vmatpush3.bf16.msra.mxu1 %v4105_v45 }
0x146f   : > { %6715 = vmatprep.subr.bf16.mxu1 %v7793_v7 }
0x1471   : > { %v4307_v21 = vpop.permute.xlu0 %4306 }
0x1474   : > { %v7411_v10 = vpop.eup %7410 }
0x1475   : > { %v4101_v47 = vmul.f32 %v7411_v10, %v7409_v35 }
0x1477   : > { %v4102_v16 = vpack.c.bf16 %v4101_v47, %v4101_v47 }
0x1479   : > { %6712 = vmatmul.mubr.msk.bf16.vlgmr.msra.gmra.mrb[76].mxu1 %vm3926_vm2, %v4102_v16 }
0x147a   : > { %6716 = vmatpush3.bf16.xpose.msra.mxu1 %v4154_v48  ;;  %6717 = vmatprep.mubr.msk.bf16.mxu1 %vm7794_vm0, %v7793_v7 }
0x147b   : > { %6721 = vmatprep.subr.bf16.mxu1 %v7793_v7 }
0x1481   : > { %6718 = vmatmul.mubr.msk.bf16.vlgmr.msra.gmra.mrb[80].mxu1 %vm1832_vm1, %v3819_v41 }
0x1482   : > { %6722 = vmatpush3.bf16.xpose.msra.mxu1 %v4154_v48  ;;  %6723 = vmatprep.mubr.msk.bf16.mxu1 %vm7794_vm0, %v7793_v7 }
0x1483   : > { %6733 = vmatprep.subr.bf16.mxu1 %v7793_v7 }
0x1489   : > { %6724 = vmatmul.mubr.msk.bf16.vlgmr.msra.gmra.mrb[84].mxu1 %vm1832_vm1, %v3821_v18 }
0x148a   : > { %6735 = vmatprep.mubr.msk.bf16.mxu1 %vm7794_vm0, %v7793_v7 }
0x154c   : > { %v8585_v23 = vpop.f32.mrb[76].mxu1 }
0x154d   : > { %v6713_v49 = vpop.f32.mrb[77].mxu1 }
0x154e   : > { %v4147_v50 = vpop.f32.mrb[78].mxu1 }
0x154f   : > { %v6714_v51 = vpop.f32.mrb[79].mxu1 }
0x1554   : > { %v4190_v53 = vpop.f32.mrb[80].mxu1 }
0x1555   : > { %v6719_v54 = vpop.f32.mrb[81].mxu1  ;;  %v4239_v59 = vmul.f32 %v4190_v53, %v4190_v53 }
0x1556   : > { %v4193_v55 = vpop.f32.mrb[82].mxu1 }
0x1557   : > { %v6720_v56 = vpop.f32.mrb[83].mxu1 }
0x155c   : > { %v4233_v57 = vpop.f32.mrb[84].mxu1 }
0x155d   : > { %v4240_v60 = vmul.f32 %v4233_v57, %v4233_v57  ;;  %v6725_v15 = vpop.f32.mrb[85].mxu1 }
0x155e   : > { %v4236_v61 = vpop.f32.mrb[86].mxu1 }
0x155f   : > { %v4241_v62 = vadd.f32 %v4240_v60, %v4239_v59  ;;  %v6726_v33 = vpop.f32.mrb[87].mxu1  ;;  %v7132_v61 = vld [vmem:[#allocation13] ss:$8 sps:$4 sm:$0xff]  }
0x1560   : > { %v7137_v33 = vld [vmem:[#allocation13 + $0x14] ss:$8 sps:$4 sm:$0xff]  }
0x1561   : > { %7412 = vrsqrt.f32 %v4241_v62  ;;  %vm4244_vm5 = vcmp.eq.f32.partialorder %v4241_v62, inf  ;;  %v4247_v25 = vand.u32 2147483648, %v4241_v62  ;;  %vm4246_vm6 = vcmp.eq.f32.partialorder %v4241_v62, 0.0 }
0x156b   : > { %v7413_v38 = vpop.eup %7412 }
0x156c   : > { %v4243_v0 = vmul.f32 %v7413_v38, %v4241_v62  ;;  %v7135_v38 = vld [vmem:[#allocation13 + $0x10] ss:$8 sps:$4 sm:$0xff]  }
0x156e   : > { %v4245_v3 = vsel %vm4244_vm5, %v4241_v62, %v4243_v0  ;;  %v7134_v62 = vld [vmem:[#allocation13 + $0x4] ss:$8 sps:$4 sm:$0xff]  }
0x156f   : > { %v4248_v4 = vsel %vm4246_vm6, %v4247_v25, %v4245_v3  ;;  %v7140_v0 = vld [vmem:[#allocation13 + $0x24] ss:$8 sps:$4 sm:$0xff]   ;;  %v7138_v25 = vld [vmem:[#allocation13 + $0x20] ss:$8 sps:$4 sm:$0xff]   ;;  %v7141_v3 = vld [vmem:[#allocation13 + $0x30] ss:$8 sps:$4 sm:$0xff]  }
0x1570   : > { %v4249_v9 = vmul.f32 0.17677669, %v4248_v4  ;;  %v7146_v4 = vld [vmem:[#allocation13 + $0x44] ss:$8 sps:$4 sm:$0xff]  }
0x1572   : > { %v4250_v6 = vsel %vm3926_vm2, %v4249_v9, -inf }
0x1573   : > { %4251 = vmax.xlane.f32.xlu1 %v4250_v6  ;;  %v7149_v6 = vld [vmem:[#allocation13 + $0x54] ss:$8 sps:$4 sm:$0xff]  }
0x1600   : > { %v4252_v20 = vpop.xlane.xlu1 %4251 }
0x1601   : > { %v4253_v8 = vsub.f32 %v4249_v9, %v4252_v20  ;;  %v7144_v9 = vld [vmem:[#allocation13 + $0x40] ss:$8 sps:$4 sm:$0xff]   ;;  %v7147_v20 = vld [vmem:[#allocation13 + $0x50] ss:$8 sps:$4 sm:$0xff]  }
0x1603   : > { %v4254_v11 = vmul.f32 1.442695, %v4253_v8  ;;  %v7152_v8 = vld [vmem:[#allocation13 + $0x64] ss:$8 sps:$4 sm:$0xff]  }
0x1605   : > { %7414 = vpow2.f32 %v4254_v11  ;;  %v7150_v11 = vld [vmem:[#allocation13 + $0x60] ss:$8 sps:$4 sm:$0xff]  }
0x160f   : > { %v7415_v12 = vpop.eup %7414 }
0x1610   : > { %v4256_v52 = vsel %vm3926_vm2, %v7415_v12, 0.0 }
0x1611   : > { %4257 = vadd.xlane.f32.xlu1 %v4256_v52  ;;  %v7153_v52 = vld [vmem:[#allocation13 + $0x70] ss:$8 sps:$4 sm:$0xff]  }
0x1622   : > { %4309 = vrot.lane.b32.xlu1 %v8506_v34, %s7795_s27  ;;  %v4359_v34 = vpop.permute.xlu0 %4358 }
0x169e   : > { %v4258_v1 = vpop.xlane.xlu1 %4257 }
0x169f   : > { %7416 = vrcp.f32 %v4258_v1  ;;  %v7158_v1 = vld [vmem:[#allocation13 + $0x84] ss:$8 sps:$4 sm:$0xff]  }
0x16a2   : > { %v4310_v14 = vpop.permute.xlu1 %4309 }
0x16a3   : > { %v4315_v13 = vsel %vm1832_vm1, %v4310_v14, 0  ;;  %v7156_v14 = vld [vmem:[#allocation13 + $0x80] ss:$8 sps:$4 sm:$0xff]  }
0x16a4   : > { %6734 = vmatpush3.bf16.xpose.msra.mxu1 %v4315_v13 }
0x16a5   : > { %6745 = vmatprep.subr.bf16.mxu1 %v7793_v7 }
0x16a9   : > { %v7417_v17 = vpop.eup %7416 }
0x16aa   : > { %v4260_v22 = vmul.f32 %v7417_v17, %v7415_v12  ;;  %v7155_v12 = vld [vmem:[#allocation13 + $0x74] ss:$8 sps:$4 sm:$0xff]   ;;  %v7159_v17 = vld [vmem:[#allocation13 + $0x90] ss:$8 sps:$4 sm:$0xff]  }
0x16ab   : > { %6736 = vmatmul.mubr.msk.bf16.vlgmr.msra.gmra.mrb[88].mxu1 %vm1832_vm1, %v4307_v21  ;;  %v7164_v21 = vld [vmem:[#allocation13 + $0xa4] ss:$8 sps:$4 sm:$0xff]  }
0x16ac   : > { %v4261_v24 = vpack.c.bf16 %v4260_v22, %v4260_v22  ;;  %6747 = vmatprep.mubr.msk.bf16.mxu1 %vm7794_vm0, %v7793_v7  ;;  %v7162_v22 = vld [vmem:[#allocation13 + $0xa0] ss:$8 sps:$4 sm:$0xff]  }
0x16ae   : > { %6730 = vmatmul.mubr.msk.bf16.vlgmr.msra.gmra.mrb[28].mxu0 %vm3926_vm2, %v4261_v24  ;;  %v7167_v24 = vld [vmem:[#allocation13 + $0xb4] ss:$8 sps:$4 sm:$0xff]  }
0x16af   : > { %6740 = vmatpush3.bf16.xpose.msra.mxu0 %v4315_v13  ;;  %6741 = vmatprep.mubr.msk.bf16.mxu0 %vm7794_vm0, %v7793_v7  ;;  %v7161_v13 = vld [vmem:[#allocation13 + $0x94] ss:$8 sps:$4 sm:$0xff]  }
0x16b0   : > { %4689 = vmatprep.subr.bf16.mxu0 %v7134_v62  ;;  %v7188_v62 = vld [vmem:[#allocation14 + $0x24] ss:$16 sps:$4 sm:$0xff]  }
0x16b6   : > { %6742 = vmatmul.mubr.msk.bf16.vlgmr.msra.gmra.mrb[32].mxu0 %vm1832_vm1, %v4359_v34  ;;  %v7165_v34 = vld [vmem:[#allocation13 + $0xb0] ss:$8 sps:$4 sm:$0xff]  }
0x16b7   : > { %4690 = vmatpush1.bf16.msra.mxu0 %v7132_v61  ;;  %v7185_v61 = vld [vmem:[#allocation14 + $0xc] ss:$16 sps:$4 sm:$0xff]  }
0x16b8   : > { %4691 = vmatprep.subr.bf16.mxu0 %v7137_v33  ;;  %v7191_v33 = vld [vmem:[#allocation14 + $0x2c] ss:$16 sps:$4 sm:$0xff]  }
0x16bb   : > { %4692 = vmatpush1.bf16.msra.mxu0 %v7135_v38  ;;  %v7186_v38 = vld [vmem:[#allocation14 + $0x20] ss:$16 sps:$4 sm:$0xff]  }
0x16bc   : > { %4693 = vmatprep.subr.bf16.mxu0 %v7140_v0  ;;  %v7189_v0 = vld [vmem:[#allocation14 + $0x28] ss:$16 sps:$4 sm:$0xff]  }
0x16bf   : > { %4694 = vmatpush1.bf16.msra.mxu0 %v7138_v25 }
0x177e   : > { %v4351_v26 = vpop.f32.mrb[88].mxu1 }
0x177f   : > { %v6737_v28 = vpop.f32.mrb[89].mxu1  ;;  %v4403_v39 = vmul.f32 %v4351_v26, %v4351_v26  ;;  %v7170_v26 = vld [vmem:[#allocation13 + $0xc4] ss:$8 sps:$4 sm:$0xff]  }
0x1780   : > { %v4354_v46 = vpop.f32.mrb[90].mxu1  ;;  %v7168_v28 = vld [vmem:[#allocation13 + $0xc0] ss:$8 sps:$4 sm:$0xff]  }
0x1781   : > { %v8600_v30 = vpop.f32.mrb[28].mxu0  ;;  %v6738_v32 = vpop.f32.mrb[91].mxu1  ;;  %v7173_v46 = vld [vmem:[#allocation13 + $0xd4] ss:$8 sps:$4 sm:$0xff]  }
0x1782   : > { %v6731_v5 = vpop.f32.mrb[29].mxu0  ;;  %v7171_v32 = vld [vmem:[#allocation13 + $0xd0] ss:$8 sps:$4 sm:$0xff]  }
0x1783   : > { %v4302_v35 = vpop.f32.mrb[30].mxu0  ;;  %v7176_v5 = vld [vmem:[#allocation13 + $0xe4] ss:$8 sps:$4 sm:$0xff]  }
0x1784   : > { %v6732_v36 = vpop.f32.mrb[31].mxu0  ;;  %v7174_v35 = vld [vmem:[#allocation13 + $0xe0] ss:$8 sps:$4 sm:$0xff]  }
0x1785   : > { %v7179_v36 = vld [vmem:[#allocation13 + $0xf4] ss:$8 sps:$4 sm:$0xff]  }
0x1789   : > { %v4397_v37 = vpop.f32.mrb[32].mxu0 }
0x178a   : > { %v4404_v40 = vmul.f32 %v4397_v37, %v4397_v37  ;;  %v6743_v41 = vpop.f32.mrb[33].mxu0  ;;  %v7177_v37 = vld [vmem:[#allocation13 + $0xf0] ss:$8 sps:$4 sm:$0xff]  }
0x178b   : > { %v4400_v42 = vpop.f32.mrb[34].mxu0 }
0x178c   : > { %v4405_v18 = vadd.f32 %v4404_v40, %v4403_v39  ;;  %v6744_v43 = vpop.f32.mrb[35].mxu0 }
0x178e   : > { %7418 = vrsqrt.f32 %v4405_v18  ;;  %vm4408_vm0 = vcmp.eq.f32.partialorder %v4405_v18, inf  ;;  %v4411_v10 = vand.u32 2147483648, %v4405_v18  ;;  %vm4410_vm7 = vcmp.eq.f32.partialorder %v4405_v18, 0.0 }
0x1798   : > { %v7419_v7 = vpop.eup %7418 }
0x1799   : > { %v4407_v45 = vmul.f32 %v7419_v7, %v4405_v18 }
0x179b   : > { %v4409_v47 = vsel %vm4408_vm0, %v4405_v18, %v4407_v45 }
0x179c   : > { %v4412_v16 = vsel %vm4410_vm7, %v4411_v10, %v4409_v47 }
0x179d   : > { %v4413_v48 = vmul.f32 0.17677669, %v4412_v16 }
0x179f   : > { %v4414_v49 = vsel %vm3926_vm2, %v4413_v48, -inf }
0x17a0   : > { %4415 = vmax.xlane.f32.xlu1 %v4414_v49 }
0x182d   : > { %v4416_v50 = vpop.xlane.xlu1 %4415 }
0x182e   : > { %v4417_v51 = vsub.f32 %v4413_v48, %v4416_v50 }
0x1830   : > { %v4418_v53 = vmul.f32 1.442695, %v4417_v51 }
0x1832   : > { %7420 = vpow2.f32 %v4418_v53 }
0x183c   : > { %v7421_v54 = vpop.eup %7420 }
0x183d   : > { %v4420_v55 = vsel %vm3926_vm2, %v7421_v54, 0.0 }
0x183e   : > { %4421 = vadd.xlane.f32.xlu0 %v4420_v55 }
0x1854   : > { %4427 = vrot.lane.b32.xlu0 %v8537_v44, %s7795_s27  ;;  %v7143_v44 = vld [vmem:[#allocation13 + $0x34] ss:$8 sps:$4 sm:$0xff]  }
0x1855   : > { %4695 = vmatprep.subr.bf16.mxu0 %v7143_v44 }
0x1856   : > { %4696 = vmatpush1.bf16.msra.mxu0 %v7141_v3 }
0x1857   : > { %4697 = vmatprep.subr.bf16.mxu0 %v7146_v4 }
0x185a   : > { %4698 = vmatpush1.bf16.msra.mxu0 %v7144_v9 }
0x185b   : > { %4699 = vmatprep.subr.bf16.mxu0 %v7149_v6 }
0x185e   : > { %4700 = vmatpush1.bf16.msra.mxu0 %v7147_v20 }
0x185f   : > { %4701 = vmatprep.subr.bf16.mxu0 %v7152_v8  ;;  %v7194_v8 = vld [vmem:[#allocation14 + $0x44] ss:$16 sps:$4 sm:$0xff]  }
0x1862   : > { %4702 = vmatpush1.bf16.msra.mxu0 %v7150_v11  ;;  %v7197_v11 = vld [vmem:[#allocation14 + $0x4c] ss:$16 sps:$4 sm:$0xff]  }
0x1863   : > { %4703 = vmatprep.subr.bf16.mxu0 %v7155_v12  ;;  %v7192_v12 = vld [vmem:[#allocation14 + $0x40] ss:$16 sps:$4 sm:$0xff]  }
0x1866   : > { %4704 = vmatpush1.bf16.msra.mxu0 %v7153_v52  ;;  %v7195_v52 = vld [vmem:[#allocation14 + $0x48] ss:$16 sps:$4 sm:$0xff]  }
0x1867   : > { %4705 = vmatprep.subr.bf16.mxu0 %v7158_v1  ;;  %v7200_v1 = vld [vmem:[#allocation14 + $0x64] ss:$16 sps:$4 sm:$0xff]  }
0x186a   : > { %4706 = vmatpush1.bf16.msra.mxu0 %v7156_v14  ;;  %v7203_v14 = vld [vmem:[#allocation14 + $0x6c] ss:$16 sps:$4 sm:$0xff]  }
0x186b   : > { %4707 = vmatprep.subr.bf16.mxu0 %v7161_v13  ;;  %v7198_v13 = vld [vmem:[#allocation14 + $0x60] ss:$16 sps:$4 sm:$0xff]  }
0x186e   : > { %4708 = vmatpush1.bf16.msra.mxu0 %v7159_v17  ;;  %v7201_v17 = vld [vmem:[#allocation14 + $0x68] ss:$16 sps:$4 sm:$0xff]  }
0x186f   : > { %4709 = vmatprep.subr.bf16.mxu0 %v7164_v21  ;;  %v7206_v21 = vld [vmem:[#allocation14 + $0x84] ss:$16 sps:$4 sm:$0xff]  }
0x1872   : > { %4710 = vmatpush1.bf16.msra.mxu0 %v7162_v22  ;;  %v7209_v22 = vld [vmem:[#allocation14 + $0x8c] ss:$16 sps:$4 sm:$0xff]  }
0x1873   : > { %4711 = vmatprep.subr.bf16.mxu0 %v7167_v24  ;;  %v7204_v24 = vld [vmem:[#allocation14 + $0x80] ss:$16 sps:$4 sm:$0xff]  }
0x1876   : > { %4712 = vmatpush1.bf16.msra.mxu0 %v7165_v34  ;;  %v7207_v34 = vld [vmem:[#allocation14 + $0x88] ss:$16 sps:$4 sm:$0xff]  }
0x1877   : > { %4713 = vmatprep.subr.bf16.mxu0 %v7170_v26  ;;  %v7212_v26 = vld [vmem:[#allocation14 + $0xa4] ss:$16 sps:$4 sm:$0xff]  }
0x187a   : > { %4714 = vmatpush1.bf16.msra.mxu0 %v7168_v28  ;;  %v7215_v28 = vld [vmem:[#allocation14 + $0xac] ss:$16 sps:$4 sm:$0xff]  }
0x187b   : > { %4715 = vmatprep.subr.bf16.mxu0 %v7173_v46  ;;  %v7210_v46 = vld [vmem:[#allocation14 + $0xa0] ss:$16 sps:$4 sm:$0xff]  }
0x187e   : > { %4716 = vmatpush1.bf16.msra.mxu0 %v7171_v32  ;;  %v7213_v32 = vld [vmem:[#allocation14 + $0xa8] ss:$16 sps:$4 sm:$0xff]  }
0x187f   : > { %4717 = vmatprep.subr.bf16.mxu0 %v7176_v5  ;;  %v7218_v5 = vld [vmem:[#allocation14 + $0xc4] ss:$16 sps:$4 sm:$0xff]  }
0x1882   : > { %4718 = vmatpush1.bf16.msra.mxu0 %v7174_v35  ;;  %v7221_v35 = vld [vmem:[#allocation14 + $0xcc] ss:$16 sps:$4 sm:$0xff]  }
0x1883   : > { %4719 = vmatprep.subr.bf16.mxu0 %v7179_v36  ;;  %v7216_v36 = vld [vmem:[#allocation14 + $0xc0] ss:$16 sps:$4 sm:$0xff]  }
0x1886   : > { %4720 = vmatpush1.bf16.msra.mxu0 %v7177_v37  ;;  %v7219_v37 = vld [vmem:[#allocation14 + $0xc8] ss:$16 sps:$4 sm:$0xff]  }
0x1887   : > { %5264 = vmatprep.subr.bf16.mxu0 %v7185_v61  ;;  %v7258_v61 = vld [vmem:[#allocation14 + $0x1a0] ss:$16 sps:$4 sm:$0xff]  }
0x18cb   : > { %v4422_v56 = vpop.xlane.xlu0 %4421 }
0x18cc   : > { %7422 = vrcp.f32 %v4422_v56 }
0x18cf   : > { %v4428_v57 = vpop.permute.xlu0 %4427 }
0x18d0   : > { %6746 = vmatpush3.bf16.msra.mxu1 %v4428_v57 }
0x18d6   : > { %v7423_v59 = vpop.eup %7422 }
0x18d7   : > { %v4424_v60 = vmul.f32 %v7423_v59, %v7421_v54  ;;  %v7180_v59 = vld [vmem:[#allocation14] ss:$16 sps:$4 sm:$0xff]  }
0x18d9   : > { %v4425_v15 = vpack.c.bf16 %v4424_v60, %v4424_v60  ;;  %v7182_v60 = vld [vmem:[#allocation14 + $0x4] ss:$16 sps:$4 sm:$0xff]  }
0x18da   : > { %5223 = vmatprep.subr.bf16.mxu1 %v7182_v60  ;;  %v7260_v60 = vld [vmem:[#allocation14 + $0x1a4] ss:$16 sps:$4 sm:$0xff]  }
0x18db   : > { %6748 = vmatmul.mubr.msk.bf16.vlgmr.msra.gmra.mrb[92].mxu1 %vm3926_vm2, %v4425_v15  ;;  %v7183_v15 = vld [vmem:[#allocation14 + $0x8] ss:$16 sps:$4 sm:$0xff]  }
0x18dc   : > { %5224 = vmatpush1.bf16.msra.mxu1 %v7180_v59  ;;  %v7255_v59 = vld [vmem:[#allocation14 + $0x188] ss:$16 sps:$4 sm:$0xff]  }
0x18dd   : > { %5225 = vmatprep.subr.bf16.mxu1 %v7188_v62  ;;  %v7261_v62 = vld [vmem:[#allocation14 + $0x1a8] ss:$16 sps:$4 sm:$0xff]  }
0x18e0   : > { %5226 = vmatpush1.bf16.msra.mxu1 %v7186_v38  ;;  %v7264_v38 = vld [vmem:[#allocation14 + $0x1c0] ss:$16 sps:$4 sm:$0xff]  }
0x18e1   : > { %5227 = vmatprep.subr.bf16.mxu1 %v7194_v8 }
0x18e4   : > { %5228 = vmatpush1.bf16.msra.mxu1 %v7192_v12 }
0x18e5   : > { %5229 = vmatprep.subr.bf16.mxu1 %v7200_v1 }
0x18e8   : > { %5230 = vmatpush1.bf16.msra.mxu1 %v7198_v13 }
0x18e9   : > { %5231 = vmatprep.subr.bf16.mxu1 %v7206_v21 }
0x18ec   : > { %5232 = vmatpush1.bf16.msra.mxu1 %v7204_v24 }
0x18ed   : > { %5233 = vmatprep.subr.bf16.mxu1 %v7212_v26 }
0x18f0   : > { %5234 = vmatpush1.bf16.msra.mxu1 %v7210_v46 }
0x18f1   : > { %5235 = vmatprep.subr.bf16.mxu1 %v7218_v5 }
0x18f4   : > { %5236 = vmatpush1.bf16.msra.mxu1 %v7216_v36 }
0x19ae   : > { %v4467_v39 = vpop.f32.mrb[92].mxu1 }
0x19af   : > { %v6887_v40 = vpack.i.bf16 %v8585_v23, %v4467_v39  ;;  %v6749_v41 = vpop.f32.mrb[93].mxu1  ;;  %v4515_v23 = vld [vmem:[%s8824_s12] sm:$0x3]  ;;  %v7224_v39 = vld [vmem:[#allocation14 + $0xe4] ss:$16 sps:$4 sm:$0xff]   ;;  %s8829_s12 = sld [smem:[#allocation41_spill]] }
0x19b0   : > { %v4470_v42 = vpop.f32.mrb[94].mxu1  ;;  %v4522_v49 = vrot.slane %v4515_v23, %v8310_v19  ;;  %v4526_v50 = vrot.slane %v4515_v23, %v8379_v58  ;;  %v7222_v41 = vld [vmem:[#allocation14 + $0xe0] ss:$16 sps:$4 sm:$0xff]   ;;  %5237 = vmatprep.subr.bf16.mxu1 %v7224_v39  ;;  %v7242_v23 = vld [vmem:[#allocation14 + $0x144] ss:$16 sps:$4 sm:$0xff]  }
0x19b1   : > { %6888 = vrot.lane.b32.xlu1 %v6887_v40, %s7795_s27  ;;  %v6750_v18 = vpop.f32.mrb[95].mxu1  ;;  %v7227_v40 = vld [vmem:[#allocation14 + $0xec] ss:$16 sps:$4 sm:$0xff]   ;;  %v7225_v42 = vld [vmem:[#allocation14 + $0xe8] ss:$16 sps:$4 sm:$0xff]   ;;  %5238 = vmatpush1.bf16.msra.mxu1 %v7222_v41 }
0x19b2   : > { %v7230_v18 = vld [vmem:[#allocation14 + $0x104] ss:$16 sps:$4 sm:$0xff]  }
0x19b3   : > { %5239 = vmatprep.subr.bf16.mxu1 %v7230_v18 }
0x1a23   : > { %v6889_v43 = vpop.permute.xlu1 %6888 }
0x1a24   : > { %v6891_v7 = vunpack.i.h.bf16 %v6889_v43  ;;  %v6890_v45 = vunpack.i.l.bf16 %v6889_v43  ;;  %v7233_v43 = vld [vmem:[#allocation14 + $0x10c] ss:$16 sps:$4 sm:$0xff]  }
0x1a26   : > { %v4481_v10 = vsel %vm1832_vm1, %v8557_v63, %v6891_v7  ;;  %v4482_v47 = vsel %vm1832_vm1, %v8600_v30, %v6890_v45  ;;  %v7228_v7 = vld [vmem:[#allocation14 + $0x100] ss:$16 sps:$4 sm:$0xff]   ;;  %v7231_v45 = vld [vmem:[#allocation14 + $0x108] ss:$16 sps:$4 sm:$0xff]  }
0x1a27   : > { %v4516_v16 = vpack.c.bf16 %v4481_v10, %v4481_v10  ;;  %v4517_v48 = vpack.c.bf16 %v4482_v47, %v4482_v47  ;;  %5240 = vmatpush1.bf16.msra.mxu1 %v7228_v7  ;;  %v7236_v10 = vld [vmem:[#allocation14 + $0x124] ss:$16 sps:$4 sm:$0xff]   ;;  %v7239_v47 = vld [vmem:[#allocation14 + $0x12c] ss:$16 sps:$4 sm:$0xff]  }
0x1a28   : > { %5241 = vmatprep.subr.bf16.mxu1 %v7236_v10 }
0x1a29   : > { %4721 = vmatprep.mubr.bf16.mxu0 %v4517_v48  ;;  %v7237_v48 = vld [vmem:[#allocation14 + $0x128] ss:$16 sps:$4 sm:$0xff]  }
0x1a2a   : > { %4722 = vmatmul.mubr.bf16.vlgmr.msra.gmra.mrb[36].mxu0 %v4516_v16  ;;  %v7234_v16 = vld [vmem:[#allocation14 + $0x120] ss:$16 sps:$4 sm:$0xff]  }
0x1a2b   : > { %5265 = vmatpush1.bf16.msra.mxu0 %v7183_v15  ;;  %5242 = vmatpush1.bf16.msra.mxu1 %v7234_v16  ;;  %v7263_v15 = vld [vmem:[#allocation14 + $0x1ac] ss:$16 sps:$4 sm:$0xff]  }
0x1a2c   : > { %5266 = vmatprep.subr.bf16.mxu0 %v7191_v33  ;;  %5243 = vmatprep.subr.bf16.mxu1 %v7242_v23  ;;  %v7266_v33 = vld [vmem:[#allocation14 + $0x1c4] ss:$16 sps:$4 sm:$0xff]  }
0x1a2f   : > { %5267 = vmatpush1.bf16.msra.mxu0 %v7189_v0  ;;  %v7267_v0 = vld [vmem:[#allocation14 + $0x1c8] ss:$16 sps:$4 sm:$0xff]  }
0x1a30   : > { %5268 = vmatprep.subr.bf16.mxu0 %v7197_v11 }
0x1a33   : > { %5269 = vmatpush1.bf16.msra.mxu0 %v7195_v52 }
0x1a34   : > { %5270 = vmatprep.subr.bf16.mxu0 %v7203_v14 }
0x1a37   : > { %5271 = vmatpush1.bf16.msra.mxu0 %v7201_v17 }
0x1a38   : > { %5272 = vmatprep.subr.bf16.mxu0 %v7209_v22 }
0x1a3b   : > { %5273 = vmatpush1.bf16.msra.mxu0 %v7207_v34 }
0x1a3c   : > { %5274 = vmatprep.subr.bf16.mxu0 %v7215_v28 }
0x1a3f   : > { %5275 = vmatpush1.bf16.msra.mxu0 %v7213_v32 }
0x1a40   : > { %5276 = vmatprep.subr.bf16.mxu0 %v7221_v35 }
0x1a43   : > { %5277 = vmatpush1.bf16.msra.mxu0 %v7219_v37 }
0x1a44   : > { %5278 = vmatprep.subr.bf16.mxu0 %v7227_v40 }
0x1a47   : > { %5279 = vmatpush1.bf16.msra.mxu0 %v7225_v42  ;;  %v4732_v42 = vld [vmem:[%s8825_s18] sm:$0xf]  ;;  %s8830_s18 = sld [smem:[#allocation42_spill]] }
0x1a48   : > { %5280 = vmatprep.subr.bf16.mxu0 %v7233_v43  ;;  %v4802_v10 = vrot.slane %v4732_v42, %v8325_v31  ;;  %v4786_v16 = vrot.slane %v4732_v42, %v8310_v19 }
0x1a4b   : > { %5281 = vmatpush1.bf16.msra.mxu0 %v7231_v45 }
0x1a4c   : > { %5282 = vmatprep.subr.bf16.mxu0 %v7239_v47  ;;  %v4807_v47 = vrot.slane %v4732_v42, %v8389_v2 }
0x1a4f   : > { %5283 = vmatpush1.bf16.msra.mxu0 %v7237_v48  ;;  %v4791_v48 = vrot.slane %v4732_v42, %v8379_v58  ;;  %v7324_v42 = vld [vmem:[#allocation16 + $0x80] ss:$8 sps:$4 sm:$0xff]  }
0x1afd   : > { %v4723_v51 = vpop.f32.mrb[36].mxu0 }
0x1afe   : > { %v4724_v53 = vadd.f32 %v4723_v51, %v4522_v49  ;;  %v4725_v54 = vpop.f32.mrb[37].mxu0  ;;  %v7245_v49 = vld [vmem:[#allocation14 + $0x14c] ss:$16 sps:$4 sm:$0xff]   ;;  %v7243_v51 = vld [vmem:[#allocation14 + $0x148] ss:$16 sps:$4 sm:$0xff]  }
0x1aff   : > { %v4726_v55 = vadd.f32 %v4725_v54, %v4526_v50  ;;  %v4727_v63 = vpop.f32.mrb[38].mxu0  ;;  %v7240_v50 = vld [vmem:[#allocation14 + $0x140] ss:$16 sps:$4 sm:$0xff]   ;;  %5284 = vmatprep.subr.bf16.mxu0 %v7245_v49  ;;  %v7251_v54 = vld [vmem:[#allocation14 + $0x16c] ss:$16 sps:$4 sm:$0xff]  }
0x1b00   : > { %v4728_v56 = vpop.f32.mrb[39].mxu0  ;;  %v4730_v30 = vadd.f32 %v4724_v53, %v8469_v29  ;;  %5244 = vmatpush1.bf16.msra.mxu1 %v7240_v50  ;;  %5285 = vmatpush1.bf16.msra.mxu0 %v7243_v51  ;;  %v7248_v53 = vld [vmem:[#allocation14 + $0x164] ss:$16 sps:$4 sm:$0xff]   ;;  %v7249_v63 = vld [vmem:[#allocation14 + $0x168] ss:$16 sps:$4 sm:$0xff]  }
0x1b01   : > { %v4731_v57 = vadd.f32 %v4726_v55, %v8467_v27  ;;  %v7246_v55 = vld [vmem:[#allocation14 + $0x160] ss:$16 sps:$4 sm:$0xff]   ;;  %5245 = vmatprep.subr.bf16.mxu1 %v7248_v53  ;;  %5286 = vmatprep.subr.bf16.mxu0 %v7251_v54  ;;  %v7254_v56 = vld [vmem:[#allocation14 + $0x184] ss:$16 sps:$4 sm:$0xff]  }
0x1b02   : > { %4734 = vadd.xlane.f32.xlu1 %v4730_v30  ;;  %v4733_v50 = vld [vmem:[%s8826_s5] sm:$0x3]  ;;  %s5893_s5 = sshll.u32 %s840_s19, 4  ;;  %s8688_s5 = int_to_ptr.vmem [resolvable:$true] %s5893_s5 }
0x1b03   : > { %4737 = vadd.xlane.f32.xlu0 %v4731_v57  ;;  %s7690_s1 = scalar_lea.vmem %s8688_s5, 256 }
0x1b04   : > { %5246 = vmatpush1.bf16.msra.mxu1 %v7246_v55  ;;  %5287 = vmatpush1.bf16.msra.mxu0 %v7249_v63  ;;  %v4797_v63 = vrot.slane %v4733_v50, %v8310_v19  ;;  %p7691_p6 = scmp.ne.s32.totalorder %s8688_s5, %s7690_s1 }
0x1b05   : > { %5247 = vmatprep.subr.bf16.mxu1 %v7254_v56  ;;  %v4813_v56 = vrot.slane %v4733_v50, %v8379_v58  ;;  %v7347_v50 = vld [vmem:[#allocation16 + $0x1b4] ss:$8 sps:$4 sm:$0xff]  }
0x1b06   : > { %p7692_p0 = pnand %p7691_p6, %p8832_p9 }
0x1b08   : > { %p7693_p5 = pneg %p7692_p0 }
0x1b8f   : > { %v4735_v29 = vpop.xlane.xlu1 %4734 }
0x1b90   : > { %v4736_v27 = vmul.f32 0.0078125, %v4735_v29  ;;  %v4738_v25 = vpop.xlane.xlu0 %4737  ;;  %v7269_v29 = vld [vmem:[#allocation14 + $0x1cc] ss:$16 sps:$4 sm:$0xff]  }
0x1b91   : > { %v4739_v44 = vmul.f32 0.0078125, %v4738_v25  ;;  %v7275_v25 = vld [vmem:[#allocation14 + $0x1ec] ss:$16 sps:$4 sm:$0xff]  }
0x1b92   : > { %v8620_v3 = vsub.f32 %v4730_v30, %v4736_v27  ;;  %v7257_v30 = vld [vmem:[#allocation14 + $0x18c] ss:$16 sps:$4 sm:$0xff]   ;;  %v7272_v27 = vld [vmem:[#allocation14 + $0x1e4] ss:$16 sps:$4 sm:$0xff]  }
0x1b93   : > { %v8622_v4 = vsub.f32 %v4731_v57, %v4739_v44  ;;  %v7252_v57 = vld [vmem:[#allocation14 + $0x180] ss:$16 sps:$4 sm:$0xff]   ;;  %5288 = vmatprep.subr.bf16.mxu0 %v7257_v30 }
0x1b94   : > { %v4742_v9 = vmul.f32 %v8620_v3, %v8620_v3  ;;  %5248 = vmatpush1.bf16.msra.mxu1 %v7252_v57  ;;  %5289 = vmatpush1.bf16.msra.mxu0 %v7255_v59  ;;  %v7270_v44 = vld [vmem:[#allocation14 + $0x1e0] ss:$16 sps:$4 sm:$0xff]  }
0x1b95   : > { %v4752_v6 = vmul.f32 %v8622_v4, %v8620_v3  ;;  %v4747_v20 = vmul.f32 %v8622_v4, %v8622_v4  ;;  %5249 = vmatprep.subr.bf16.mxu1 %v7260_v60  ;;  %5290 = vmatprep.subr.bf16.mxu0 %v7263_v15 }
0x1b96   : > { %4743 = vadd.xlane.f32.xlu0 %v4742_v9  ;;  %v7273_v9 = vld [vmem:[#allocation14 + $0x1e8] ss:$16 sps:$4 sm:$0xff]  }
0x1b97   : > { %4753 = vadd.xlane.f32.xlu1 %v4752_v6  ;;  %v7278_v6 = vld [vmem:[#allocation16 + $0x4] ss:$8 sps:$4 sm:$0xff]  }
0x1b98   : > { %5250 = vmatpush1.bf16.msra.mxu1 %v7258_v61  ;;  %5291 = vmatpush1.bf16.msra.mxu0 %v7261_v62 }
0x1b99   : > { %5251 = vmatprep.subr.bf16.mxu1 %v7266_v33  ;;  %5292 = vmatprep.subr.bf16.mxu0 %v7269_v29  ;;  %v7284_v29 = vld [vmem:[#allocation16 + $0x14] ss:$8 sps:$4 sm:$0xff]  }
0x1b9a   : > { %4748 = vadd.xlane.f32.xlu0 %v4747_v20  ;;  %v7281_v20 = vld [vmem:[#allocation16 + $0x104] ss:$8 sps:$4 sm:$0xff]  }
0x1b9c   : > { %5252 = vmatpush1.bf16.msra.mxu1 %v7264_v38  ;;  %5293 = vmatpush1.bf16.msra.mxu0 %v7267_v0  ;;  %v7276_v38 = vld [vmem:[#allocation16] ss:$8 sps:$4 sm:$0xff]  }
0x1b9d   : > { %5253 = vmatprep.subr.bf16.mxu1 %v7272_v27  ;;  %5294 = vmatprep.subr.bf16.mxu0 %v7275_v25  ;;  %v7279_v0 = vld [vmem:[#allocation16 + $0x100] ss:$8 sps:$4 sm:$0xff]   ;;  %v7287_v27 = vld [vmem:[#allocation16 + $0x114] ss:$8 sps:$4 sm:$0xff]   ;;  %v7282_v25 = vld [vmem:[#allocation16 + $0x10] ss:$8 sps:$4 sm:$0xff]  }
0x1ba0   : > { %5254 = vmatpush1.bf16.msra.mxu1 %v7270_v44  ;;  %5295 = vmatpush1.bf16.msra.mxu0 %v7273_v9  ;;  %v7285_v44 = vld [vmem:[#allocation16 + $0x110] ss:$8 sps:$4 sm:$0xff]   ;;  %v7290_v9 = vld [vmem:[#allocation16 + $0x24] ss:$8 sps:$4 sm:$0xff]  }
0x1ba1   : > { %5709 = vmatprep.subr.bf16.mxu1 %v7278_v6  ;;  %5750 = vmatprep.subr.bf16.mxu0 %v7281_v20  ;;  %v7293_v6 = vld [vmem:[#allocation16 + $0x124] ss:$8 sps:$4 sm:$0xff]   ;;  %v7288_v20 = vld [vmem:[#allocation16 + $0x20] ss:$8 sps:$4 sm:$0xff]  }
0x1c23   : > { %v4744_v8 = vpop.xlane.xlu0 %4743 }
0x1c24   : > { %v4754_v11 = vpop.xlane.xlu1 %4753  ;;  %v4745_v12 = vmul.f32 0.0078125, %v4744_v8  ;;  %v7291_v8 = vld [vmem:[#allocation16 + $0x120] ss:$8 sps:$4 sm:$0xff]  }
0x1c25   : > { %v4755_v1 = vmul.f32 0.0078125, %v4754_v11  ;;  %v7296_v11 = vld [vmem:[#allocation16 + $0x34] ss:$8 sps:$4 sm:$0xff]  }
0x1c26   : > { %v4746_v13 = vadd.f32 1e-05, %v4745_v12  ;;  %v7299_v12 = vld [vmem:[#allocation16 + $0x134] ss:$8 sps:$4 sm:$0xff]  }
0x1c27   : > { %v4749_v52 = vpop.xlane.xlu0 %4748  ;;  %v4757_v21 = vmul.f32 %v4755_v1, %v4755_v1  ;;  %v4775_v39 = vsub.f32 0.0, %v4755_v1  ;;  %v7297_v1 = vld [vmem:[#allocation16 + $0x130] ss:$8 sps:$4 sm:$0xff]  }
0x1c28   : > { %v4750_v14 = vmul.f32 0.0078125, %v4749_v52  ;;  %v7294_v52 = vld [vmem:[#allocation16 + $0x30] ss:$8 sps:$4 sm:$0xff]  }
0x1c2a   : > { %v4751_v17 = vadd.f32 1e-05, %v4750_v14  ;;  %v7302_v14 = vld [vmem:[#allocation16 + $0x44] ss:$8 sps:$4 sm:$0xff]  }
0x1c2c   : > { %v4756_v22 = vmul.f32 %v4751_v17, %v4746_v13  ;;  %v4766_v5 = vadd.f32 %v4751_v17, %v4746_v13 }
0x1c2e   : > { %v4758_v24 = vsub.f32 %v4756_v22, %v4757_v21  ;;  %v7303_v21 = vld [vmem:[#allocation16 + $0x140] ss:$8 sps:$4 sm:$0xff]   ;;  %v7308_v22 = vld [vmem:[#allocation16 + $0x54] ss:$8 sps:$4 sm:$0xff]  }
0x1c30   : > { %7424 = vrsqrt.f32 %v4758_v24  ;;  %vm4761_vm1 = vcmp.eq.f32.partialorder %v4758_v24, inf  ;;  %v4764_v28 = vand.u32 2147483648, %v4758_v24  ;;  %vm4763_vm8 = vcmp.eq.f32.partialorder %v4758_v24, 0.0 }
0x1c3a   : > { %v7425_v34 = vpop.eup %7424 }
0x1c3b   : > { %v4760_v26 = vmul.f32 %v7425_v34, %v4758_v24  ;;  %v7306_v34 = vld [vmem:[#allocation16 + $0x50] ss:$8 sps:$4 sm:$0xff]  }
0x1c3d   : > { %v4762_v46 = vsel %vm4761_vm1, %v4758_v24, %v4760_v26  ;;  %v7309_v26 = vld [vmem:[#allocation16 + $0x150] ss:$8 sps:$4 sm:$0xff]  }
0x1c3e   : > { %v4765_v32 = vsel %vm4763_vm8, %v4764_v28, %v4762_v46  ;;  %v7314_v28 = vld [vmem:[#allocation16 + $0x64] ss:$8 sps:$4 sm:$0xff]  }
0x1c3f   : > { %v4767_v35 = vmul.f32 2.0, %v4765_v32  ;;  %v4771_v40 = vadd.f32 %v4765_v32, %v4751_v17  ;;  %v4773_v41 = vadd.f32 %v4765_v32, %v4746_v13  ;;  %v7305_v13 = vld [vmem:[#allocation16 + $0x144] ss:$8 sps:$4 sm:$0xff]   ;;  %v7300_v17 = vld [vmem:[#allocation16 + $0x40] ss:$8 sps:$4 sm:$0xff]  }
0x1c40   : > { %v7317_v46 = vld [vmem:[#allocation16 + $0x164] ss:$8 sps:$4 sm:$0xff]   ;;  %v7312_v32 = vld [vmem:[#allocation16 + $0x60] ss:$8 sps:$4 sm:$0xff]  }
0x1c41   : > { %v4768_v36 = vadd.f32 %v4767_v35, %v4766_v5  ;;  %v7315_v5 = vld [vmem:[#allocation16 + $0x160] ss:$8 sps:$4 sm:$0xff]   ;;  %v7320_v35 = vld [vmem:[#allocation16 + $0x74] ss:$8 sps:$4 sm:$0xff]  }
0x1c43   : > { %v4769_v37 = vmul.f32 %v4768_v36, %v4758_v24  ;;  %v7311_v24 = vld [vmem:[#allocation16 + $0x154] ss:$8 sps:$4 sm:$0xff]  }
0x1c44   : > { %v7323_v36 = vld [vmem:[#allocation16 + $0x174] ss:$8 sps:$4 sm:$0xff]  }
0x1c45   : > { %7426 = vrsqrt.f32 %v4769_v37  ;;  %v7318_v37 = vld [vmem:[#allocation16 + $0x70] ss:$8 sps:$4 sm:$0xff]  }
0x1c4f   : > { %v7427_v18 = vpop.eup %7426 }
0x1c50   : > { %v4772_v43 = vmul.f32 %v7427_v18, %v4771_v40  ;;  %v4774_v7 = vmul.f32 %v7427_v18, %v4773_v41  ;;  %v4776_v45 = vmul.f32 %v7427_v18, %v4775_v39  ;;  %v7321_v39 = vld [vmem:[#allocation16 + $0x170] ss:$8 sps:$4 sm:$0xff]   ;;  %v7326_v40 = vld [vmem:[#allocation16 + $0x84] ss:$8 sps:$4 sm:$0xff]   ;;  %v7327_v18 = vld [vmem:[#allocation16 + $0x180] ss:$8 sps:$4 sm:$0xff]  }
0x1c51   : > { %v7329_v41 = vld [vmem:[#allocation16 + $0x184] ss:$8 sps:$4 sm:$0xff]  }
0x1c52   : > { %v4777_v23 = vmul.f32 %v4772_v43, %v8620_v3  ;;  %v4778_v49 = vmul.f32 %v4776_v45, %v8622_v4  ;;  %v4780_v51 = vmul.f32 %v4776_v45, %v8620_v3  ;;  %v4781_v53 = vmul.f32 %v4774_v7, %v8622_v4  ;;  %v7332_v43 = vld [vmem:[#allocation16 + $0x94] ss:$8 sps:$4 sm:$0xff]   ;;  %v7330_v45 = vld [vmem:[#allocation16 + $0x90] ss:$8 sps:$4 sm:$0xff]  }
0x1c53   : > { %v7335_v7 = vld [vmem:[#allocation16 + $0x194] ss:$8 sps:$4 sm:$0xff]  }
0x1c54   : > { %v4779_v54 = vadd.f32 %v4778_v49, %v4777_v23  ;;  %v4782_v55 = vadd.f32 %v4781_v53, %v4780_v51  ;;  %v7339_v23 = vld [vmem:[#allocation16 + $0x1a0] ss:$8 sps:$4 sm:$0xff]   ;;  %v7344_v49 = vld [vmem:[#allocation16 + $0xb4] ss:$8 sps:$4 sm:$0xff]   ;;  %v7342_v51 = vld [vmem:[#allocation16 + $0xb0] ss:$8 sps:$4 sm:$0xff]  }
0x1c55   : > { %v7345_v53 = vld [vmem:[#allocation16 + $0x1b0] ss:$8 sps:$4 sm:$0xff]  }
0x1c56   : > { %v4803_v30 = vmul.f32 %v4802_v10, %v4779_v54  ;;  %v4808_v57 = vmul.f32 %v4807_v47, %v4782_v55  ;;  %v4787_v59 = vmul.f32 %v4786_v16, %v4779_v54  ;;  %v4792_v60 = vmul.f32 %v4791_v48, %v4782_v55  ;;  %v7333_v10 = vld [vmem:[#allocation16 + $0x190] ss:$8 sps:$4 sm:$0xff]   ;;  %v7338_v47 = vld [vmem:[#allocation16 + $0xa4] ss:$8 sps:$4 sm:$0xff]   ;;  %v7336_v48 = vld [vmem:[#allocation16 + $0xa0] ss:$8 sps:$4 sm:$0xff]  }
0x1c57   : > { %v7341_v16 = vld [vmem:[#allocation16 + $0x1a4] ss:$8 sps:$4 sm:$0xff]  }
0x1c58   : > { %v4809_v15 = vadd.f32 %v4808_v57, %v4803_v30  ;;  %v4793_v61 = vadd.f32 %v4792_v60, %v4787_v59  ;;  %v7350_v54 = vld [vmem:[#allocation16 + $0xc4] ss:$8 sps:$4 sm:$0xff]   ;;  %v7356_v30 = vld [vmem:[#allocation16 + $0xd4] ss:$8 sps:$4 sm:$0xff]   ;;  %v7354_v59 = vld [vmem:[#allocation16 + $0xd0] ss:$8 sps:$4 sm:$0xff]  }
0x1c59   : > { %v7353_v55 = vld [vmem:[#allocation16 + $0x1c4] ss:$8 sps:$4 sm:$0xff]   ;;  %v7359_v57 = vld [vmem:[#allocation16 + $0x1d4] ss:$8 sps:$4 sm:$0xff]   ;;  %v7357_v60 = vld [vmem:[#allocation16 + $0x1d0] ss:$8 sps:$4 sm:$0xff]  }
0x1c5a   : > { %v8646_v62 = vadd.f32 %v4813_v56, %v4809_v15  ;;  %v8648_v33 = vadd.f32 %v4797_v63, %v4793_v61  ;;  %v7348_v63 = vld [vmem:[#allocation16 + $0xc0] ss:$8 sps:$4 sm:$0xff]   ;;  %v7362_v15 = vld [vmem:[#allocation16 + $0xe4] ss:$8 sps:$4 sm:$0xff]  }
0x1c5b   : > { %v7351_v56 = vld [vmem:[#allocation16 + $0x1c0] ss:$8 sps:$4 sm:$0xff]   ;;  %v7365_v61 = vld [vmem:[#allocation16 + $0x1e4] ss:$8 sps:$4 sm:$0xff]  }
0x1c5c   : > { %v4881_v3 = vpack.c.bf16 %v8646_v62, %v8646_v62  ;;  %v4880_v4 = vpack.c.bf16 %v8648_v33, %v8648_v33 }
0x1c5e   : > { %5255 = vmatprep.mubr.bf16.mxu1 %v4881_v3  ;;  %5296 = vmatprep.mubr.bf16.mxu0 %v4881_v3  ;;  %v7360_v3 = vld [vmem:[#allocation16 + $0xe0] ss:$8 sps:$4 sm:$0xff]  }
0x1c5f   : > { %5256 = vmatmul.mubr.bf16.vlgmr.msra.gmra.mrb[96].mxu1 %v4880_v4  ;;  %5297 = vmatmul.mubr.bf16.vlgmr.msra.gmra.mrb[40].mxu0 %v4880_v4  ;;  %v7363_v4 = vld [vmem:[#allocation16 + $0x1e0] ss:$8 sps:$4 sm:$0xff]  }
0x1c60   : > { %5710 = vmatpush1.bf16.msra.mxu1 %v7276_v38  ;;  %5751 = vmatpush1.bf16.msra.mxu0 %v7279_v0  ;;  %v7368_v38 = vld [vmem:[#allocation16 + $0xf4] ss:$8 sps:$4 sm:$0xff]  }
0x1c61   : > { %5711 = vmatprep.subr.bf16.mxu1 %v7284_v29  ;;  %5752 = vmatprep.subr.bf16.mxu0 %v7287_v27  ;;  %v7371_v0 = vld [vmem:[#allocation16 + $0x1f4] ss:$8 sps:$4 sm:$0xff]   ;;  %v7366_v29 = vld [vmem:[#allocation16 + $0xf0] ss:$8 sps:$4 sm:$0xff]  }
0x1c62   : > { %v7369_v27 = vld [vmem:[#allocation16 + $0x1f0] ss:$8 sps:$4 sm:$0xff]  }
0x1c64   : > { %5712 = vmatpush1.bf16.msra.mxu1 %v7282_v25  ;;  %5753 = vmatpush1.bf16.msra.mxu0 %v7285_v44  ;;  %v4879_v25 = vld [vmem:[%s8827_s14] sm:$0xf]  ;;  %s8831_s14 = sld [smem:[#allocation43_spill]] }
0x1c65   : > { %5713 = vmatprep.subr.bf16.mxu1 %v7290_v9  ;;  %5754 = vmatprep.subr.bf16.mxu0 %v7293_v6  ;;  %v4886_v44 = vrot.slane %v4879_v25, %v8310_v19  ;;  %v4894_v9 = vrot.slane %v4879_v25, %v8325_v31  ;;  %v4890_v6 = vrot.slane %v4879_v25, %v8379_v58 }
0x1c68   : > { %5714 = vmatpush1.bf16.msra.mxu1 %v7288_v20  ;;  %5755 = vmatpush1.bf16.msra.mxu0 %v7291_v8  ;;  %v4898_v20 = vrot.slane %v4879_v25, %v8389_v2 }
0x1c69   : > { %5715 = vmatprep.subr.bf16.mxu1 %v7296_v11  ;;  %5756 = vmatprep.subr.bf16.mxu0 %v7299_v12 }
0x1c6a   : > { %s8686_s15 = scalar_lea.hbm %s8831_s14, %s6558_s4 }
0x1c6c   : > { %5716 = vmatpush1.bf16.msra.mxu1 %v7294_v52  ;;  %5757 = vmatpush1.bf16.msra.mxu0 %v7297_v1 }
0x1c6d   : > { %5717 = vmatprep.subr.bf16.mxu1 %v7302_v14  ;;  %5758 = vmatprep.subr.bf16.mxu0 %v7305_v13 }
0x1c70   : > { %5718 = vmatpush1.bf16.msra.mxu1 %v7300_v17  ;;  %5759 = vmatpush1.bf16.msra.mxu0 %v7303_v21 }
0x1c71   : > { %5719 = vmatprep.subr.bf16.mxu1 %v7308_v22  ;;  %5760 = vmatprep.subr.bf16.mxu0 %v7311_v24 }
0x1c74   : > { %5720 = vmatpush1.bf16.msra.mxu1 %v7306_v34  ;;  %5761 = vmatpush1.bf16.msra.mxu0 %v7309_v26 }
0x1c75   : > { %5721 = vmatprep.subr.bf16.mxu1 %v7314_v28  ;;  %5762 = vmatprep.subr.bf16.mxu0 %v7317_v46 }
0x1c78   : > { %5722 = vmatpush1.bf16.msra.mxu1 %v7312_v32  ;;  %5763 = vmatpush1.bf16.msra.mxu0 %v7315_v5 }
0x1c79   : > { %5723 = vmatprep.subr.bf16.mxu1 %v7320_v35  ;;  %5764 = vmatprep.subr.bf16.mxu0 %v7323_v36 }
0x1c7c   : > { %5724 = vmatpush1.bf16.msra.mxu1 %v7318_v37  ;;  %5765 = vmatpush1.bf16.msra.mxu0 %v7321_v39  ;;  %v5373_v39 = vld [vmem:[%s8828_s25] sm:$0x3]  ;;  %s7694_s25 = sshll.u32 %s7796_s8, 4  ;;  %s7695_s25 = int_to_ptr.vmem [resolvable:$false] %s7694_s25 }
0x1c7d   : > { %5725 = vmatprep.subr.bf16.mxu1 %v7326_v40  ;;  %5766 = vmatprep.subr.bf16.mxu0 %v7329_v41  ;;  %v5382_v40 = vrot.slane %v5373_v39, %v8310_v19  ;;  %v5386_v41 = vrot.slane %v5373_v39, %v8379_v58  ;;  %s7696_s24 = scalar_lea.vmem %s7695_s25, 512  ;;  %p7697_p7 = scmp.lt.s32.totalorder %s8688_s5, %s7695_s25 }
0x1c7e   : > { %p7698_p8 = scmp.lt.s32.totalorder %s7696_s24, %s7690_s1 }
0x1c80   : > { %5726 = vmatpush1.bf16.msra.mxu1 %v7324_v42  ;;  %5767 = vmatpush1.bf16.msra.mxu0 %v7327_v18  ;;  %p7699_p4 = por %p7698_p8, %p7697_p7 }
0x1c81   : > { %5727 = vmatprep.subr.bf16.mxu1 %v7332_v43  ;;  %5768 = vmatprep.subr.bf16.mxu0 %v7335_v7 }
0x1c82   : > { %p7700_p3 = pnand %p7699_p4, %p7693_p5 }
0x1c84   : > { %5728 = vmatpush1.bf16.msra.mxu1 %v7330_v45  ;;  %5769 = vmatpush1.bf16.msra.mxu0 %v7333_v10 }
0x1c85   : > { %5729 = vmatprep.subr.bf16.mxu1 %v7338_v47  ;;  %5770 = vmatprep.subr.bf16.mxu0 %v7341_v16 }
0x1c88   : > { %5730 = vmatpush1.bf16.msra.mxu1 %v7336_v48  ;;  %5771 = vmatpush1.bf16.msra.mxu0 %v7339_v23 }
0x1c89   : > { %5731 = vmatprep.subr.bf16.mxu1 %v7344_v49  ;;  %5772 = vmatprep.subr.bf16.mxu0 %v7347_v50 }
0x1c8c   : > { %5732 = vmatpush1.bf16.msra.mxu1 %v7342_v51  ;;  %5773 = vmatpush1.bf16.msra.mxu0 %v7345_v53 }
0x1c8d   : > { %5733 = vmatprep.subr.bf16.mxu1 %v7350_v54  ;;  %5774 = vmatprep.subr.bf16.mxu0 %v7353_v55 }
0x1c90   : > { %5734 = vmatpush1.bf16.msra.mxu1 %v7348_v63  ;;  %5775 = vmatpush1.bf16.msra.mxu0 %v7351_v56 }
0x1c91   : > { %5735 = vmatprep.subr.bf16.mxu1 %v7356_v30  ;;  %5776 = vmatprep.subr.bf16.mxu0 %v7359_v57 }
0x1c94   : > { %5736 = vmatpush1.bf16.msra.mxu1 %v7354_v59  ;;  %5777 = vmatpush1.bf16.msra.mxu0 %v7357_v60 }
0x1c95   : > { %5737 = vmatprep.subr.bf16.mxu1 %v7362_v15  ;;  %5778 = vmatprep.subr.bf16.mxu0 %v7365_v61 }
0x1c98   : > { %5738 = vmatpush1.bf16.msra.mxu1 %v7360_v3  ;;  %5779 = vmatpush1.bf16.msra.mxu0 %v7363_v4 }
0x1c99   : > { %5739 = vmatprep.subr.bf16.mxu1 %v7368_v38  ;;  %5780 = vmatprep.subr.bf16.mxu0 %v7371_v0 }
0x1c9c   : > { %5740 = vmatpush1.bf16.msra.mxu1 %v7366_v29  ;;  %5781 = vmatpush1.bf16.msra.mxu0 %v7369_v27 }
0x1d32   : > { %v5257_v8 = vpop.f32.mrb[96].mxu1  ;;  %v5298_v11 = vpop.f32.mrb[40].mxu0 }
0x1d33   : > { %v5258_v12 = vadd.f32 %v5257_v8, %v4886_v44  ;;  %v5299_v52 = vadd.f32 %v5298_v11, %v4894_v9  ;;  %v5259_v1 = vpop.f32.mrb[97].mxu1  ;;  %v5300_v14 = vpop.f32.mrb[41].mxu0 }
0x1d34   : > { %v5260_v13 = vadd.f32 %v5259_v1, %v4890_v6  ;;  %v5301_v17 = vadd.f32 %v5300_v14, %v4898_v20  ;;  %v5261_v21 = vpop.f32.mrb[98].mxu1  ;;  %v5302_v22 = vpop.f32.mrb[42].mxu0 }
0x1d35   : > { %v5305_v24 = vmax.f32 %v5258_v12, 0.0  ;;  %v5307_v34 = vmax.f32 %v5299_v52, 0.0  ;;  %v5262_v26 = vpop.f32.mrb[99].mxu1  ;;  %v5303_v28 = vpop.f32.mrb[43].mxu0 }
0x1d36   : > { %v5306_v46 = vmax.f32 %v5260_v13, 0.0  ;;  %v5308_v32 = vmax.f32 %v5301_v17, 0.0  ;;  %v5793_v13 = vld [vmem:[%s8829_s12] sm:$0xf] }
0x1d37   : > { %v5374_v36 = vpack.c.bf16 %v5305_v24, %v5305_v24  ;;  %v5376_v37 = vpack.c.bf16 %v5307_v34, %v5307_v34 }
0x1d38   : > { %v5375_v5 = vpack.c.bf16 %v5306_v46, %v5306_v46  ;;  %v5377_v35 = vpack.c.bf16 %v5308_v32, %v5308_v32  ;;  %v5847_v46 = vrot.slane %v5793_v13, %v8310_v19  ;;  %v5852_v32 = vrot.slane %v5793_v13, %v8379_v58 }
0x1d3a   : > { %5741 = vmatprep.mubr.bf16.mxu1 %v5375_v5  ;;  %5782 = vmatprep.mubr.bf16.mxu0 %v5377_v35  ;;  %v5863_v5 = vrot.slane %v5793_v13, %v8325_v31  ;;  %v5868_v35 = vrot.slane %v5793_v13, %v8389_v2 }
0x1d3b   : > { %5742 = vmatmul.mubr.bf16.vlgmr.msra.gmra.mrb[100].mxu1 %v5374_v36  ;;  %5783 = vmatmul.mubr.bf16.vlgmr.msra.gmra.mrb[44].mxu0 %v5376_v37 }
0x1e0e   : > { %v5743_v42 = vpop.f32.mrb[100].mxu1  ;;  %v5784_v18 = vpop.f32.mrb[44].mxu0 }
0x1e0f   : > { %v5744_v43 = vadd.f32 %v5743_v42, %v5382_v40  ;;  %v5745_v7 = vpop.f32.mrb[101].mxu1  ;;  %v5786_v45 = vpop.f32.mrb[45].mxu0 }
0x1e10   : > { %v5746_v10 = vadd.f32 %v5745_v7, %v5386_v41  ;;  %v5747_v47 = vpop.f32.mrb[102].mxu1  ;;  %v5788_v16 = vpop.f32.mrb[46].mxu0  ;;  %v5794_v41 = vld [vmem:[%s8830_s18] sm:$0x3] }
0x1e11   : > { %v5785_v48 = vadd.f32 %v5784_v18, %v5744_v43  ;;  %v5748_v23 = vpop.f32.mrb[103].mxu1  ;;  %v5789_v49 = vpop.f32.mrb[47].mxu0  ;;  %v5858_v43 = vrot.slane %v5794_v41, %v8310_v19  ;;  %v5874_v7 = vrot.slane %v5794_v41, %v8379_v58 }
0x1e12   : > { %v5787_v50 = vadd.f32 %v5786_v45, %v5746_v10 }
0x1e13   : > { %v5791_v51 = vadd.f32 %v5785_v48, %v8648_v33 }
0x1e14   : > { %v5792_v53 = vadd.f32 %v5787_v50, %v8646_v62 }
0x1e15   : > { %5795 = vadd.xlane.f32.xlu0 %v5791_v51 }
0x1e16   : > { %5798 = vadd.xlane.f32.xlu1 %v5792_v53 }
0x1ea2   : > { %v5796_v54 = vpop.xlane.xlu0 %5795 }
0x1ea3   : > { %v5797_v55 = vmul.f32 0.0078125, %v5796_v54  ;;  %v5799_v63 = vpop.xlane.xlu1 %5798 }
0x1ea4   : > { %v5800_v56 = vmul.f32 0.0078125, %v5799_v63 }
0x1ea5   : > { %v5801_v30 = vsub.f32 %v5791_v51, %v5797_v55 }
0x1ea6   : > { %v5802_v57 = vsub.f32 %v5792_v53, %v5800_v56 }
0x1ea7   : > { %v5803_v59 = vmul.f32 %v5801_v30, %v5801_v30 }
0x1ea8   : > { %v5808_v60 = vmul.f32 %v5802_v57, %v5802_v57  ;;  %v5813_v15 = vmul.f32 %v5802_v57, %v5801_v30 }
0x1ea9   : > { %5804 = vadd.xlane.f32.xlu0 %v5803_v59 }
0x1eaa   : > { %5809 = vadd.xlane.f32.xlu1 %v5808_v60 }
0x1ead   : > { %5814 = vadd.xlane.f32.xlu0 %v5813_v15 }
0x1f36   : > { %v5805_v61 = vpop.xlane.xlu0 %5804 }
0x1f37   : > { %v5806_v3 = vmul.f32 0.0078125, %v5805_v61  ;;  %v5810_v4 = vpop.xlane.xlu1 %5809 }
0x1f38   : > { %v5811_v33 = vmul.f32 0.0078125, %v5810_v4 }
0x1f39   : > { %v5807_v38 = vadd.f32 1e-05, %v5806_v3 }
0x1f3a   : > { %v5812_v62 = vadd.f32 1e-05, %v5811_v33  ;;  %v5815_v0 = vpop.xlane.xlu0 %5814 }
0x1f3b   : > { %v5816_v29 = vmul.f32 0.0078125, %v5815_v0 }
0x1f3c   : > { %v5817_v27 = vmul.f32 %v5812_v62, %v5807_v38  ;;  %v5827_v12 = vadd.f32 %v5812_v62, %v5807_v38 }
0x1f3d   : > { %v5818_v25 = vmul.f32 %v5816_v29, %v5816_v29  ;;  %v5836_v22 = vsub.f32 0.0, %v5816_v29 }
0x1f3f   : > { %v5819_v44 = vsub.f32 %v5817_v27, %v5818_v25 }
0x1f41   : > { %7428 = vrsqrt.f32 %v5819_v44  ;;  %vm5822_vm9 = vcmp.eq.f32.partialorder %v5819_v44, inf  ;;  %v5825_v20 = vand.u32 2147483648, %v5819_v44  ;;  %vm5824_vm10 = vcmp.eq.f32.partialorder %v5819_v44, 0.0 }
0x1f4b   : > { %v7429_v9 = vpop.eup %7428 }
0x1f4c   : > { %v5821_v6 = vmul.f32 %v7429_v9, %v5819_v44 }
0x1f4e   : > { %v5823_v8 = vsel %vm5822_vm9, %v5819_v44, %v5821_v6 }
0x1f4f   : > { %v5826_v11 = vsel %vm5824_vm10, %v5825_v20, %v5823_v8 }
0x1f50   : > { %v5828_v52 = vmul.f32 2.0, %v5826_v11  ;;  %v5832_v17 = vadd.f32 %v5826_v11, %v5812_v62  ;;  %v5834_v21 = vadd.f32 %v5826_v11, %v5807_v38 }
0x1f52   : > { %v5829_v1 = vadd.f32 %v5828_v52, %v5827_v12 }
0x1f54   : > { %v5830_v14 = vmul.f32 %v5829_v1, %v5819_v44 }
0x1f56   : > { %7430 = vrsqrt.f32 %v5830_v14 }
0x1f60   : > { %v7431_v24 = vpop.eup %7430 }
0x1f61   : > { %v5833_v34 = vmul.f32 %v7431_v24, %v5832_v17  ;;  %v5835_v26 = vmul.f32 %v7431_v24, %v5834_v21  ;;  %v5837_v28 = vmul.f32 %v7431_v24, %v5836_v22 }
0x1f63   : > { %v5838_v36 = vmul.f32 %v5833_v34, %v5801_v30  ;;  %v5839_v37 = vmul.f32 %v5837_v28, %v5802_v57  ;;  %v5841_v39 = vmul.f32 %v5837_v28, %v5801_v30  ;;  %v5842_v40 = vmul.f32 %v5835_v26, %v5802_v57 }
0x1f65   : > { %v5840_v42 = vadd.f32 %v5839_v37, %v5838_v36  ;;  %v5843_v18 = vadd.f32 %v5842_v40, %v5841_v39 }
0x1f67   : > { %v5848_v45 = vmul.f32 %v5847_v46, %v5840_v42  ;;  %v5853_v31 = vmul.f32 %v5852_v32, %v5843_v18  ;;  %v5864_v10 = vmul.f32 %v5863_v5, %v5840_v42  ;;  %v5869_v2 = vmul.f32 %v5868_v35, %v5843_v18 }
0x1f69   : > { %v5854_v47 = vadd.f32 %v5853_v31, %v5848_v45  ;;  %v5870_v16 = vadd.f32 %v5869_v2, %v5864_v10 }
0x1f6b   : > { %v5859_v48 = vadd.f32 %v5858_v43, %v5854_v47  ;;  %v5875_v23 = vadd.f32 %v5874_v7, %v5870_v16 }
0x1f6d   : > { %5876 = vst [vmem:[%s840_s19] sm:$0xff] %v5859_v48  ;;  %5877 = vst [vmem:[%s840_s19 + $0x8] sm:$0xff] %v5875_v23 }
0x1f6e   : > { %7703 = shalt.err (!%p7700_p3)
}
0x1f6f   : > { %s7704_s10 = scalar_lea.hbm %s8686_s15, 256  ;;  %s7708_s27 = scalar_lea.hbm %s8831_s14, 512 }
0x1f70   : > { %p7705_p10 = scmp.ne.s32.totalorder %s8686_s15, %s7704_s10  ;;  %p7709_p12 = scmp.lt.u32.totalorder %s8686_s15, %s8831_s14 }
0x1f71   : > { %p7710_p2 = scmp.lt.u32.totalorder %s7708_s27, %s7704_s10  ;;  %p7712_p6 = scmp.lt.u32.totalorder %s7704_s10, %s8686_s15 }
0x1f72   : > { %p7706_p1 = pnand %p7705_p10, %p8832_p9 }
0x1f73   : > { %p7711_p13 = por %p7710_p2, %p7709_p12 }
0x1f74   : > { %p7707_p11 = pneg %p7706_p1 }
0x1f75   : > { %p7713_p0 = por %p7712_p6, %p7711_p13 }
0x1f77   : > { %p7714_p5 = pnand %p7713_p0, %p7707_p11 }
0x1f79   : > { %7717 = shalt.err (!%p7714_p5)
}
0x1f7a   : > { %6783 = dma.vmem_to_hbm [thread:$0]  (%p8832_p9), %s8688_s5, 256, %s8686_s15, %s5879_s23  }
0x1f7b PF: > { %s5905_s4 = sand.u32 1, %s7764_s3   ;;  %p8833_p7 = scmp.ne.s32.totalorder %s8806_s13, 0 }
0x1f7c   : > { %p8834_p8 = scmp.ge.s32.totalorder %s7776_s30, 2  ;;  %s5906_s19 = scalar_lea.sflag [#allocation4], %s5905_s4 }
0x1f7e   : > { %p6815_p4 = pnand %p8834_p8, %p8833_p7 }
0x1f80   : > { %7759 = dma.done.wait (!%p6815_p4), %s5906_s19, 256  }
0x1f81   : > { %7761 = vsyncadd (!%p6815_p4), %s5906_s19, 4294967040  ;;  %p41_p3 = scmp.ge.s32.totalorder %s8131_s6, 4   ;;  %s8835_s3 = smov %s7768_s28 }
0x1f82   : > { %s8836_s28 = smov %s7772_s29  ;;  %s8837_s29 = smov %s8143_s22 }
0x1f83   : > { %s8838_s30 = smov %s8131_s6  ;;  %43 = sbr.rel (!%p41_p3) target bundleno = 30 (0x1e), region = 194 }
0x1f8a   :  { %5911 = vsyncpa [#allocation3], 1 }
0x1f8b   :  { %5913 = vsyncpa [#allocation3 + $0x1], 1 }
0x1f8c   :  { %5914 = vsyncpa [#allocation6], 1 }
0x1f8d   :  { %5916 = vsyncpa [#allocation6 + $0x1], 1 }
0x1f8e   :  { %5917 = vsyncpa [#allocation9], 1 }
0x1f8f   :  { %5918 = vsyncpa [#allocation12], 1 }
0x1f90   :  { %5919 = vsyncpa [#allocation15], 1 }
0x1f91   :  { %5920 = vsyncpa [#allocation4], 1 }
0x1f92   :  { %5922 = vsyncpa [#allocation4 + $0x1], 1 }

</bundles_post_ra>
